<compile_context>
chip_gen: v7x
topology: tpu7x:2x2x1
jax: 0.10.0
libtpu: 0.0.40
codegen_flags: <defaults>
</compile_context>

<pallas_src>
import functools

import jax
import jax.numpy as jnp
from jax.experimental import pallas as pl
from jax.experimental.pallas import tpu as pltpu

BN_EPS = 1e-5
VMEM_LIMIT = 32 * 1024 * 1024   # worst-case live VMEM here is ~10 MB; safe on v5e/v6e/v7x


def _round_up(x, m):
    return (x + m - 1) // m * m


def _n_tile(n_pad):
    # Split N into exactly 2 lane-dense tiles when possible (feeds both v7x TCs),
    # otherwise a single full-width tile.
    return n_pad // 2 if (n_pad % 256 == 0) else n_pad


# ---------------------------------------------------------------------------
# Kernel 1: one TDNN layer.  Grid = (N tiles,).  Whole (context*D, tn) weight tile
# and the whole (B, T, D) activation block sit in VMEM; the unfold is done in
# registers by accumulating `context` K-offset matmuls.  Epilogue = bias + ReLU +
# folded inference-BN scale/shift (bss rows 0/1/2 = bias / scale / shift).
# ---------------------------------------------------------------------------
def _tdnn_kernel(x_ref, w_ref, bss_ref, o_ref, *, context, dilation, mm_dtype):
    b = x_ref.shape[0]
    d = x_ref.shape[2]
    t_slice = o_ref.shape[1]          # multiple of 8 (valid rows + pad rows)
    tn = o_ref.shape[2]
    for bi in range(b):
        xb = x_ref[bi]                                           # (T_in_pad, D)
        acc = jnp.zeros((t_slice, tn), jnp.float32)
        for k in range(context):
            xk = xb[k * dilation:k * dilation + t_slice, :].astype(mm_dtype)
            acc += jnp.dot(xk, w_ref[k * d:(k + 1) * d, :],
                           preferred_element_type=jnp.float32)
        y = jnp.maximum(acc + bss_ref[0:1, :], 0.0)
        o_ref[bi] = (y * bss_ref[1:2, :] + bss_ref[2:3, :]).astype(o_ref.dtype)


# ---------------------------------------------------------------------------
# Kernel 2: last TDNN layer fused with statistics pooling (mean + unbiased std
# over the valid time steps).  Outputs are (b_pad, tn) per N tile.
# ---------------------------------------------------------------------------
def _tdnn_stats_kernel(x_ref, w_ref, bss_ref, mean_ref, std_ref, *,
                       context, dilation, t_out, t_slice, mm_dtype):
    b = x_ref.shape[0]
    d = x_ref.shape[2]
    b_pad = mean_ref.shape[0]
    tn = mean_ref.shape[1]
    inv_t = 1.0 / t_out
    inv_tm1 = 1.0 / max(t_out - 1, 1)   # TODO(synk): torch.std gives NaN for T==1
    row = jax.lax.broadcasted_iota(jnp.int32, (t_slice, tn), 0)
    valid = row < t_out
    means, stds = [], []
    for bi in range(b):
        xb = x_ref[bi]
        acc = jnp.zeros((t_slice, tn), jnp.float32)
        for k in range(context):
            xk = xb[k * dilation:k * dilation + t_slice, :].astype(mm_dtype)
            acc += jnp.dot(xk, w_ref[k * d:(k + 1) * d, :],
                           preferred_element_type=jnp.float32)
        y = jnp.maximum(acc + bss_ref[0:1, :], 0.0)
        y = y * bss_ref[1:2, :] + bss_ref[2:3, :]
        y = jnp.where(valid, y, 0.0)
        m = jnp.sum(y, axis=0, keepdims=True) * inv_t                  # (1, tn)
        c = jnp.where(valid, y - m, 0.0)
        v = jnp.sum(c * c, axis=0, keepdims=True) * inv_tm1            # unbiased
        means.append(m)
        stds.append(jnp.sqrt(v))
    if b_pad > b:
        fill = jnp.zeros((b_pad - b, tn), jnp.float32)
        means.append(fill)
        stds.append(fill)
    mean_ref[...] = jnp.concatenate(means, axis=0)
    std_ref[...] = jnp.concatenate(stds, axis=0)


# ---------------------------------------------------------------------------
# Kernel 3: fused FC head  fc1 -> ReLU -> bn_fc1 -> fc2 -> ReLU -> bn_fc2 -> fc3.
# aux rows: 0 bias1, 1 scale1, 2 shift1, 3 bias2, 4 scale2, 5 shift2.
# ---------------------------------------------------------------------------
def _fc_head_kernel(s_ref, w1_ref, aux_ref, w2_ref, w3_ref, b3_ref, o_ref, *, mm_dtype):
    h = jnp.dot(s_ref[...].astype(mm_dtype), w1_ref[...],
                preferred_element_type=jnp.float32)
    h = jnp.maximum(h + aux_ref[0:1, :], 0.0) * aux_ref[1:2, :] + aux_ref[2:3, :]
    h = jnp.dot(h.astype(mm_dtype), w2_ref[...], preferred_element_type=jnp.float32)
    h = jnp.maximum(h + aux_ref[3:4, :], 0.0) * aux_ref[4:5, :] + aux_ref[5:6, :]
    o_ref[...] = (jnp.dot(h, w3_ref[...], preferred_element_type=jnp.float32)
                  + b3_ref[...]).astype(o_ref.dtype)                  # fc3 kept f32


# ---------------------------------------------------------------------------
# pallas_call wrappers.
# ---------------------------------------------------------------------------
def tdnn_layer(x, lp, t_valid, mm_dtype):
    """x: (B, T_pad, D_pad) f32.  Returns ((B, t_slice, n_pad) f32, t_out)."""
    b = x.shape[0]
    c, dil = lp["context"], lp["dilation"]
    t_out = t_valid - (c - 1) * dil
    t_slice = _round_up(t_out, 8)
    need_t = (c - 1) * dil + t_slice
    if x.shape[1] < need_t:          # only the raw feature ever needs this (tiny pad)
        x = jnp.pad(x, ((0, 0), (0, need_t - x.shape[1]), (0, 0)))
    w, bss = lp["w"], lp["bss"]
    kd, n_pad = w.shape
    tn = _n_tile(n_pad)
    out = pl.pallas_call(
        functools.partial(_tdnn_kernel, context=c, dilation=dil, mm_dtype=mm_dtype),
        out_shape=jax.ShapeDtypeStruct((b, t_slice, n_pad), jnp.float32),
        grid_spec=pltpu.PrefetchScalarGridSpec(
            num_scalar_prefetch=0,
            grid=(n_pad // tn,),
            in_specs=[
                pl.BlockSpec((b, x.shape[1], x.shape[2]), lambda j: (0, 0, 0)),
                pl.BlockSpec((kd, tn), lambda j: (0, j)),
                pl.BlockSpec((3, tn), lambda j: (0, j)),
            ],
            out_specs=pl.BlockSpec((b, t_slice, tn), lambda j: (0, 0, j)),
        ),
        compiler_params=pltpu.CompilerParams(
            dimension_semantics=("parallel",),
            vmem_limit_bytes=VMEM_LIMIT),
    )(x, w, bss)
    return out, t_out


def tdnn_stats_layer(x, lp, t_valid, mm_dtype):
    """Last TDNN layer + statistics pooling.  Returns mean, std: (b_pad, n_pad)."""
    b = x.shape[0]
    b_pad = _round_up(b, 8)
    c, dil = lp["context"], lp["dilation"]
    t_out = t_valid - (c - 1) * dil
    t_slice = _round_up(t_out, 8)
    need_t = (c - 1) * dil + t_slice
    if x.shape[1] < need_t:
        x = jnp.pad(x, ((0, 0), (0, need_t - x.shape[1]), (0, 0)))
    w, bss = lp["w"], lp["bss"]
    kd, n_pad = w.shape
    tn = _n_tile(n_pad)
    mean, std = pl.pallas_call(
        functools.partial(_tdnn_stats_kernel, context=c, dilation=dil,
                          t_out=t_out, t_slice=t_slice, mm_dtype=mm_dtype),
        out_shape=(jax.ShapeDtypeStruct((b_pad, n_pad), jnp.float32),
                   jax.ShapeDtypeStruct((b_pad, n_pad), jnp.float32)),
        grid_spec=pltpu.PrefetchScalarGridSpec(
            num_scalar_prefetch=0,
            grid=(n_pad // tn,),
            in_specs=[
                pl.BlockSpec((b, x.shape[1], x.shape[2]), lambda j: (0, 0, 0)),
                pl.BlockSpec((kd, tn), lambda j: (0, j)),
                pl.BlockSpec((3, tn), lambda j: (0, j)),
            ],
            out_specs=(pl.BlockSpec((b_pad, tn), lambda j: (0, j)),
                       pl.BlockSpec((b_pad, tn), lambda j: (0, j))),
        ),
        compiler_params=pltpu.CompilerParams(
            dimension_semantics=("parallel",),
            vmem_limit_bytes=VMEM_LIMIT),
    )(x, w, bss)
    return mean, std


def fc_head(stats, hd, mm_dtype):
    b_pad, kp = stats.shape
    h_pad = hd["w2"].shape[0]
    n_pad = hd["w3"].shape[1]
    return pl.pallas_call(
        functools.partial(_fc_head_kernel, mm_dtype=mm_dtype),
        out_shape=jax.ShapeDtypeStruct((b_pad, n_pad), jnp.float32),
        grid_spec=pltpu.PrefetchScalarGridSpec(
            num_scalar_prefetch=0,
            grid=(1,),
            in_specs=[
                pl.BlockSpec((b_pad, kp), lambda i: (0, 0)),
                pl.BlockSpec((kp, h_pad), lambda i: (0, 0)),
                pl.BlockSpec((6, h_pad), lambda i: (0, 0)),
                pl.BlockSpec((h_pad, h_pad), lambda i: (0, 0)),
                pl.BlockSpec((h_pad, n_pad), lambda i: (0, 0)),
                pl.BlockSpec((1, n_pad), lambda i: (0, 0)),
            ],
            out_specs=pl.BlockSpec((b_pad, n_pad), lambda i: (0, 0)),
        ),
        compiler_params=pltpu.CompilerParams(
            dimension_semantics=("arbitrary",),
            vmem_limit_bytes=VMEM_LIMIT),
    )(stats, hd["w1"], hd["aux"], hd["w2"], hd["w3"], hd["b3"])


def xvector_forward(prep, feature):
    """Inference forward: feature (B, T, input_dim) -> (B, nOut)."""
    b, t_valid, d = feature.shape
    mm_dtype = prep["mm_dtype"]
    x = feature.astype(jnp.float32)
    if prep["d_in_pad"] != d:
        x = jnp.pad(x, ((0, 0), (0, 0), (0, prep["d_in_pad"] - d)))
    for lp in prep["tdnn"][:-1]:
        x, t_valid = tdnn_layer(x, lp, t_valid, mm_dtype)
    mean, std = tdnn_stats_layer(x, prep["tdnn"][-1], t_valid, mm_dtype)
    stats = jnp.concatenate([mean, std], axis=1)       # padded channel layout
    out = fc_head(stats, prep["head"], mm_dtype)
    return out[:b, :prep["n_out"]]


# ---------------------------------------------------------------------------
# One-time parameter preparation: BN folding, weight re-layout to padded (K, N),
# bf16 casting, bias/scale/shift packing.  Runs OFF the hot path.
# ---------------------------------------------------------------------------
def prepare_params(params, mm_dtype=jnp.bfloat16):
    prep_tdnn = []
    first = params["tdnn"][0]
    d_in0 = first["w_t"].shape[0] // first["context"]
    d_in_pad0 = _round_up(d_in0, 128)
    d_prev_pad = d_in_pad0
    for p in params["tdnn"]:
        ctx, dil = p["context"], p["dilation"]
        k, n = p["w_t"].shape
        in_dim = k // ctx
        n_pad = _round_up(n, 128)
        w_new = jnp.zeros((ctx * d_prev_pad, n_pad), jnp.float32)
        for kk in range(ctx):
            w_new = w_new.at[kk * d_prev_pad:kk * d_prev_pad + in_dim, :n].set(
                p["w_t"][kk * in_dim:(kk + 1) * in_dim, :])
        scale = p["gamma"] * jax.lax.rsqrt(p["running_var"] + BN_EPS)
        shift = p["beta"] - p["running_mean"] * scale
        bss = jnp.zeros((3, n_pad), jnp.float32)
        bss = bss.at[0, :n].set(p["bias"]).at[1, :n].set(scale).at[2, :n].set(shift)
        prep_tdnn.append(dict(context=ctx, dilation=dil,
                              w=w_new.astype(mm_dtype), bss=bss))
        d_prev_pad = n_pad

    # FC head.  Stats layout is [mean (n5_pad) | std (n5_pad)], so fc1's K rows are
    # re-laid out with zero rows in the pad regions.
    n5 = params["tdnn"][-1]["w_t"].shape[1]
    n5_pad = d_prev_pad
    w1_t = params["fc1"]["w_t"]                      # (2*n5, hidden)
    hidden = w1_t.shape[1]
    h_pad = _round_up(hidden, 128)
    w1_new = jnp.zeros((2 * n5_pad, h_pad), jnp.float32)
    w1_new = (w1_new.at[:n5, :hidden].set(w1_t[:n5])
                    .at[n5_pad:n5_pad + n5, :hidden].set(w1_t[n5:]))
    s1 = jax.lax.rsqrt(params["bn_fc1"]["running_var"] + BN_EPS)
    h1 = -params["bn_fc1"]["running_mean"] * s1
    s2 = jax.lax.rsqrt(params["bn_fc2"]["running_var"] + BN_EPS)
    h2 = -params["bn_fc2"]["running_mean"] * s2
    aux = jnp.zeros((6, h_pad), jnp.float32)
    aux = (aux.at[0, :hidden].set(params["fc1"]["bias"])
              .at[1, :hidden].set(s1).at[2, :hidden].set(h1)
              .at[3, :hidden].set(params["fc2"]["bias"])
              .at[4, :hidden].set(s2).at[5, :hidden].set(h2))
    w2_new = jnp.zeros((h_pad, h_pad), jnp.float32).at[:hidden, :hidden].set(
        params["fc2"]["w_t"])
    w3_t = params["fc3"]["w_t"]
    n_out = w3_t.shape[1]
    n_out_pad = _round_up(n_out, 128)
    w3_new = jnp.zeros((h_pad, n_out_pad), jnp.float32).at[:hidden, :n_out].set(w3_t)
    b3 = jnp.zeros((1, n_out_pad), jnp.float32).at[0, :n_out].set(params["fc3"]["bias"])
    head = dict(w1=w1_new.astype(mm_dtype), aux=aux,
                w2=w2_new.astype(mm_dtype), w3=w3_new, b3=b3)
    return dict(tdnn=prep_tdnn, head=head, d_in_pad=d_in_pad0,
                n_out=n_out, mm_dtype=mm_dtype)


# ---------------------------------------------------------------------------
# Pure-JAX reference (same inference semantics).  mm_dtype selects matmul operand
# precision so the bf16 Pallas path can be checked tightly, and the true f32
# module semantics loosely.
# ---------------------------------------------------------------------------
def unfold_context(x, context, dilation):
    if context == 1:
        return x
    t_new = x.shape[1] - (context - 1) * dilation
    cols = [x[:, k * dilation:k * dilation + t_new, :] for k in range(context)]
    return jnp.concatenate(cols, axis=2)


def xvector_reference(params, feature, mm_dtype=jnp.float32):
    hp = jax.lax.Precision.HIGHEST

    def mm(a, w):
        return jnp.dot(a.astype(mm_dtype), w.astype(mm_dtype),
                       precision=hp, preferred_element_type=jnp.float32)

    x = feature.astype(jnp.float32)
    for p in params["tdnn"]:
        u = unfold_context(x, p["context"], p["dilation"])
        b, t, k = u.shape
        y = mm(u.reshape(b * t, k), p["w_t"]).reshape(b, t, -1) + p["bias"]
        y = jnp.maximum(y, 0.0)
        scale = p["gamma"] * jax.lax.rsqrt(p["running_var"] + BN_EPS)
        shift = p["beta"] - p["running_mean"] * scale
        x = y * scale + shift
    mean = jnp.mean(x, axis=1)
    std = jnp.std(x, axis=1, ddof=1)
    stats = jnp.concatenate([mean, std], axis=1)

    s1 = jax.lax.rsqrt(params["bn_fc1"]["running_var"] + BN_EPS)
    h1 = -params["bn_fc1"]["running_mean"] * s1
    s2 = jax.lax.rsqrt(params["bn_fc2"]["running_var"] + BN_EPS)
    h2 = -params["bn_fc2"]["running_mean"] * s2
    h = jnp.maximum(mm(stats, params["fc1"]["w_t"]) + params["fc1"]["bias"], 0.0) * s1 + h1
    h = jnp.maximum(mm(h, params["fc2"]["w_t"]) + params["fc2"]["bias"], 0.0) * s2 + h2
    return jnp.dot(h, params["fc3"]["w_t"], precision=hp,
                   preferred_element_type=jnp.float32) + params["fc3"]["bias"]


# ---------------------------------------------------------------------------
# Deterministic parameter construction (torch-Linear-style init, random BN stats).
# ---------------------------------------------------------------------------
def init_params(key, input_dim, output_dim, n_out):
    cfgs = [
        dict(in_dim=input_dim, out_dim=input_dim, context=5, dilation=1),
        dict(in_dim=input_dim, out_dim=input_dim, context=3, dilation=2),
        dict(in_dim=input_dim, out_dim=input_dim, context=3, dilation=3),
        dict(in_dim=input_dim, out_dim=input_dim, context=1, dilation=1),
        dict(in_dim=input_dim, out_dim=output_dim, context=1, dilation=1),
    ]
    keys = jax.random.split(key, len(cfgs) + 6)

    def linear_init(k, fan_in, fan_out):
        kw, kb = jax.random.split(k)
        bound = 1.0 / (fan_in ** 0.5)
        w = jax.random.uniform(kw, (fan_out, fan_in), minval=-bound,
                               maxval=bound, dtype=jnp.float32)
        b = jax.random.uniform(kb, (fan_out,), minval=-bound,
                               maxval=bound, dtype=jnp.float32)
        return w.T, b            # pre-transposed (K, N)

    def bn_init(k, dim, affine):
        k1, k2, k3, k4 = jax.random.split(k, 4)
        p = dict(
            running_mean=0.1 * jax.random.normal(k1, (dim,), jnp.float32),
            running_var=jax.random.uniform(k2, (dim,), minval=0.5,
                                           maxval=1.5, dtype=jnp.float32),
        )
        if affine:
            p["gamma"] = jax.random.uniform(k3, (dim,), minval=0.8,
                                            maxval=1.2, dtype=jnp.float32)
            p["beta"] = 0.1 * jax.random.normal(k4, (dim,), jnp.float32)
        return p

    tdnn = []
    for cfg, k in zip(cfgs, keys[:len(cfgs)]):
        k_lin, k_bn = jax.random.split(k)
        w_t, b = linear_init(k_lin, cfg["in_dim"] * cfg["context"], cfg["out_dim"])
        tdnn.append(dict(context=cfg["context"], dilation=cfg["dilation"],
                         w_t=w_t, bias=b,
                         **bn_init(k_bn, cfg["out_dim"], affine=True)))

    k_fc1, k_fc2, k_fc3, k_bn1, k_bn2, _ = keys[len(cfgs):]
    w1, b1 = linear_init(k_fc1, 2 * output_dim, input_dim)
    w2, b2 = linear_init(k_fc2, input_dim, input_dim)
    w3, b3 = linear_init(k_fc3, input_dim, n_out)
    return dict(
        tdnn=tdnn,
        fc1=dict(w_t=w1, bias=b1),
        fc2=dict(w_t=w2, bias=b2),
        fc3=dict(w_t=w3, bias=b3),
        bn_fc1=bn_init(k_bn1, input_dim, affine=False),
        bn_fc2=bn_init(k_bn2, input_dim, affine=False),
    )


if __name__ == "__main__":
    INPUT_DIM, OUTPUT_DIM, NOUT = 512, 1500, 512      # XVector defaults
    B, T = 2, 30                                      # small batch / sequence
    # After the TDNN stack: T -> 30 - 4 - 4 - 6 = 16 frames.

    key = jax.random.PRNGKey(0)
    k_feat, k_par = jax.random.split(key)
    feature = jax.random.normal(k_feat, (B, T, INPUT_DIM), dtype=jnp.float32)
    params = init_params(k_par, INPUT_DIM, OUTPUT_DIM, NOUT)
    prep = prepare_params(params, mm_dtype=jnp.bfloat16)   # one-time, off hot path

    out = jax.block_until_ready(xvector_forward(prep, feature))
    ref_match = jax.block_until_ready(
        xvector_reference(params, feature, mm_dtype=jnp.bfloat16))
    ref_f32 = jax.block_until_ready(
        xvector_reference(params, feature, mm_dtype=jnp.float32))

    assert out.shape == (B, NOUT), out.shape
    assert bool(jnp.all(jnp.isfinite(out))), "non-finite output"
    err_match = float(jnp.max(jnp.abs(out - ref_match)))
    err_f32 = float(jnp.max(jnp.abs(out - ref_f32)))
    # Tight check vs. a precision-matched reference (bf16 operands, f32 accumulate):
    assert err_match < 5e-3, f"max abs err vs matched-precision ref: {err_match}"
    # Loose sanity check vs. the pure-f32 module semantics (bf16 quantisation noise):
    assert err_f32 < 1e-1, f"max abs err vs f32 ref: {err_f32}"

    # TODO(synk): Dropout (p=0.1) and BatchNorm running-stat updates (training mode)
    # are not modeled; this is the inference/eval forward pass.
    print("KERNEL_OK")
</pallas_src>

<mosaic_0001>
module attributes {stable_mosaic.version = 11 : i64} {
  func.func @_tdnn_kernel(%arg0: i32, %arg1: memref<2x36x512xf32, #tpu.memory_space<vmem>>, %arg2: memref<2560x256xbf16, #tpu.memory_space<vmem>>, %arg3: memref<3x256xf32, #tpu.memory_space<vmem>>, %arg4: memref<2x32x256xf32, #tpu.memory_space<vmem>>) attributes {dimension_semantics = [#tpu.dimension_semantics<parallel>], iteration_bounds = array<i64: 2>, scalar_prefetch = 0 : i64, scratch_operands = 0 : i64, tpu.core_type = #tpu.core_type<tc>, window_params = [{pipeline_mode = #tpu.pipeline_mode<synchronous>, transform_indices = @transform_0, window_bounds = array<i64: 2, 36, 512>}, {transform_indices = @transform_1, window_bounds = array<i64: 2560, 256>}, {transform_indices = @transform_2, window_bounds = array<i64: 3, 256>}, {transform_indices = @transform_3, window_bounds = array<i64: 2, 32, 256>}]} {
    %c0 = arith.constant 0 : index
    %c0_0 = arith.constant 0 : index
    %c0_1 = arith.constant 0 : index
    %0 = vector.load %arg1[%c0, %c0_0, %c0_1] : memref<2x36x512xf32, #tpu.memory_space<vmem>>, vector<1x36x512xf32>
    %1 = vector.shape_cast %0 : vector<1x36x512xf32> to vector<36x512xf32>
    %cst = arith.constant 0.000000e+00 : f32
    %2 = vector.broadcast %cst : f32 to vector<32x256xf32>
    %3 = vector.extract_strided_slice %1 {offsets = [0, 0], sizes = [32, 512], strides = [1, 1]} : vector<36x512xf32> to vector<32x512xf32>
    %4 = arith.truncf %3 : vector<32x512xf32> to vector<32x512xbf16>
    %c0_2 = arith.constant 0 : index
    %c0_3 = arith.constant 0 : index
    %5 = vector.load %arg2[%c0_2, %c0_3] : memref<2560x256xbf16, #tpu.memory_space<vmem>>, vector<512x256xbf16>
    %cst_4 = arith.constant dense<0.000000e+00> : vector<32x256xf32>
    %6 = tpu.matmul %4, %5, %cst_4 {dimension_numbers = #tpu.dot_dimension_numbers<[1], [0], [0], [1], [0, 0, 1, 1], [], []>} : vector<32x512xbf16>, vector<512x256xbf16>, vector<32x256xf32> -> vector<32x256xf32>
    %7 = arith.addf %2, %6 : vector<32x256xf32>
    %8 = vector.extract_strided_slice %1 {offsets = [1, 0], sizes = [32, 512], strides = [1, 1]} : vector<36x512xf32> to vector<32x512xf32>
    %9 = arith.truncf %8 : vector<32x512xf32> to vector<32x512xbf16>
    %c512 = arith.constant 512 : index
    %c0_5 = arith.constant 0 : index
    %10 = vector.load %arg2[%c512, %c0_5] : memref<2560x256xbf16, #tpu.memory_space<vmem>>, vector<512x256xbf16>
    %cst_6 = arith.constant dense<0.000000e+00> : vector<32x256xf32>
    %11 = tpu.matmul %9, %10, %cst_6 {dimension_numbers = #tpu.dot_dimension_numbers<[1], [0], [0], [1], [0, 0, 1, 1], [], []>} : vector<32x512xbf16>, vector<512x256xbf16>, vector<32x256xf32> -> vector<32x256xf32>
    %12 = arith.addf %7, %11 : vector<32x256xf32>
    %13 = vector.extract_strided_slice %1 {offsets = [2, 0], sizes = [32, 512], strides = [1, 1]} : vector<36x512xf32> to vector<32x512xf32>
    %14 = arith.truncf %13 : vector<32x512xf32> to vector<32x512xbf16>
    %c1024 = arith.constant 1024 : index
    %c0_7 = arith.constant 0 : index
    %15 = vector.load %arg2[%c1024, %c0_7] : memref<2560x256xbf16, #tpu.memory_space<vmem>>, vector<512x256xbf16>
    %cst_8 = arith.constant dense<0.000000e+00> : vector<32x256xf32>
    %16 = tpu.matmul %14, %15, %cst_8 {dimension_numbers = #tpu.dot_dimension_numbers<[1], [0], [0], [1], [0, 0, 1, 1], [], []>} : vector<32x512xbf16>, vector<512x256xbf16>, vector<32x256xf32> -> vector<32x256xf32>
    %17 = arith.addf %12, %16 : vector<32x256xf32>
    %18 = vector.extract_strided_slice %1 {offsets = [3, 0], sizes = [32, 512], strides = [1, 1]} : vector<36x512xf32> to vector<32x512xf32>
    %19 = arith.truncf %18 : vector<32x512xf32> to vector<32x512xbf16>
    %c1536 = arith.constant 1536 : index
    %c0_9 = arith.constant 0 : index
    %20 = vector.load %arg2[%c1536, %c0_9] : memref<2560x256xbf16, #tpu.memory_space<vmem>>, vector<512x256xbf16>
    %cst_10 = arith.constant dense<0.000000e+00> : vector<32x256xf32>
    %21 = tpu.matmul %19, %20, %cst_10 {dimension_numbers = #tpu.dot_dimension_numbers<[1], [0], [0], [1], [0, 0, 1, 1], [], []>} : vector<32x512xbf16>, vector<512x256xbf16>, vector<32x256xf32> -> vector<32x256xf32>
    %22 = arith.addf %17, %21 : vector<32x256xf32>
    %23 = vector.extract_strided_slice %1 {offsets = [4, 0], sizes = [32, 512], strides = [1, 1]} : vector<36x512xf32> to vector<32x512xf32>
    %24 = arith.truncf %23 : vector<32x512xf32> to vector<32x512xbf16>
    %c2048 = arith.constant 2048 : index
    %c0_11 = arith.constant 0 : index
    %25 = vector.load %arg2[%c2048, %c0_11] : memref<2560x256xbf16, #tpu.memory_space<vmem>>, vector<512x256xbf16>
    %cst_12 = arith.constant dense<0.000000e+00> : vector<32x256xf32>
    %26 = tpu.matmul %24, %25, %cst_12 {dimension_numbers = #tpu.dot_dimension_numbers<[1], [0], [0], [1], [0, 0, 1, 1], [], []>} : vector<32x512xbf16>, vector<512x256xbf16>, vector<32x256xf32> -> vector<32x256xf32>
    %27 = arith.addf %22, %26 : vector<32x256xf32>
    %c0_13 = arith.constant 0 : index
    %c0_14 = arith.constant 0 : index
    %28 = vector.load %arg3[%c0_13, %c0_14] : memref<3x256xf32, #tpu.memory_space<vmem>>, vector<1x256xf32>
    %29 = vector.broadcast %28 : vector<1x256xf32> to vector<32x256xf32>
    %30 = arith.addf %27, %29 : vector<32x256xf32>
    %cst_15 = arith.constant 0.000000e+00 : f32
    %31 = vector.broadcast %cst_15 : f32 to vector<32x256xf32>
    %32 = arith.maximumf %30, %31 : vector<32x256xf32>
    %c1 = arith.constant 1 : index
    %c0_16 = arith.constant 0 : index
    %33 = vector.load %arg3[%c1, %c0_16] : memref<3x256xf32, #tpu.memory_space<vmem>>, vector<1x256xf32>
    %34 = vector.broadcast %33 : vector<1x256xf32> to vector<32x256xf32>
    %35 = arith.mulf %32, %34 : vector<32x256xf32>
    %c2 = arith.constant 2 : index
    %c0_17 = arith.constant 0 : index
    %36 = vector.load %arg3[%c2, %c0_17] : memref<3x256xf32, #tpu.memory_space<vmem>>, vector<1x256xf32>
    %37 = vector.broadcast %36 : vector<1x256xf32> to vector<32x256xf32>
    %38 = arith.addf %35, %37 : vector<32x256xf32>
    %c0_18 = arith.constant 0 : index
    %c0_19 = arith.constant 0 : index
    %c0_20 = arith.constant 0 : index
    %39 = vector.load %arg4[%c0_18, %c0_19, %c0_20] : memref<2x32x256xf32, #tpu.memory_space<vmem>>, vector<1x32x256xf32>
    %40 = vector.shape_cast %39 : vector<1x32x256xf32> to vector<32x256xf32>
    %41 = vector.shape_cast %38 : vector<32x256xf32> to vector<1x32x256xf32>
    tpu.vector_store %arg4[%c0_18, %c0_19, %c0_20], %41 {strides = array<i32>} : memref<2x32x256xf32, #tpu.memory_space<vmem>>, vector<1x32x256xf32>,
    %c1_21 = arith.constant 1 : index
    %c0_22 = arith.constant 0 : index
    %c0_23 = arith.constant 0 : index
    %42 = vector.load %arg1[%c1_21, %c0_22, %c0_23] : memref<2x36x512xf32, #tpu.memory_space<vmem>>, vector<1x36x512xf32>
    %43 = vector.shape_cast %42 : vector<1x36x512xf32> to vector<36x512xf32>
    %cst_24 = arith.constant 0.000000e+00 : f32
    %44 = vector.broadcast %cst_24 : f32 to vector<32x256xf32>
    %45 = vector.extract_strided_slice %43 {offsets = [0, 0], sizes = [32, 512], strides = [1, 1]} : vector<36x512xf32> to vector<32x512xf32>
    %46 = arith.truncf %45 : vector<32x512xf32> to vector<32x512xbf16>
    %c0_25 = arith.constant 0 : index
    %c0_26 = arith.constant 0 : index
    %47 = vector.load %arg2[%c0_25, %c0_26] : memref<2560x256xbf16, #tpu.memory_space<vmem>>, vector<512x256xbf16>
    %cst_27 = arith.constant dense<0.000000e+00> : vector<32x256xf32>
    %48 = tpu.matmul %46, %47, %cst_27 {dimension_numbers = #tpu.dot_dimension_numbers<[1], [0], [0], [1], [0, 0, 1, 1], [], []>} : vector<32x512xbf16>, vector<512x256xbf16>, vector<32x256xf32> -> vector<32x256xf32>
    %49 = arith.addf %44, %48 : vector<32x256xf32>
    %50 = vector.extract_strided_slice %43 {offsets = [1, 0], sizes = [32, 512], strides = [1, 1]} : vector<36x512xf32> to vector<32x512xf32>
    %51 = arith.truncf %50 : vector<32x512xf32> to vector<32x512xbf16>
    %c512_28 = arith.constant 512 : index
    %c0_29 = arith.constant 0 : index
    %52 = vector.load %arg2[%c512_28, %c0_29] : memref<2560x256xbf16, #tpu.memory_space<vmem>>, vector<512x256xbf16>
    %cst_30 = arith.constant dense<0.000000e+00> : vector<32x256xf32>
    %53 = tpu.matmul %51, %52, %cst_30 {dimension_numbers = #tpu.dot_dimension_numbers<[1], [0], [0], [1], [0, 0, 1, 1], [], []>} : vector<32x512xbf16>, vector<512x256xbf16>, vector<32x256xf32> -> vector<32x256xf32>
    %54 = arith.addf %49, %53 : vector<32x256xf32>
    %55 = vector.extract_strided_slice %43 {offsets = [2, 0], sizes = [32, 512], strides = [1, 1]} : vector<36x512xf32> to vector<32x512xf32>
    %56 = arith.truncf %55 : vector<32x512xf32> to vector<32x512xbf16>
    %c1024_31 = arith.constant 1024 : index
    %c0_32 = arith.constant 0 : index
    %57 = vector.load %arg2[%c1024_31, %c0_32] : memref<2560x256xbf16, #tpu.memory_space<vmem>>, vector<512x256xbf16>
    %cst_33 = arith.constant dense<0.000000e+00> : vector<32x256xf32>
    %58 = tpu.matmul %56, %57, %cst_33 {dimension_numbers = #tpu.dot_dimension_numbers<[1], [0], [0], [1], [0, 0, 1, 1], [], []>} : vector<32x512xbf16>, vector<512x256xbf16>, vector<32x256xf32> -> vector<32x256xf32>
    %59 = arith.addf %54, %58 : vector<32x256xf32>
    %60 = vector.extract_strided_slice %43 {offsets = [3, 0], sizes = [32, 512], strides = [1, 1]} : vector<36x512xf32> to vector<32x512xf32>
    %61 = arith.truncf %60 : vector<32x512xf32> to vector<32x512xbf16>
    %c1536_34 = arith.constant 1536 : index
    %c0_35 = arith.constant 0 : index
    %62 = vector.load %arg2[%c1536_34, %c0_35] : memref<2560x256xbf16, #tpu.memory_space<vmem>>, vector<512x256xbf16>
    %cst_36 = arith.constant dense<0.000000e+00> : vector<32x256xf32>
    %63 = tpu.matmul %61, %62, %cst_36 {dimension_numbers = #tpu.dot_dimension_numbers<[1], [0], [0], [1], [0, 0, 1, 1], [], []>} : vector<32x512xbf16>, vector<512x256xbf16>, vector<32x256xf32> -> vector<32x256xf32>
    %64 = arith.addf %59, %63 : vector<32x256xf32>
    %65 = vector.extract_strided_slice %43 {offsets = [4, 0], sizes = [32, 512], strides = [1, 1]} : vector<36x512xf32> to vector<32x512xf32>
    %66 = arith.truncf %65 : vector<32x512xf32> to vector<32x512xbf16>
    %c2048_37 = arith.constant 2048 : index
    %c0_38 = arith.constant 0 : index
    %67 = vector.load %arg2[%c2048_37, %c0_38] : memref<2560x256xbf16, #tpu.memory_space<vmem>>, vector<512x256xbf16>
    %cst_39 = arith.constant dense<0.000000e+00> : vector<32x256xf32>
    %68 = tpu.matmul %66, %67, %cst_39 {dimension_numbers = #tpu.dot_dimension_numbers<[1], [0], [0], [1], [0, 0, 1, 1], [], []>} : vector<32x512xbf16>, vector<512x256xbf16>, vector<32x256xf32> -> vector<32x256xf32>
    %69 = arith.addf %64, %68 : vector<32x256xf32>
    %c0_40 = arith.constant 0 : index
    %c0_41 = arith.constant 0 : index
    %70 = vector.load %arg3[%c0_40, %c0_41] : memref<3x256xf32, #tpu.memory_space<vmem>>, vector<1x256xf32>
    %71 = vector.broadcast %70 : vector<1x256xf32> to vector<32x256xf32>
    %72 = arith.addf %69, %71 : vector<32x256xf32>
    %cst_42 = arith.constant 0.000000e+00 : f32
    %73 = vector.broadcast %cst_42 : f32 to vector<32x256xf32>
    %74 = arith.maximumf %72, %73 : vector<32x256xf32>
    %c1_43 = arith.constant 1 : index
    %c0_44 = arith.constant 0 : index
    %75 = vector.load %arg3[%c1_43, %c0_44] : memref<3x256xf32, #tpu.memory_space<vmem>>, vector<1x256xf32>
    %76 = vector.broadcast %75 : vector<1x256xf32> to vector<32x256xf32>
    %77 = arith.mulf %74, %76 : vector<32x256xf32>
    %c2_45 = arith.constant 2 : index
    %c0_46 = arith.constant 0 : index
    %78 = vector.load %arg3[%c2_45, %c0_46] : memref<3x256xf32, #tpu.memory_space<vmem>>, vector<1x256xf32>
    %79 = vector.broadcast %78 : vector<1x256xf32> to vector<32x256xf32>
    %80 = arith.addf %77, %79 : vector<32x256xf32>
    %c1_47 = arith.constant 1 : index
    %c0_48 = arith.constant 0 : index
    %c0_49 = arith.constant 0 : index
    %81 = vector.load %arg4[%c1_47, %c0_48, %c0_49] : memref<2x32x256xf32, #tpu.memory_space<vmem>>, vector<1x32x256xf32>
    %82 = vector.shape_cast %81 : vector<1x32x256xf32> to vector<32x256xf32>
    %83 = vector.shape_cast %80 : vector<32x256xf32> to vector<1x32x256xf32>
    tpu.vector_store %arg4[%c1_47, %c0_48, %c0_49], %83 {strides = array<i32>} : memref<2x32x256xf32, #tpu.memory_space<vmem>>, vector<1x32x256xf32>,
    return
  }
  func.func @transform_0(%arg0: i32) -> (i32, i32, i32) {
    %c0_i32 = arith.constant 0 : i32
    %c0_i32_0 = arith.constant 0 : i32
    %c0_i32_1 = arith.constant 0 : i32
    %c0_i32_2 = arith.constant 0 : i32
    return %c0_i32, %c0_i32_0, %c0_i32_1 : i32, i32, i32
  }
  func.func @transform_1(%arg0: i32) -> (i32, i32) {
    %c0_i32 = arith.constant 0 : i32
    %c0_i32_0 = arith.constant 0 : i32
    return %c0_i32, %arg0 : i32, i32
  }
  func.func @transform_2(%arg0: i32) -> (i32, i32) {
    %c0_i32 = arith.constant 0 : i32
    %c0_i32_0 = arith.constant 0 : i32
    return %c0_i32, %arg0 : i32, i32
  }
  func.func @transform_3(%arg0: i32) -> (i32, i32, i32) {
    %c0_i32 = arith.constant 0 : i32
    %c0_i32_0 = arith.constant 0 : i32
    %c0_i32_1 = arith.constant 0 : i32
    return %c0_i32, %c0_i32_0, %arg0 : i32, i32, i32
  }
}

</mosaic_0001>

<bundles_post_ra>
// kernel: tpu_custom_call.1
= control target key start
LH: loop header
LB: loop body
LE: loop exit
PB: predicated region body
PF: predicated region fallthrough
CT: control target
= control target key end

     0   :  { %8 = vsyncpa [#allocation3], 0  ;;  %s8686_s0 = inlined_call_operand.vmem [shape: f32[2,36,512], index: 0, kind: input, shape index: {}]   ;;  %s8687_s1 = inlined_call_operand.hbm [shape: bf16[2560,512], index: 1, kind: input, shape index: {}]   ;;  %s8688_s2 = inlined_call_operand.hbm [shape: f32[3,512], index: 2, kind: input, shape index: {}]   ;;  %s8689_s3 = inlined_call_operand.hbm [shape: f32[2,32,512], index: 3, kind: output, shape index: {}]  }
   0x1   :  { %10 = vsyncpa [#allocation3 + $0x1], 0 }
   0x2   :  { %11 = vsyncpa [#allocation6], 0 }
   0x3   :  { %13 = vsyncpa [#allocation6 + $0x1], 0 }
   0x4   :  { %14 = vsyncpa [#allocation4], 0 }
   0x5   :  { %16 = vsyncpa [#allocation4 + $0x1], 0  ;;  %s7479_s12 = smov 0   ;;  %s7481_s13 = smov 0  }
   0x6   :  { %s7483_s14 = smov 0   ;;  %s7485_s15 = smov 0  }
   0x7 LB: > { %s7500_s16 = sadd.s32 4294967295, %s7448_s15   ;;  %s5944_s17 = sadd.s32 4294967294, %s7448_s15   ;;  %s7448_s15 = sphi %s7485_s15, %s8740_s15   ;;  %s7444_s14 = sphi %s7483_s14, %s8739_s14   ;;  %s7440_s13 = sphi %s7481_s13, %s8738_s13   ;;  %s7436_s12 = sphi %s7479_s12, %s8737_s12  }
   0x8   : > { %s7504_s18 = sadd.s32 1, %s7448_s15   ;;  %s50_s19 = sadd.s32 1, %s7444_s14 }
   0x9   : > { %s47_s20 = ssub.s32 %s7448_s15, %s7504_s18  ;;  %p57_p0 = scmp.ne.s32.totalorder %s7444_s14, %s7440_s13 }
   0xa   : > { %p48_p1 = scmp.eq.s32.totalorder %s47_s20, 0  ;;  %p58_p2 = scmp.eq.s32.totalorder %s7448_s15, 0 }
   0xb   : > { %p63_p3 = scmp.ne.s32.totalorder %s7440_s13, %s7436_s12  ;;  %p64_p4 = scmp.eq.s32.totalorder %s7500_s16, 0 }
   0xc   : > { %s7516_s21 = scalar_select %p48_p1, %s7444_s14, %s50_s19  }
   0xd   : > { %p59_p5 = por %p58_p2, %p57_p0  ;;  %p7518_p6 = por %p64_p4, %p63_p3 }
   0xe   : > { %p113_p7 = scmp.eq.s32.totalorder %s7500_s16, 1  ;;  %p119_p8 = scmp.eq.s32.totalorder %s5944_s17, 1 }
   0xf   : > { %s8709_s22 = scalar_select %p7518_p6, 1, 0 }
  0x10   : > { %p6798_p10 = scmp.lt.s32.totalorder %s7448_s15, 2  ;;  %p7525_p11 = por %p113_p7, %p57_p0 }
  0x11   : > { %p7529_p12 = por %p119_p8, %p63_p3  ;;  %s7534_s25 = sand.u32 1, %s7444_s14  }
  0x12   : > { %s8710_s23 = scalar_select %p7525_p11, 1, 0 }
  0x13   : > { %s8711_s24 = scalar_select %p7529_p12, 1, 0 }
  0x14   : > { %s6632_s26 = sshll.u32 %s7448_s15, 7  ;;  %s6779_s27 = smul.u32 2560, %s7534_s25 }
  0x15   : > { %s7543_s30 = scalar_lea.hbm %s8687_s1, %s6632_s26  ;;  %p7545_p13 = pnand %p6798_p10, %p59_p5 }
  0x16   : > { %s146_s5 = scalar_lea.vmem [#allocation2], %s6779_s27  ;;  %s143_s7 = scalar_lea.sflag [#allocation3], %s7534_s25 }
  0x17   : > { %s153_s6 = sshll.u32 %s146_s5, 4  ;;  %s7318_s8 = scalar_lea.hbm %s7543_s30, 40960  ;;  %s7549_s6 = int_to_ptr.vmem [resolvable:$true] %s153_s6 }
  0x18   : > { %p7319_p1 = scmp.ne.s32.totalorder %s7543_s30, %s7318_s8  ;;  %p7320_p2 = pneg %p7545_p13 }
  0x19   : > { %s7323_s11 = scalar_lea.hbm %s8687_s1, 81920  ;;  %p7324_p5 = scmp.lt.u32.totalorder %s7543_s30, %s8687_s1 }
  0x1a   : > { %p7321_p3 = pnand %p7320_p2, %p7319_p1  ;;  %p7325_p7 = scmp.lt.u32.totalorder %s7323_s11, %s7318_s8 }
  0x1b   : > { %p7327_p10 = scmp.lt.u32.totalorder %s7318_s8, %s7543_s30 }
  0x1c   : > { %p7322_p4 = pneg %p7321_p3  ;;  %p7326_p8 = por %p7325_p7, %p7324_p5 }
  0x1e   : > { %p7328_p9 = por %p7327_p10, %p7326_p8 }
  0x20   : > { %p7329_p0 = pnand %p7328_p9, %p7322_p4 }
  0x22   : > { %7332 = shalt.err (!%p7329_p0)
}
  0x23   : > { %s7333_s20 = scalar_lea.vmem %s7549_s6, 40960  ;;  %s7450_s27 = smov [#allocation2]  }
  0x24   : > { %p7334_p1 = scmp.ne.s32.totalorder %s7549_s6, %s7333_s20  ;;  %s7338_s28 = sshll.u32 %s7450_s27, 4  ;;  %s7339_s28 = int_to_ptr.vmem [resolvable:$false] %s7338_s28 }
  0x25   : > { %s7340_s29 = scalar_lea.vmem %s7339_s28, 81920  ;;  %p7341_p11 = scmp.lt.s32.totalorder %s7549_s6, %s7339_s28 }
  0x26   : > { %p7336_p3 = pnand %p7334_p1, %p7320_p2  ;;  %p7342_p5 = scmp.lt.s32.totalorder %s7340_s29, %s7333_s20 }
  0x28   : > { %p7337_p12 = pneg %p7336_p3  ;;  %p7343_p7 = por %p7342_p5, %p7341_p11 }
  0x2a   : > { %p7344_p8 = pnand %p7343_p7, %p7337_p12 }
  0x2c   : > { %7347 = shalt.err (!%p7344_p8)
}
  0x2d   : > { %s7451_s5 = smov 256   ;;  %s7452_s8 = smov 128  }
  0x2e   : > { %s7453_s9 = smov 8   ;;  %p180_p9 = scmp.lt.s32.totalorder %s7448_s15, 3 }
  0x2f   : > { %6790 = dma.hbm_to_vmem [thread:$0]  (!%p7545_p13), %s7543_s30, 40960, %s7549_s6, %s143_s7, %s7451_s5, %s7452_s8, %s7453_s9  }
  0x30   : > { %s5949_s10 = sshll.u32 %s7534_s25, 3  ;;  %s7587_s19 = scalar_lea.hbm %s8688_s2, %s6632_s26 }
  0x31   : > { %p8713_p11 = scmp.ge.s32.totalorder %s7448_s15, 1  ;;  %s167_s27 = scalar_lea.vmem [#allocation5], %s5949_s10 }
  0x32   : > { %s175_s28 = sshll.u32 %s167_s27, 4  ;;  %s164_s30 = scalar_lea.sflag [#allocation6], %s7534_s25  ;;  %s176_s28 = int_to_ptr.vmem [resolvable:$true] %s175_s28 }
  0x33   : > { %p7591_p12 = pnand %p8713_p11, %p180_p9  ;;  %s7348_s6 = scalar_lea.hbm %s7587_s19, 128 }
  0x34   : > { %p7349_p0 = scmp.ne.s32.totalorder %s7587_s19, %s7348_s6  ;;  %s7353_s29 = scalar_lea.hbm %s8688_s2, 256 }
  0x35   : > { %s8714_s20 = scalar_select %p7591_p12, 1, 0 }
  0x36   : > { %p7351_p4 = pnand %p7349_p0, %p7320_p2  ;;  %p7354_p1 = scmp.lt.u32.totalorder %s7587_s19, %s8688_s2 }
  0x37   : > { %p7355_p3 = scmp.lt.u32.totalorder %s7353_s29, %s7348_s6  ;;  %p7357_p7 = scmp.lt.u32.totalorder %s7348_s6, %s7587_s19 }
  0x38   : > { %p7352_p10 = pneg %p7351_p4 }
  0x39   : > { %p7356_p5 = por %p7355_p3, %p7354_p1 }
  0x3b   : > { %p7358_p8 = por %p7357_p7, %p7356_p5 }
  0x3d   : > { %p7359_p9 = pnand %p7358_p8, %p7352_p10 }
  0x3f   : > { %7362 = shalt.err (!%p7359_p9)
}
  0x40   : > { %s7363_s25 = scalar_lea.vmem %s176_s28, 128  ;;  %s7454_s9 = smov [#allocation5]  }
  0x41   : > { %p7364_p11 = scmp.ne.s32.totalorder %s176_s28, %s7363_s25  ;;  %s7368_s10 = sshll.u32 %s7454_s9, 4  ;;  %s7369_s10 = int_to_ptr.vmem [resolvable:$false] %s7368_s10 }
  0x42   : > { %s7370_s11 = scalar_lea.vmem %s7369_s10, 256  ;;  %p7371_p6 = scmp.lt.s32.totalorder %s176_s28, %s7369_s10 }
  0x43   : > { %p7366_p0 = pnand %p7364_p11, %p7320_p2  ;;  %p7372_p12 = scmp.lt.s32.totalorder %s7370_s11, %s7363_s25 }
  0x45   : > { %p7367_p4 = pneg %p7366_p0  ;;  %p7373_p1 = por %p7372_p12, %p7371_p6 }
  0x47   : > { %p7374_p3 = pnand %p7373_p1, %p7367_p4 }
  0x49   : > { %7377 = shalt.err (!%p7374_p3)
}
  0x4a   : > { %6793 = dma.hbm_to_vmem [thread:$0]  (!%p7545_p13), %s7587_s19, 128, %s176_s28, %s164_s30  }
  0x4b   : > { %p8715_p10 = scmp.ne.s32.totalorder %s8714_s20, 0 }
  0x4c   : > { %s7618_s17 = sand.u32 (!%p8715_p10), 1, %s7440_s13   ;;  %p8716_p6 = scmp.ne.s32.totalorder (!%p8715_p10), %s8709_s22, 0 }
  0x4d   : > { %184 = sbr.rel (%p8715_p10) target bundleno = 977 (0x3d1), region = 32  ;;  %s187_s6 = scalar_lea.sflag (!%p8715_p10), [#allocation3], %s7618_s17 }
  0x4e   : > { %s6780_s27 = smul.u32 (!%p8715_p10), 2560, %s7618_s17 }
  0x50   : > { %s7622_s26 = scalar_lea.vmem (!%p8715_p10), [#allocation2], %s6780_s27 }
  0x54   : > { %7423 = dma.done.wait (%p8716_p6), %s187_s6, 40960  }
  0x55   : > { %7425 = vsyncadd (%p8716_p6), %s187_s6, 4294926336  ;;  %s5953_s4 = sshll.u32 %s7618_s17, 3  ;;  %s196_s19 = scalar_lea.sflag [#allocation6], %s7618_s17 }
  0x56   : > { %s7630_s20 = scalar_lea.vmem [#allocation5], %s5953_s4 }
  0x57   : > { %7427 = dma.done.wait (%p8716_p6), %s196_s19, 128  }
  0x58   : > { %7429 = vsyncadd (%p8716_p6), %s196_s19, 4294967168  ;;  %v6838_v0 = vld [vmem:[%s7622_s26 + $0x204] ss:$8 sps:$4 sm:$0xff]   ;;  %v6840_v1 = vld [vmem:[%s7622_s26 + $0x200] ss:$8 sps:$4 sm:$0xff]   ;;  %vm1407_vm1 = vcmask 1046528  }
  0x59   : > { %799 = vmatprep.subr.bf16.mxu0 %v6838_v0  ;;  %3603 = vmatprep.subr.bf16.mxu1 %v6838_v0  ;;  %v6841_v2 = vld [vmem:[%s7622_s26 + $0x214] ss:$8 sps:$4 sm:$0xff]   ;;  %v6843_v3 = vld [vmem:[%s7622_s26 + $0x210] ss:$8 sps:$4 sm:$0xff]   ;;  %v6844_v4 = vld [vmem:[%s7622_s26 + $0x224] ss:$8 sps:$4 sm:$0xff]  }
  0x5a   : > { %800 = vmatpush1.bf16.msra.mxu0 %v6840_v1  ;;  %3604 = vmatpush1.bf16.msra.mxu1 %v6840_v1  ;;  %v6846_v5 = vld [vmem:[%s7622_s26 + $0x220] ss:$8 sps:$4 sm:$0xff]   ;;  %v6847_v6 = vld [vmem:[%s7622_s26 + $0x234] ss:$8 sps:$4 sm:$0xff]   ;;  %v6849_v7 = vld [vmem:[%s7622_s26 + $0x230] ss:$8 sps:$4 sm:$0xff]  }
  0x5b   : > { %801 = vmatprep.subr.bf16.mxu0 %v6841_v2  ;;  %3605 = vmatprep.subr.bf16.mxu1 %v6841_v2  ;;  %v6850_v8 = vld [vmem:[%s7622_s26 + $0x244] ss:$8 sps:$4 sm:$0xff]   ;;  %v6852_v9 = vld [vmem:[%s7622_s26 + $0x240] ss:$8 sps:$4 sm:$0xff]   ;;  %v6853_v10 = vld [vmem:[%s7622_s26 + $0x254] ss:$8 sps:$4 sm:$0xff]  }
  0x5c   : > { %v6855_v11 = vld [vmem:[%s7622_s26 + $0x250] ss:$8 sps:$4 sm:$0xff]   ;;  %v6856_v12 = vld [vmem:[%s7622_s26 + $0x264] ss:$8 sps:$4 sm:$0xff]   ;;  %v6858_v18 = vld [vmem:[%s7622_s26 + $0x260] ss:$8 sps:$4 sm:$0xff]  }
  0x5d   : > { %v231_v13 = vld [vmem:[%s8686_s0 + $0x8] sm:$0xff]  ;;  %v6859_v19 = vld [vmem:[%s7622_s26 + $0x274] ss:$8 sps:$4 sm:$0xff]   ;;  %v6861_v29 = vld [vmem:[%s7622_s26 + $0x270] ss:$8 sps:$4 sm:$0xff]   ;;  %vm2493_vm3 = vcmask 1045504  }
  0x5e   : > { %802 = vmatpush1.bf16.msra.mxu0 %v6843_v3  ;;  %3606 = vmatpush1.bf16.msra.mxu1 %v6843_v3  ;;  %v235_v14 = vld [vmem:[%s8686_s0 + $0x28] sm:$0xff]  ;;  %vm390_vm0 = vsmask.f32 7424  ;;  %v6865_v43 = vld [vmem:[%s7622_s26 + $0x294] ss:$8 sps:$4 sm:$0xff]   ;;  %v230_v49 = vld [vmem:[%s8686_s0] sm:$0xff] }
  0x5f   : > { %803 = vmatprep.subr.bf16.mxu0 %v6844_v4  ;;  %3607 = vmatprep.subr.bf16.mxu1 %v6844_v4  ;;  %v239_v15 = vld [vmem:[%s8686_s0 + $0x48] sm:$0xff]  ;;  %v7661_v17 = vpack.c.bf16 %v235_v14, %v231_v13  ;;  %v6867_v45 = vld [vmem:[%s7622_s26 + $0x290] ss:$8 sps:$4 sm:$0xff]   ;;  %v6871_v48 = vld [vmem:[%s7622_s26 + $0x2b4] ss:$8 sps:$4 sm:$0xff]   ;;  %s6634_s5 = sshll.u32 %s7500_s16, 8 }
  0x60   : > { %v243_v16 = vld [vmem:[%s8686_s0 + $0x68] sm:$0xff]  ;;  %v234_v50 = vld [vmem:[%s8686_s0 + $0x20] sm:$0xff]  ;;  %v6873_v51 = vld [vmem:[%s7622_s26 + $0x2b0] ss:$8 sps:$4 sm:$0xff]   ;;  %vm1934_vm2 = vsmask.f32 6400  ;;  %s8628_s9 = scalar_lea.hbm %s8689_s3, %s6634_s5 }
  0x61   : > { %v7665_v20 = vpack.c.bf16 %v243_v16, %v239_v15  ;;  %v404_v21 = vshrl.u32 %v7661_v17, 16  ;;  %v406_v22 = vshll.u32 %v7661_v17, 16  ;;  %v6278_v23 = vld [vmem:[%s8686_s0 + $0xa8] sm:$0xff]  ;;  %v238_v53 = vld [vmem:[%s8686_s0 + $0x40] sm:$0xff]  ;;  %v7731_v55 = vpack.c.bf16 %v234_v50, %v230_v49  ;;  %v6877_v60 = vld [vmem:[%s7622_s26 + $0x2d4] ss:$8 sps:$4 sm:$0xff]  }
  0x62   : > { %804 = vmatpush1.bf16.msra.mxu0 %v6846_v5  ;;  %3608 = vmatpush1.bf16.msra.mxu1 %v6846_v5  ;;  %v6282_v24 = vld [vmem:[%s8686_s0 + $0xc8] sm:$0xff]  ;;  %v6277_v54 = vld [vmem:[%s8686_s0 + $0xa0] sm:$0xff]  ;;  %v6879_v3 = vld [vmem:[%s7622_s26 + $0x2d0] ss:$8 sps:$4 sm:$0xff]   ;;  %s5835_s10 = scalar_lea.sflag [#allocation4], %s7618_s17  ;;  %p8734_p2 = scmp.ne.s32.totalorder %s8710_s23, 0 }
  0x63   : > { %805 = vmatprep.subr.bf16.mxu0 %v6847_v6  ;;  %3609 = vmatprep.subr.bf16.mxu1 %v6847_v6  ;;  %v6286_v25 = vld [vmem:[%s8686_s0 + $0xe8] sm:$0xff]  ;;  %v411_v26 = vshll.u32 %v7665_v20, 16  ;;  %v7682_v28 = vpack.c.bf16 %v6282_v24, %v6278_v23  ;;  %v408_v30 = vrot.slane %v406_v22, 1  ;;  %v6281_v56 = vld [vmem:[%s8686_s0 + $0xc0] sm:$0xff]  ;;  %v394_v62 = vshll.u32 %v7731_v55, 16  ;;  %v233_v14 = vld [vmem:[%s8686_s0 + $0x18] sm:$0xff] }
  0x64   : > { %v6290_v27 = vld [vmem:[%s8686_s0 + $0x108] sm:$0xff]  ;;  %v242_v57 = vld [vmem:[%s8686_s0 + $0x60] sm:$0xff]  ;;  %v7740_v59 = vpack.c.bf16 %v6281_v56, %v6277_v54  ;;  %v6883_v13 = vld [vmem:[%s7622_s26 + $0x2f4] ss:$8 sps:$4 sm:$0xff]   ;;  %s7455_s27 = smov [#allocation7]  }
  0x65   : > { %v7687_v31 = vpack.c.bf16 %v6290_v27, %v6286_v25  ;;  %v6862_v32 = vld [vmem:[%s7622_s26 + $0x284] ss:$8 sps:$4 sm:$0xff]   ;;  %v7692_v33 = vrot.slane %v411_v26, 1  ;;  %v3208_v34 = vshrl.u32 %v7682_v28, 16  ;;  %v3210_v35 = vshll.u32 %v7682_v28, 16  ;;  %v6280_v23 = vld [vmem:[%s8686_s0 + $0xb8] sm:$0xff] }
  0x66   : > { %806 = vmatpush1.bf16.msra.mxu0 %v6849_v7  ;;  %3610 = vmatpush1.bf16.msra.mxu1 %v6849_v7  ;;  %v409_v36 = vor.u32 %v408_v30, %v404_v21  ;;  %v6864_v41 = vld [vmem:[%s7622_s26 + $0x280] ss:$8 sps:$4 sm:$0xff]   ;;  %v6868_v46 = vld [vmem:[%s7622_s26 + $0x2a4] ss:$8 sps:$4 sm:$0xff]   ;;  %v7743_v61 = vpack.c.bf16 %v242_v57, %v238_v53  ;;  %v3198_v6 = vshll.u32 %v7740_v59, 16  ;;  %v392_v7 = vshrl.u32 %v7731_v55, 16 }
  0x67   : > { %807 = vmatprep.subr.bf16.mxu0 %v6850_v8  ;;  %3611 = vmatprep.subr.bf16.mxu1 %v6850_v8  ;;  %v3215_v37 = vshll.u32 %v7687_v31, 16  ;;  %v3212_v38 = vrot.slane %v3210_v35, 1  ;;  %v6870_v47 = vld [vmem:[%s7622_s26 + $0x2a0] ss:$8 sps:$4 sm:$0xff]   ;;  %v6874_v52 = vld [vmem:[%s7622_s26 + $0x2c4] ss:$8 sps:$4 sm:$0xff]  }
  0x68   : > { %v414_v39 = vsel %vm390_vm0, %v409_v36, %v7692_v33  ;;  %v6876_v58 = vld [vmem:[%s7622_s26 + $0x2c0] ss:$8 sps:$4 sm:$0xff]   ;;  %v6880_v4 = vld [vmem:[%s7622_s26 + $0x2e4] ss:$8 sps:$4 sm:$0xff]   ;;  %v396_v8 = vrot.slane %v394_v62, 1  ;;  %v3196_v15 = vshrl.u32 %v7740_v59, 16 }
  0x69   : > { %v7705_v40 = vrot.slane %v3215_v37, 1  ;;  %v3213_v42 = vor.u32 %v3212_v38, %v3208_v34  ;;  %831 = vmatprep.mubr.bf16.mxu0 %v414_v39  ;;  %v6285_v63 = vld [vmem:[%s8686_s0 + $0xe0] sm:$0xff]  ;;  %v247_v1 = vld [vmem:[%s8686_s0 + $0x88] sm:$0xf]  ;;  %v3200_v16 = vrot.slane %v3198_v6, 1  ;;  %v6284_v24 = vld [vmem:[%s8686_s0 + $0xd8] sm:$0xff] }
  0x6a   : > { %808 = vmatpush1.bf16.msra.mxu0 %v6852_v9  ;;  %3612 = vmatpush1.bf16.msra.mxu1 %v6852_v9  ;;  %v6289_v0 = vld [vmem:[%s8686_s0 + $0x100] sm:$0xff]  ;;  %v6294_v2 = vld [vmem:[%s8686_s0 + $0x128] sm:$0xf]  ;;  %v399_v9 = vshll.u32 %v7743_v61, 16  ;;  %v397_v25 = vor.u32 %v396_v8, %v392_v7  ;;  %v6885_v36 = vld [vmem:[%s7622_s26 + $0x2f0] ss:$8 sps:$4 sm:$0xff]  }
  0x6b   : > { %809 = vmatprep.subr.bf16.mxu0 %v6853_v10  ;;  %3613 = vmatprep.subr.bf16.mxu1 %v6853_v10  ;;  %v3218_v44 = vsel %vm390_vm0, %v3213_v42, %v7705_v40  ;;  %v7760_v5 = vpack.c.bf16 %v6289_v0, %v6285_v63  ;;  %v7767_v10 = vpack.c.bf16 %v247_v1, %v247_v1  ;;  %v246_v30 = vld [vmem:[%s8686_s0 + $0x80] sm:$0xf]  ;;  %v3251_v39 = vshrl.u32 %v7687_v31, 16  ;;  %v241_v42 = vld [vmem:[%s8686_s0 + $0x58] sm:$0xff]  ;;  %s7382_s6 = sshll.u32 %s7455_s27, 4  ;;  %s7383_s6 = int_to_ptr.vmem [resolvable:$false] %s7382_s6 }
  0x6c   : > { %3635 = vmatprep.mubr.bf16.mxu1 %v3218_v44  ;;  %v401_v27 = vrot.slane %v399_v9, 1  ;;  %v7821_v49 = vpack.c.bf16 %v246_v30, %v246_v30  ;;  %v439_v63 = vshrl.u32 %v7743_v61, 16  ;;  %s7384_s4 = scalar_lea.vmem %s7383_s6, 4096 }
  0x6d   : > { %v451_v38 = vshll.u32 %v7767_v10, 16  ;;  %v3253_v57 = vor.u32 %v3251_v39, %v7705_v40 }
  0x6e   : > { %810 = vmatpush1.bf16.msra.mxu0 %v6855_v11  ;;  %3614 = vmatpush1.bf16.msra.mxu1 %v6855_v11  ;;  %v7769_v11 = vpack.c.bf16 %v6294_v2, %v6294_v2  ;;  %v402_v53 = vsel %vm390_vm0, %v397_v25, %v401_v27  ;;  %v6886_v2 = vld [vmem:[%s7622_s26 + $0x300] ss:$8 sps:$4 sm:$0xff]   ;;  %v443_v40 = vshll.u32 %v7821_v49, 16 }
  0x6f   : > { %811 = vmatprep.subr.bf16.mxu0 %v6856_v12  ;;  %3615 = vmatprep.subr.bf16.mxu1 %v6856_v12  ;;  %v6882_v12 = vld [vmem:[%s7622_s26 + $0x2e0] ss:$8 sps:$4 sm:$0xff]   ;;  %v453_v56 = vrot.slane %v451_v38, 1 }
  0x72   : > { %812 = vmatpush1.bf16.msra.mxu0 %v6858_v18  ;;  %3616 = vmatpush1.bf16.msra.mxu1 %v6858_v18  ;;  %v3203_v18 = vshll.u32 %v7760_v5, 16 }
  0x73   : > { %813 = vmatprep.subr.bf16.mxu0 %v6859_v19  ;;  %3617 = vmatprep.subr.bf16.mxu1 %v6859_v19  ;;  %v237_v19 = vld [vmem:[%s8686_s0 + $0x38] sm:$0xff] }
  0x74   : > { %v7810_v44 = vpack.c.bf16 %v237_v19, %v233_v14 }
  0x76   : > { %814 = vmatpush1.bf16.msra.mxu0 %v6861_v29  ;;  %3618 = vmatpush1.bf16.msra.mxu1 %v6861_v29  ;;  %v447_v29 = vshrl.u32 %v7665_v20, 16  ;;  %v8698_v0 = vshll.u32 %v7810_v44, 16 }
  0x77   : > { %815 = vmatprep.subr.bf16.mxu0 %v6862_v32  ;;  %3619 = vmatprep.subr.bf16.mxu1 %v6862_v32  ;;  %v6293_v32 = vld [vmem:[%s8686_s0 + $0x120] sm:$0xf] }
  0x78   : > { %v7823_v50 = vpack.c.bf16 %v6293_v32, %v6293_v32  ;;  %v449_v54 = vor.u32 %v447_v29, %v7692_v33  ;;  %v6889_v32 = vld [vmem:[%s7622_s26 + $0x310] ss:$8 sps:$4 sm:$0xff]  }
  0x7a   : > { %816 = vmatpush1.bf16.msra.mxu0 %v6864_v41  ;;  %3620 = vmatpush1.bf16.msra.mxu1 %v6864_v41  ;;  %v3255_v41 = vshll.u32 %v7769_v11, 16  ;;  %v8702_v8 = vshll.u32 %v7823_v50, 16 }
  0x7b   : > { %817 = vmatprep.subr.bf16.mxu0 %v6865_v43  ;;  %3621 = vmatprep.subr.bf16.mxu1 %v6865_v43  ;;  %v245_v43 = vld [vmem:[%s8686_s0 + $0x78] sm:$0xff] }
  0x7e   : > { %818 = vmatpush1.bf16.msra.mxu0 %v6867_v45  ;;  %3622 = vmatpush1.bf16.msra.mxu1 %v6867_v45  ;;  %v6288_v45 = vld [vmem:[%s8686_s0 + $0xf8] sm:$0xff] }
  0x7f   : > { %819 = vmatprep.subr.bf16.mxu0 %v6868_v46  ;;  %3623 = vmatprep.subr.bf16.mxu1 %v6868_v46  ;;  %v7815_v46 = vpack.c.bf16 %v6284_v24, %v6280_v23  ;;  %v432_v23 = vrot.slane %v8698_v0, 1  ;;  %v6936_v0 = vld [vmem:[%s7622_s26 + $0x4] ss:$8 sps:$4 sm:$0xff]  }
  0x81   : > { %v8695_v33 = vshll.u32 %v7815_v46, 16  ;;  %v8696_v24 = vshrl.u32 %v7815_v46, 16 }
  0x82   : > { %820 = vmatpush1.bf16.msra.mxu0 %v6870_v47  ;;  %3624 = vmatpush1.bf16.msra.mxu1 %v6870_v47  ;;  %v3201_v47 = vor.u32 %v3200_v16, %v3196_v15  ;;  %v8700_v16 = vshrl.u32 %v7810_v44, 16 }
  0x83   : > { %821 = vmatprep.subr.bf16.mxu0 %v6871_v48  ;;  %3625 = vmatprep.subr.bf16.mxu1 %v6871_v48  ;;  %v3205_v48 = vrot.slane %v3203_v18, 1  ;;  %v3236_v25 = vrot.slane %v8695_v33, 1 }
  0x86   : > { %822 = vmatpush1.bf16.msra.mxu0 %v6873_v51  ;;  %3626 = vmatpush1.bf16.msra.mxu1 %v6873_v51  ;;  %v6292_v51 = vld [vmem:[%s8686_s0 + $0x118] sm:$0xff] }
  0x87   : > { %823 = vmatprep.subr.bf16.mxu0 %v6874_v52  ;;  %3627 = vmatprep.subr.bf16.mxu1 %v6874_v52  ;;  %v6888_v52 = vld [vmem:[%s7622_s26 + $0x304] ss:$8 sps:$4 sm:$0xff]   ;;  %v7844_v1 = vpack.c.bf16 %v6292_v51, %v6288_v45  ;;  %v3249_v45 = vrot.slane %v8702_v8, 1  ;;  %v433_v51 = vor.u32 %v432_v23, %v8700_v16  ;;  %v6901_v23 = vld [vmem:[%s7622_s26 + $0x350] ss:$8 sps:$4 sm:$0xff]  }
  0x89   : > { %v8692_v30 = vshll.u32 %v7844_v1, 16  ;;  %v8708_v33 = vshrl.u32 %v7844_v1, 16 }
  0x8a   : > { %824 = vmatpush1.bf16.msra.mxu0 %v6876_v58  ;;  %3628 = vmatpush1.bf16.msra.mxu1 %v6876_v58  ;;  %v3257_v58 = vrot.slane %v3255_v41, 1 }
  0x8b   : > { %825 = vmatprep.subr.bf16.mxu0 %v6877_v60  ;;  %3629 = vmatprep.subr.bf16.mxu1 %v6877_v60  ;;  %v7840_v60 = vpack.c.bf16 %v245_v43, %v241_v42  ;;  %v445_v42 = vrot.slane %v443_v40, 1 }
  0x8c   : > { %v3258_v14 = vsel %vm390_vm0, %v3253_v57, %v3257_v58  ;;  %v6897_v57 = vld [vmem:[%s7622_s26 + $0x334] ss:$8 sps:$4 sm:$0xff]  }
  0x8d   : > { %v8697_v19 = vshll.u32 %v7840_v60, 16 }
  0x8e   : > { %826 = vmatpush1.bf16.msra.mxu0 %v6879_v3  ;;  %3630 = vmatpush1.bf16.msra.mxu1 %v6879_v3  ;;  %v3206_v3 = vsel %vm390_vm0, %v3201_v47, %v3205_v48  ;;  %v6894_v47 = vld [vmem:[%s7622_s26 + $0x324] ss:$8 sps:$4 sm:$0xff]  }
  0x8f   : > { %827 = vmatprep.subr.bf16.mxu0 %v6880_v4  ;;  %3631 = vmatprep.subr.bf16.mxu1 %v6880_v4  ;;  %v3243_v4 = vshrl.u32 %v7760_v5, 16 }
  0x91   : > { %v3245_v43 = vor.u32 %v3243_v4, %v3205_v48  ;;  %v7883_v48 = vrot.slane %v8692_v30, 1  ;;  %v248_v30 = vld [vmem:[%s8686_s0 + $0x90] sm:$0xf] }
  0x92   : > { %828 = vmatpush1.bf16.msra.mxu0 %v6882_v12  ;;  %3632 = vmatpush1.bf16.msra.mxu1 %v6882_v12  ;;  %v6891_v12 = vld [vmem:[%s7622_s26 + $0x314] ss:$8 sps:$4 sm:$0xff]   ;;  %v7989_v16 = vpack.c.bf16 %v248_v30, %v248_v30 }
  0x93   : > { %829 = vmatprep.subr.bf16.mxu0 %v6883_v13  ;;  %3633 = vmatprep.subr.bf16.mxu1 %v6883_v13  ;;  %v454_v13 = vsel %vm390_vm0, %v449_v54, %v453_v56  ;;  %v3250_v56 = vsel %vm390_vm0, %v3245_v43, %v3249_v45  ;;  %v6912_v43 = vld [vmem:[%s7622_s26 + $0x384] ss:$8 sps:$4 sm:$0xff]   ;;  %v6910_v45 = vld [vmem:[%s7622_s26 + $0x380] ss:$8 sps:$4 sm:$0xff]   ;;  %v3269_v30 = vor.u32 %v8708_v33, %v7883_v48 }
  0x96   : > { %830 = vmatpush1.bf16.msra.mxu0 %v6885_v36  ;;  %3634 = vmatpush1.bf16.msra.mxu1 %v6885_v36  ;;  %v441_v36 = vor.u32 %v439_v63, %v401_v27  ;;  %v7877_v27 = vrot.slane %v8697_v19, 1  ;;  %v6931_v19 = vld [vmem:[%s7622_s26 + $0x3f0] ss:$8 sps:$4 sm:$0xff]  }
  0x97   : > { %852 = vmatprep.subr.bf16.mxu0 %v6888_v52  ;;  %3656 = vmatprep.subr.bf16.mxu1 %v6888_v52  ;;  %v3237_v52 = vor.u32 %v3236_v25, %v8696_v24  ;;  %v6906_v25 = vld [vmem:[%s7622_s26 + $0x364] ss:$8 sps:$4 sm:$0xff]  }
  0x98   : > { %v446_v54 = vsel %vm390_vm0, %v441_v36, %v445_v42  ;;  %v438_v58 = vsel %vm390_vm0, %v433_v51, %v7877_v27  ;;  %v6909_v36 = vld [vmem:[%s7622_s26 + $0x374] ss:$8 sps:$4 sm:$0xff]   ;;  %v6907_v42 = vld [vmem:[%s7622_s26 + $0x370] ss:$8 sps:$4 sm:$0xff]  }
  0x99   : > { %832 = vmatmul.mubr.bf16.vlgmr.msra.gmra.mrb[0].mxu0 %v402_v53  ;;  %3636 = vmatmul.mubr.bf16.vlgmr.msra.gmra.mrb[0].mxu1 %v3206_v3  ;;  %v6892_v53 = vld [vmem:[%s7622_s26 + $0x320] ss:$8 sps:$4 sm:$0xff]   ;;  %v6895_v3 = vld [vmem:[%s7622_s26 + $0x330] ss:$8 sps:$4 sm:$0xff]  }
  0x9a   : > { %853 = vmatpush1.bf16.msra.mxu0 %v6886_v2  ;;  %3657 = vmatpush1.bf16.msra.mxu1 %v6886_v2  ;;  %v3242_v2 = vsel %vm390_vm0, %v3237_v52, %v7883_v48  ;;  %v6913_v51 = vld [vmem:[%s7622_s26 + $0x390] ss:$8 sps:$4 sm:$0xff]   ;;  %v6918_v52 = vld [vmem:[%s7622_s26 + $0x3a4] ss:$8 sps:$4 sm:$0xff]  }
  0x9b   : > { %854 = vmatprep.subr.bf16.mxu0 %v6891_v12  ;;  %3658 = vmatprep.subr.bf16.mxu1 %v6891_v12  ;;  %v6900_v12 = vld [vmem:[%s7622_s26 + $0x344] ss:$8 sps:$4 sm:$0xff]  }
  0x9c   : > { %841 = vmatprep.mubr.bf16.mxu0 %v454_v13  ;;  %3645 = vmatprep.mubr.bf16.mxu1 %v3258_v14  ;;  %v6898_v13 = vld [vmem:[%s7622_s26 + $0x340] ss:$8 sps:$4 sm:$0xff]   ;;  %v6903_v14 = vld [vmem:[%s7622_s26 + $0x354] ss:$8 sps:$4 sm:$0xff]  }
  0x9e   : > { %855 = vmatpush1.bf16.msra.mxu0 %v6889_v32  ;;  %3659 = vmatpush1.bf16.msra.mxu1 %v6889_v32  ;;  %v6904_v32 = vld [vmem:[%s7622_s26 + $0x360] ss:$8 sps:$4 sm:$0xff]  }
  0x9f   : > { %856 = vmatprep.subr.bf16.mxu0 %v6894_v47  ;;  %3660 = vmatprep.subr.bf16.mxu1 %v6894_v47  ;;  %v6915_v47 = vld [vmem:[%s7622_s26 + $0x394] ss:$8 sps:$4 sm:$0xff]  }
  0xa1   : > { %842 = vmatmul.mubr.bf16.gmra.mrb[4].mxu0 %v446_v54  ;;  %3646 = vmatmul.mubr.bf16.gmra.mrb[4].mxu1 %v3250_v56  ;;  %v6921_v54 = vld [vmem:[%s7622_s26 + $0x3b4] ss:$8 sps:$4 sm:$0xff]   ;;  %v6919_v56 = vld [vmem:[%s7622_s26 + $0x3b0] ss:$8 sps:$4 sm:$0xff]  }
  0xa2   : > { %857 = vmatpush1.bf16.msra.mxu0 %v6892_v53  ;;  %3661 = vmatpush1.bf16.msra.mxu1 %v6892_v53  ;;  %v6916_v53 = vld [vmem:[%s7622_s26 + $0x3a0] ss:$8 sps:$4 sm:$0xff]  }
  0xa3   : > { %858 = vmatprep.subr.bf16.mxu0 %v6897_v57  ;;  %3662 = vmatprep.subr.bf16.mxu1 %v6897_v57  ;;  %v232_v57 = vld [vmem:[%s8686_s0 + $0x10] sm:$0xff] }
  0xa4   : > { %884 = vmatprep.mubr.bf16.mxu0 %v438_v58  ;;  %3688 = vmatprep.mubr.bf16.mxu1 %v3242_v2  ;;  %v236_v58 = vld [vmem:[%s8686_s0 + $0x30] sm:$0xff]  ;;  %v6924_v2 = vld [vmem:[%s7622_s26 + $0x3c4] ss:$8 sps:$4 sm:$0xff]  }
  0xa6   : > { %859 = vmatpush1.bf16.msra.mxu0 %v6895_v3  ;;  %3663 = vmatpush1.bf16.msra.mxu1 %v6895_v3  ;;  %v6279_v3 = vld [vmem:[%s8686_s0 + $0xb0] sm:$0xff] }
  0xa7   : > { %860 = vmatprep.subr.bf16.mxu0 %v6900_v12  ;;  %3664 = vmatprep.subr.bf16.mxu1 %v6900_v12  ;;  %v6283_v12 = vld [vmem:[%s8686_s0 + $0xd0] sm:$0xff] }
  0xaa   : > { %861 = vmatpush1.bf16.msra.mxu0 %v6898_v13  ;;  %3665 = vmatpush1.bf16.msra.mxu1 %v6898_v13  ;;  %v240_v13 = vld [vmem:[%s8686_s0 + $0x50] sm:$0xff] }
  0xab   : > { %862 = vmatprep.subr.bf16.mxu0 %v6903_v14  ;;  %3666 = vmatprep.subr.bf16.mxu1 %v6903_v14  ;;  %v244_v14 = vld [vmem:[%s8686_s0 + $0x70] sm:$0xff] }
  0xae   : > { %863 = vmatpush1.bf16.msra.mxu0 %v6901_v23  ;;  %3667 = vmatpush1.bf16.msra.mxu1 %v6901_v23  ;;  %v6922_v23 = vld [vmem:[%s7622_s26 + $0x3c0] ss:$8 sps:$4 sm:$0xff]  }
  0xaf   : > { %864 = vmatprep.subr.bf16.mxu0 %v6906_v25  ;;  %3668 = vmatprep.subr.bf16.mxu1 %v6906_v25  ;;  %v6927_v25 = vld [vmem:[%s7622_s26 + $0x3d4] ss:$8 sps:$4 sm:$0xff]  }
  0xb2   : > { %865 = vmatpush1.bf16.msra.mxu0 %v6904_v32  ;;  %3669 = vmatpush1.bf16.msra.mxu1 %v6904_v32  ;;  %v7931_v32 = vpack.c.bf16 %v236_v58, %v232_v57  ;;  %v6296_v57 = vld [vmem:[%s8686_s0 + $0x138] sm:$0xf]  ;;  %v6928_v58 = vld [vmem:[%s7622_s26 + $0x3e0] ss:$8 sps:$4 sm:$0xff]  }
  0xb3   : > { %866 = vmatprep.subr.bf16.mxu0 %v6909_v36  ;;  %3670 = vmatprep.subr.bf16.mxu1 %v6909_v36  ;;  %v6287_v36 = vld [vmem:[%s8686_s0 + $0xf0] sm:$0xff] }
  0xb6   : > { %867 = vmatpush1.bf16.msra.mxu0 %v6907_v42  ;;  %3671 = vmatpush1.bf16.msra.mxu1 %v6907_v42  ;;  %v6291_v42 = vld [vmem:[%s8686_s0 + $0x110] sm:$0xff] }
  0xb7   : > { %868 = vmatprep.subr.bf16.mxu0 %v6912_v43  ;;  %3672 = vmatprep.subr.bf16.mxu1 %v6912_v43  ;;  %v7939_v43 = vpack.c.bf16 %v6283_v12, %v6279_v3 }
  0xb9   : > { %v8703_v12 = vshrl.u32 %v7939_v43, 16 }
  0xba   : > { %869 = vmatpush1.bf16.msra.mxu0 %v6910_v45  ;;  %3673 = vmatpush1.bf16.msra.mxu1 %v6910_v45  ;;  %v6925_v45 = vld [vmem:[%s7622_s26 + $0x3d0] ss:$8 sps:$4 sm:$0xff]  }
  0xbb   : > { %870 = vmatprep.subr.bf16.mxu0 %v6915_v47  ;;  %3674 = vmatprep.subr.bf16.mxu1 %v6915_v47  ;;  %v7942_v47 = vpack.c.bf16 %v244_v14, %v240_v13  ;;  %v6933_v13 = vld [vmem:[%s7622_s26 + $0x3f4] ss:$8 sps:$4 sm:$0xff]  }
  0xbd   : > { %v8699_v3 = vshll.u32 %v7942_v47, 16  ;;  %v455_v8 = vshrl.u32 %v7942_v47, 16 }
  0xbe   : > { %871 = vmatpush1.bf16.msra.mxu0 %v6913_v51  ;;  %3675 = vmatpush1.bf16.msra.mxu1 %v6913_v51  ;;  %v6930_v51 = vld [vmem:[%s7622_s26 + $0x3e4] ss:$8 sps:$4 sm:$0xff]  }
  0xbf   : > { %872 = vmatprep.subr.bf16.mxu0 %v6918_v52  ;;  %3676 = vmatprep.subr.bf16.mxu1 %v6918_v52  ;;  %v8693_v52 = vshll.u32 %v7931_v32, 16 }
  0xc1   : > { %v420_v14 = vrot.slane %v8693_v52, 1  ;;  %v6295_v52 = vld [vmem:[%s8686_s0 + $0x130] sm:$0xf] }
  0xc2   : > { %873 = vmatpush1.bf16.msra.mxu0 %v6916_v53  ;;  %3677 = vmatpush1.bf16.msra.mxu1 %v6916_v53  ;;  %v7946_v53 = vpack.c.bf16 %v6291_v42, %v6287_v36  ;;  %v7965_v42 = vpack.c.bf16 %v6296_v57, %v6296_v57  ;;  %v8705_v57 = vshrl.u32 %v7840_v60, 16 }
  0xc3   : > { %874 = vmatprep.subr.bf16.mxu0 %v6921_v54  ;;  %3678 = vmatprep.subr.bf16.mxu1 %v6921_v54  ;;  %v8694_v54 = vshll.u32 %v7939_v43, 16 }
  0xc4   : > { %v8707_v24 = vshll.u32 %v7965_v42, 16 }
  0xc6   : > { %875 = vmatpush1.bf16.msra.mxu0 %v6919_v56  ;;  %3679 = vmatpush1.bf16.msra.mxu1 %v6919_v56  ;;  %v249_v56 = vld [vmem:[%s8686_s0 + $0x98] sm:$0xf] }
  0xc7   : > { %876 = vmatprep.subr.bf16.mxu0 %v6924_v2  ;;  %3680 = vmatprep.subr.bf16.mxu1 %v6924_v2  ;;  %v8701_v2 = vshrl.u32 %v7931_v32, 16  ;;  %v7963_v36 = vpack.c.bf16 %v249_v56, %v249_v56  ;;  %v425_v56 = vrot.slane %v8699_v3, 1 }
  0xca   : > { %877 = vmatpush1.bf16.msra.mxu0 %v6922_v23  ;;  %3681 = vmatpush1.bf16.msra.mxu1 %v6922_v23  ;;  %v8704_v23 = vshll.u32 %v7946_v53, 16 }
  0xcb   : > { %878 = vmatprep.subr.bf16.mxu0 %v6927_v25  ;;  %3682 = vmatprep.subr.bf16.mxu1 %v6927_v25  ;;  %v3224_v25 = vrot.slane %v8694_v54, 1  ;;  %v8706_v54 = vshll.u32 %v7963_v36, 16 }
  0xcc   : > { %v3229_v3 = vrot.slane %v8704_v23, 1  ;;  %v459_v23 = vshll.u32 %v7989_v16, 16 }
  0xce   : > { %879 = vmatpush1.bf16.msra.mxu0 %v6925_v45  ;;  %3683 = vmatpush1.bf16.msra.mxu1 %v6925_v45  ;;  %v421_v45 = vor.u32 %v420_v14, %v8701_v2  ;;  %v7991_v14 = vpack.c.bf16 %v6295_v52, %v6295_v52  ;;  %v6934_v2 = vld [vmem:[%s7622_s26] ss:$8 sps:$4 sm:$0xff]   ;;  %v3273_v52 = vrot.slane %v8707_v24, 1  ;;  %v457_v24 = vor.u32 %v455_v8, %v425_v56 }
  0xcf   : > { %880 = vmatprep.subr.bf16.mxu0 %v6930_v51  ;;  %3684 = vmatprep.subr.bf16.mxu1 %v6930_v51  ;;  %v3225_v51 = vor.u32 %v3224_v25, %v8703_v12  ;;  %v469_v12 = vrot.slane %v8706_v54, 1  ;;  %v6937_v54 = vld [vmem:[%s7622_s26 + $0x10] ss:$8 sps:$4 sm:$0xff]   ;;  %v461_v33 = vrot.slane %v459_v23, 1 }
  0xd0   : > { %v426_v25 = vsel %vm390_vm0, %v421_v45, %v425_v56  ;;  %v3259_v45 = vshrl.u32 %v7946_v53, 16 }
  0xd1   : > { %v462_v56 = vsel %vm390_vm0, %v457_v24, %v461_v33  ;;  %v6946_v33 = vld [vmem:[%s7622_s26 + $0x40] ss:$8 sps:$4 sm:$0xff]   ;;  %v6951_v24 = vld [vmem:[%s7622_s26 + $0x54] ss:$8 sps:$4 sm:$0xff]  }
  0xd2   : > { %881 = vmatpush1.bf16.msra.mxu0 %v6928_v58  ;;  %3685 = vmatpush1.bf16.msra.mxu1 %v6928_v58  ;;  %v465_v58 = vor.u32 %v8705_v57, %v7877_v27  ;;  %v6939_v27 = vld [vmem:[%s7622_s26 + $0x14] ss:$8 sps:$4 sm:$0xff]   ;;  %v3263_v57 = vshll.u32 %v7991_v14, 16 }
  0xd3   : > { %882 = vmatprep.subr.bf16.mxu0 %v6933_v13  ;;  %3686 = vmatprep.subr.bf16.mxu1 %v6933_v13  ;;  %v3230_v13 = vsel %vm390_vm0, %v3225_v51, %v3229_v3  ;;  %v6942_v51 = vld [vmem:[%s7622_s26 + $0x24] ss:$8 sps:$4 sm:$0xff]  }
  0xd4   : > { %v470_v48 = vsel %vm390_vm0, %v465_v58, %v469_v12  ;;  %v6945_v12 = vld [vmem:[%s7622_s26 + $0x34] ss:$8 sps:$4 sm:$0xff]  }
  0xd6   : > { %883 = vmatpush1.bf16.msra.mxu0 %v6931_v19  ;;  %3687 = vmatpush1.bf16.msra.mxu1 %v6931_v19  ;;  %v3274_v19 = vsel %vm390_vm0, %v3269_v30, %v3273_v52  ;;  %v6948_v30 = vld [vmem:[%s7622_s26 + $0x44] ss:$8 sps:$4 sm:$0xff]  }
  0xd7   : > { %1225 = vmatprep.subr.bf16.mxu0 %v6936_v0  ;;  %4029 = vmatprep.subr.bf16.mxu1 %v6936_v0  ;;  %v3261_v0 = vor.u32 %v3259_v45, %v3229_v3  ;;  %v6943_v3 = vld [vmem:[%s7622_s26 + $0x30] ss:$8 sps:$4 sm:$0xff]   ;;  %v6954_v52 = vld [vmem:[%s7622_s26 + $0x64] ss:$8 sps:$4 sm:$0xff]  }
  0xd9   : > { %885 = vmatmul.mubr.bf16.vlgmr.msra.gmra.mrb[0].mxu0 %v426_v25  ;;  %3689 = vmatmul.mubr.bf16.vlgmr.msra.gmra.mrb[0].mxu1 %v3230_v13  ;;  %v3265_v25 = vrot.slane %v3263_v57, 1  ;;  %v6952_v13 = vld [vmem:[%s7622_s26 + $0x60] ss:$8 sps:$4 sm:$0xff]  }
  0xda   : > { %1226 = vmatpush1.bf16.msra.mxu0 %v6934_v2  ;;  %4030 = vmatpush1.bf16.msra.mxu1 %v6934_v2  ;;  %v6940_v2 = vld [vmem:[%s7622_s26 + $0x20] ss:$8 sps:$4 sm:$0xff]  }
  0xdb   : > { %1227 = vmatprep.subr.bf16.mxu0 %v6939_v27  ;;  %4031 = vmatprep.subr.bf16.mxu1 %v6939_v27  ;;  %v3266_v58 = vsel %vm390_vm0, %v3261_v0, %v3265_v25  ;;  %v6957_v27 = vld [vmem:[%s7622_s26 + $0x74] ss:$8 sps:$4 sm:$0xff]   ;;  %v6961_v25 = vld [vmem:[%s7622_s26 + $0x90] ss:$8 sps:$4 sm:$0xff]  }
  0xdc   : > { %894 = vmatprep.mubr.bf16.mxu0 %v470_v48  ;;  %3698 = vmatprep.mubr.bf16.mxu1 %v3274_v19  ;;  %v6955_v48 = vld [vmem:[%s7622_s26 + $0x70] ss:$8 sps:$4 sm:$0xff]   ;;  %v6960_v19 = vld [vmem:[%s7622_s26 + $0x84] ss:$8 sps:$4 sm:$0xff]   ;;  %v6963_v0 = vld [vmem:[%s7622_s26 + $0x94] ss:$8 sps:$4 sm:$0xff]  }
  0xde   : > { %1228 = vmatpush1.bf16.msra.mxu0 %v6937_v54  ;;  %4032 = vmatpush1.bf16.msra.mxu1 %v6937_v54  ;;  %v6949_v54 = vld [vmem:[%s7622_s26 + $0x50] ss:$8 sps:$4 sm:$0xff]  }
  0xdf   : > { %1229 = vmatprep.subr.bf16.mxu0 %v6942_v51  ;;  %4033 = vmatprep.subr.bf16.mxu1 %v6942_v51  ;;  %v6958_v51 = vld [vmem:[%s7622_s26 + $0x80] ss:$8 sps:$4 sm:$0xff]  }
  0xe1   : > { %895 = vmatmul.mubr.bf16.gmra.mrb[4].mxu0 %v462_v56  ;;  %3699 = vmatmul.mubr.bf16.gmra.mrb[4].mxu1 %v3266_v58  ;;  %v6969_v56 = vld [vmem:[%s7622_s26 + $0xb4] ss:$8 sps:$4 sm:$0xff]   ;;  %v6967_v58 = vld [vmem:[%s7622_s26 + $0xb0] ss:$8 sps:$4 sm:$0xff]  }
  0xe2   : > { %1230 = vmatpush1.bf16.msra.mxu0 %v6940_v2  ;;  %4034 = vmatpush1.bf16.msra.mxu1 %v6940_v2  ;;  %v6966_v2 = vld [vmem:[%s7622_s26 + $0xa4] ss:$8 sps:$4 sm:$0xff]  }
  0xe3   : > { %1231 = vmatprep.subr.bf16.mxu0 %v6945_v12  ;;  %4035 = vmatprep.subr.bf16.mxu1 %v6945_v12  ;;  %v6964_v12 = vld [vmem:[%s7622_s26 + $0xa0] ss:$8 sps:$4 sm:$0xff]  }
  0xe4   : > { %1257 = vmatprep.mubr.bf16.mxu0 %v7661_v17  ;;  %4061 = vmatprep.mubr.bf16.mxu1 %v7682_v28 }
  0xe6   : > { %1232 = vmatpush1.bf16.msra.mxu0 %v6943_v3  ;;  %4036 = vmatpush1.bf16.msra.mxu1 %v6943_v3  ;;  %v6972_v3 = vld [vmem:[%s7622_s26 + $0xc4] ss:$8 sps:$4 sm:$0xff]  }
  0xe7   : > { %1233 = vmatprep.subr.bf16.mxu0 %v6948_v30  ;;  %4037 = vmatprep.subr.bf16.mxu1 %v6948_v30  ;;  %v6970_v30 = vld [vmem:[%s7622_s26 + $0xc0] ss:$8 sps:$4 sm:$0xff]  }
  0xea   : > { %1234 = vmatpush1.bf16.msra.mxu0 %v6946_v33  ;;  %4038 = vmatpush1.bf16.msra.mxu1 %v6946_v33  ;;  %v6975_v33 = vld [vmem:[%s7622_s26 + $0xd4] ss:$8 sps:$4 sm:$0xff]  }
  0xeb   : > { %1235 = vmatprep.subr.bf16.mxu0 %v6951_v24  ;;  %4039 = vmatprep.subr.bf16.mxu1 %v6951_v24  ;;  %v6973_v24 = vld [vmem:[%s7622_s26 + $0xd0] ss:$8 sps:$4 sm:$0xff]  }
  0xee   : > { %1236 = vmatpush1.bf16.msra.mxu0 %v6949_v54  ;;  %4040 = vmatpush1.bf16.msra.mxu1 %v6949_v54  ;;  %v6978_v54 = vld [vmem:[%s7622_s26 + $0xe4] ss:$8 sps:$4 sm:$0xff]  }
  0xef   : > { %1237 = vmatprep.subr.bf16.mxu0 %v6954_v52  ;;  %4041 = vmatprep.subr.bf16.mxu1 %v6954_v52  ;;  %v6976_v52 = vld [vmem:[%s7622_s26 + $0xe0] ss:$8 sps:$4 sm:$0xff]  }
  0xf2   : > { %1238 = vmatpush1.bf16.msra.mxu0 %v6952_v13  ;;  %4042 = vmatpush1.bf16.msra.mxu1 %v6952_v13  ;;  %v6981_v13 = vld [vmem:[%s7622_s26 + $0xf4] ss:$8 sps:$4 sm:$0xff]  }
  0xf3   : > { %1239 = vmatprep.subr.bf16.mxu0 %v6957_v27  ;;  %4043 = vmatprep.subr.bf16.mxu1 %v6957_v27  ;;  %v6979_v27 = vld [vmem:[%s7622_s26 + $0xf0] ss:$8 sps:$4 sm:$0xff]  }
  0xf6   : > { %1240 = vmatpush1.bf16.msra.mxu0 %v6955_v48  ;;  %4044 = vmatpush1.bf16.msra.mxu1 %v6955_v48  ;;  %v6984_v48 = vld [vmem:[%s7622_s26 + $0x104] ss:$8 sps:$4 sm:$0xff]  }
  0xf7   : > { %1241 = vmatprep.subr.bf16.mxu0 %v6960_v19  ;;  %4045 = vmatprep.subr.bf16.mxu1 %v6960_v19  ;;  %v6982_v19 = vld [vmem:[%s7622_s26 + $0x100] ss:$8 sps:$4 sm:$0xff]  }
  0xfa   : > { %1242 = vmatpush1.bf16.msra.mxu0 %v6958_v51  ;;  %4046 = vmatpush1.bf16.msra.mxu1 %v6958_v51  ;;  %v6987_v51 = vld [vmem:[%s7622_s26 + $0x114] ss:$8 sps:$4 sm:$0xff]  }
  0xfb   : > { %1243 = vmatprep.subr.bf16.mxu0 %v6963_v0  ;;  %4047 = vmatprep.subr.bf16.mxu1 %v6963_v0  ;;  %v6985_v0 = vld [vmem:[%s7622_s26 + $0x110] ss:$8 sps:$4 sm:$0xff]  }
  0xfe   : > { %1244 = vmatpush1.bf16.msra.mxu0 %v6961_v25  ;;  %4048 = vmatpush1.bf16.msra.mxu1 %v6961_v25  ;;  %v6990_v25 = vld [vmem:[%s7622_s26 + $0x124] ss:$8 sps:$4 sm:$0xff]  }
  0xff   : > { %1245 = vmatprep.subr.bf16.mxu0 %v6966_v2  ;;  %4049 = vmatprep.subr.bf16.mxu1 %v6966_v2  ;;  %v6988_v2 = vld [vmem:[%s7622_s26 + $0x120] ss:$8 sps:$4 sm:$0xff]  }
 0x102   : > { %1246 = vmatpush1.bf16.msra.mxu0 %v6964_v12  ;;  %4050 = vmatpush1.bf16.msra.mxu1 %v6964_v12  ;;  %v6993_v12 = vld [vmem:[%s7622_s26 + $0x134] ss:$8 sps:$4 sm:$0xff]  }
 0x103   : > { %1247 = vmatprep.subr.bf16.mxu0 %v6969_v56  ;;  %4051 = vmatprep.subr.bf16.mxu1 %v6969_v56  ;;  %v6991_v56 = vld [vmem:[%s7622_s26 + $0x130] ss:$8 sps:$4 sm:$0xff]  }
 0x106   : > { %1248 = vmatpush1.bf16.msra.mxu0 %v6967_v58  ;;  %4052 = vmatpush1.bf16.msra.mxu1 %v6967_v58  ;;  %v6996_v58 = vld [vmem:[%s7622_s26 + $0x144] ss:$8 sps:$4 sm:$0xff]  }
 0x107   : > { %1249 = vmatprep.subr.bf16.mxu0 %v6972_v3  ;;  %4053 = vmatprep.subr.bf16.mxu1 %v6972_v3  ;;  %v6994_v3 = vld [vmem:[%s7622_s26 + $0x140] ss:$8 sps:$4 sm:$0xff]  }
 0x10a   : > { %1250 = vmatpush1.bf16.msra.mxu0 %v6970_v30  ;;  %4054 = vmatpush1.bf16.msra.mxu1 %v6970_v30  ;;  %v6999_v30 = vld [vmem:[%s7622_s26 + $0x154] ss:$8 sps:$4 sm:$0xff]  }
 0x10b   : > { %1251 = vmatprep.subr.bf16.mxu0 %v6975_v33  ;;  %4055 = vmatprep.subr.bf16.mxu1 %v6975_v33  ;;  %v6997_v33 = vld [vmem:[%s7622_s26 + $0x150] ss:$8 sps:$4 sm:$0xff]  }
 0x10e   : > { %1252 = vmatpush1.bf16.msra.mxu0 %v6973_v24  ;;  %4056 = vmatpush1.bf16.msra.mxu1 %v6973_v24  ;;  %v7002_v24 = vld [vmem:[%s7622_s26 + $0x164] ss:$8 sps:$4 sm:$0xff]  }
 0x10f   : > { %1253 = vmatprep.subr.bf16.mxu0 %v6978_v54  ;;  %4057 = vmatprep.subr.bf16.mxu1 %v6978_v54  ;;  %v7000_v54 = vld [vmem:[%s7622_s26 + $0x160] ss:$8 sps:$4 sm:$0xff]  }
 0x112   : > { %1254 = vmatpush1.bf16.msra.mxu0 %v6976_v52  ;;  %4058 = vmatpush1.bf16.msra.mxu1 %v6976_v52  ;;  %v7005_v52 = vld [vmem:[%s7622_s26 + $0x174] ss:$8 sps:$4 sm:$0xff]  }
 0x113   : > { %1255 = vmatprep.subr.bf16.mxu0 %v6981_v13  ;;  %4059 = vmatprep.subr.bf16.mxu1 %v6981_v13  ;;  %v7003_v13 = vld [vmem:[%s7622_s26 + $0x170] ss:$8 sps:$4 sm:$0xff]  }
 0x116   : > { %1256 = vmatpush1.bf16.msra.mxu0 %v6979_v27  ;;  %4060 = vmatpush1.bf16.msra.mxu1 %v6979_v27  ;;  %v7008_v27 = vld [vmem:[%s7622_s26 + $0x184] ss:$8 sps:$4 sm:$0xff]  }
 0x117   : > { %1278 = vmatprep.subr.bf16.mxu0 %v6984_v48  ;;  %4082 = vmatprep.subr.bf16.mxu1 %v6984_v48  ;;  %v7006_v48 = vld [vmem:[%s7622_s26 + $0x180] ss:$8 sps:$4 sm:$0xff]  }
 0x119   : > { %1258 = vmatmul.mubr.bf16.vlgmr.msra.gmra.mrb[0].mxu0 %v7731_v55  ;;  %4062 = vmatmul.mubr.bf16.vlgmr.msra.gmra.mrb[0].mxu1 %v7740_v59 }
 0x11a   : > { %1279 = vmatpush1.bf16.msra.mxu0 %v6982_v19  ;;  %4083 = vmatpush1.bf16.msra.mxu1 %v6982_v19  ;;  %v7011_v19 = vld [vmem:[%s7622_s26 + $0x194] ss:$8 sps:$4 sm:$0xff]  }
 0x11b   : > { %1280 = vmatprep.subr.bf16.mxu0 %v6987_v51  ;;  %4084 = vmatprep.subr.bf16.mxu1 %v6987_v51  ;;  %v7009_v51 = vld [vmem:[%s7622_s26 + $0x190] ss:$8 sps:$4 sm:$0xff]  }
 0x11c   : > { %1267 = vmatprep.mubr.bf16.mxu0 %v7665_v20  ;;  %4071 = vmatprep.mubr.bf16.mxu1 %v7687_v31 }
 0x11e   : > { %1281 = vmatpush1.bf16.msra.mxu0 %v6985_v0  ;;  %4085 = vmatpush1.bf16.msra.mxu1 %v6985_v0  ;;  %v7014_v0 = vld [vmem:[%s7622_s26 + $0x1a4] ss:$8 sps:$4 sm:$0xff]  }
 0x11f   : > { %1282 = vmatprep.subr.bf16.mxu0 %v6990_v25  ;;  %4086 = vmatprep.subr.bf16.mxu1 %v6990_v25  ;;  %v7012_v25 = vld [vmem:[%s7622_s26 + $0x1a0] ss:$8 sps:$4 sm:$0xff]  }
 0x121   : > { %1268 = vmatmul.mubr.bf16.gmra.mrb[4].mxu0 %v7743_v61  ;;  %4072 = vmatmul.mubr.bf16.gmra.mrb[4].mxu1 %v7760_v5 }
 0x122   : > { %1283 = vmatpush1.bf16.msra.mxu0 %v6988_v2  ;;  %4087 = vmatpush1.bf16.msra.mxu1 %v6988_v2  ;;  %v7017_v2 = vld [vmem:[%s7622_s26 + $0x1b4] ss:$8 sps:$4 sm:$0xff]  }
 0x123   : > { %1284 = vmatprep.subr.bf16.mxu0 %v6993_v12  ;;  %4088 = vmatprep.subr.bf16.mxu1 %v6993_v12  ;;  %v7015_v12 = vld [vmem:[%s7622_s26 + $0x1b0] ss:$8 sps:$4 sm:$0xff]  }
 0x124   : > { %1310 = vmatprep.mubr.bf16.mxu0 %v7810_v44  ;;  %4114 = vmatprep.mubr.bf16.mxu1 %v7815_v46 }
 0x126   : > { %1285 = vmatpush1.bf16.msra.mxu0 %v6991_v56  ;;  %4089 = vmatpush1.bf16.msra.mxu1 %v6991_v56  ;;  %v7020_v56 = vld [vmem:[%s7622_s26 + $0x1c4] ss:$8 sps:$4 sm:$0xff]  }
 0x127   : > { %1286 = vmatprep.subr.bf16.mxu0 %v6996_v58  ;;  %4090 = vmatprep.subr.bf16.mxu1 %v6996_v58  ;;  %v7018_v58 = vld [vmem:[%s7622_s26 + $0x1c0] ss:$8 sps:$4 sm:$0xff]  }
 0x12a   : > { %1287 = vmatpush1.bf16.msra.mxu0 %v6994_v3  ;;  %4091 = vmatpush1.bf16.msra.mxu1 %v6994_v3  ;;  %v7023_v3 = vld [vmem:[%s7622_s26 + $0x1d4] ss:$8 sps:$4 sm:$0xff]  }
 0x12b   : > { %1288 = vmatprep.subr.bf16.mxu0 %v6999_v30  ;;  %4092 = vmatprep.subr.bf16.mxu1 %v6999_v30  ;;  %v7021_v30 = vld [vmem:[%s7622_s26 + $0x1d0] ss:$8 sps:$4 sm:$0xff]  }
 0x12e   : > { %1289 = vmatpush1.bf16.msra.mxu0 %v6997_v33  ;;  %4093 = vmatpush1.bf16.msra.mxu1 %v6997_v33  ;;  %v7026_v33 = vld [vmem:[%s7622_s26 + $0x1e4] ss:$8 sps:$4 sm:$0xff]  }
 0x12f   : > { %1290 = vmatprep.subr.bf16.mxu0 %v7002_v24  ;;  %4094 = vmatprep.subr.bf16.mxu1 %v7002_v24  ;;  %v7024_v24 = vld [vmem:[%s7622_s26 + $0x1e0] ss:$8 sps:$4 sm:$0xff]  }
 0x132   : > { %1291 = vmatpush1.bf16.msra.mxu0 %v7000_v54  ;;  %4095 = vmatpush1.bf16.msra.mxu1 %v7000_v54  ;;  %v7029_v54 = vld [vmem:[%s7622_s26 + $0x1f4] ss:$8 sps:$4 sm:$0xff]  }
 0x133   : > { %1292 = vmatprep.subr.bf16.mxu0 %v7005_v52  ;;  %4096 = vmatprep.subr.bf16.mxu1 %v7005_v52  ;;  %v7027_v52 = vld [vmem:[%s7622_s26 + $0x1f0] ss:$8 sps:$4 sm:$0xff]  }
 0x136   : > { %1293 = vmatpush1.bf16.msra.mxu0 %v7003_v13  ;;  %4097 = vmatpush1.bf16.msra.mxu1 %v7003_v13  ;;  %v7032_v13 = vld [vmem:[%s7622_s26 + $0x404] ss:$8 sps:$4 sm:$0xff]  }
 0x137   : > { %1294 = vmatprep.subr.bf16.mxu0 %v7008_v27  ;;  %4098 = vmatprep.subr.bf16.mxu1 %v7008_v27  ;;  %v7030_v27 = vld [vmem:[%s7622_s26 + $0x400] ss:$8 sps:$4 sm:$0xff]  }
 0x13a   : > { %1295 = vmatpush1.bf16.msra.mxu0 %v7006_v48  ;;  %4099 = vmatpush1.bf16.msra.mxu1 %v7006_v48  ;;  %v7035_v48 = vld [vmem:[%s7622_s26 + $0x414] ss:$8 sps:$4 sm:$0xff]  }
 0x13b   : > { %1296 = vmatprep.subr.bf16.mxu0 %v7011_v19  ;;  %4100 = vmatprep.subr.bf16.mxu1 %v7011_v19  ;;  %v7033_v19 = vld [vmem:[%s7622_s26 + $0x410] ss:$8 sps:$4 sm:$0xff]  }
 0x13e   : > { %1297 = vmatpush1.bf16.msra.mxu0 %v7009_v51  ;;  %4101 = vmatpush1.bf16.msra.mxu1 %v7009_v51  ;;  %v7038_v51 = vld [vmem:[%s7622_s26 + $0x424] ss:$8 sps:$4 sm:$0xff]  }
 0x13f   : > { %1298 = vmatprep.subr.bf16.mxu0 %v7014_v0  ;;  %4102 = vmatprep.subr.bf16.mxu1 %v7014_v0  ;;  %v1411_v0 = vrot.slane %v7661_v17, 1 }
 0x142   : > { %1299 = vmatpush1.bf16.msra.mxu0 %v7012_v25  ;;  %4103 = vmatpush1.bf16.msra.mxu1 %v7012_v25  ;;  %v1412_v25 = vrot.slane %v7665_v20, 1 }
 0x143   : > { %1300 = vmatprep.subr.bf16.mxu0 %v7017_v2  ;;  %4104 = vmatprep.subr.bf16.mxu1 %v7017_v2  ;;  %v4214_v2 = vrot.slane %v7682_v28, 1 }
 0x146   : > { %1301 = vmatpush1.bf16.msra.mxu0 %v7015_v12  ;;  %4105 = vmatpush1.bf16.msra.mxu1 %v7015_v12  ;;  %v4215_v12 = vrot.slane %v7687_v31, 1 }
 0x147   : > { %1302 = vmatprep.subr.bf16.mxu0 %v7020_v56  ;;  %4106 = vmatprep.subr.bf16.mxu1 %v7020_v56  ;;  %v7036_v56 = vld [vmem:[%s7622_s26 + $0x420] ss:$8 sps:$4 sm:$0xff]  }
 0x14a   : > { %1303 = vmatpush1.bf16.msra.mxu0 %v7018_v58  ;;  %4107 = vmatpush1.bf16.msra.mxu1 %v7018_v58  ;;  %v7041_v58 = vld [vmem:[%s7622_s26 + $0x434] ss:$8 sps:$4 sm:$0xff]  }
 0x14b   : > { %1304 = vmatprep.subr.bf16.mxu0 %v7023_v3  ;;  %4108 = vmatprep.subr.bf16.mxu1 %v7023_v3  ;;  %v1413_v3 = vsel %vm1407_vm1, %v1411_v0, %v1412_v25  ;;  %v7056_v0 = vld [vmem:[%s7622_s26 + $0x484] ss:$8 sps:$4 sm:$0xff]  }
 0x14e   : > { %1305 = vmatpush1.bf16.msra.mxu0 %v7021_v30  ;;  %4109 = vmatpush1.bf16.msra.mxu1 %v7021_v30  ;;  %v4216_v30 = vsel %vm1407_vm1, %v4214_v2, %v4215_v12  ;;  %v7054_v2 = vld [vmem:[%s7622_s26 + $0x480] ss:$8 sps:$4 sm:$0xff]  }
 0x14f   : > { %1306 = vmatprep.subr.bf16.mxu0 %v7026_v33  ;;  %4110 = vmatprep.subr.bf16.mxu1 %v7026_v33  ;;  %v7039_v33 = vld [vmem:[%s7622_s26 + $0x430] ss:$8 sps:$4 sm:$0xff]  }
 0x152   : > { %1307 = vmatpush1.bf16.msra.mxu0 %v7024_v24  ;;  %4111 = vmatpush1.bf16.msra.mxu1 %v7024_v24  ;;  %v7044_v24 = vld [vmem:[%s7622_s26 + $0x444] ss:$8 sps:$4 sm:$0xff]  }
 0x153   : > { %1308 = vmatprep.subr.bf16.mxu0 %v7029_v54  ;;  %4112 = vmatprep.subr.bf16.mxu1 %v7029_v54  ;;  %v7042_v54 = vld [vmem:[%s7622_s26 + $0x440] ss:$8 sps:$4 sm:$0xff]  }
 0x156   : > { %1309 = vmatpush1.bf16.msra.mxu0 %v7027_v52  ;;  %4113 = vmatpush1.bf16.msra.mxu1 %v7027_v52  ;;  %v7047_v52 = vld [vmem:[%s7622_s26 + $0x454] ss:$8 sps:$4 sm:$0xff]  }
 0x157   : > { %1756 = vmatprep.subr.bf16.mxu0 %v7032_v13  ;;  %4559 = vmatprep.subr.bf16.mxu1 %v7032_v13  ;;  %v7045_v13 = vld [vmem:[%s7622_s26 + $0x450] ss:$8 sps:$4 sm:$0xff]  }
 0x159   : > { %1311 = vmatmul.mubr.bf16.vlgmr.msra.gmra.mrb[0].mxu0 %v7931_v32  ;;  %4115 = vmatmul.mubr.bf16.vlgmr.msra.gmra.mrb[0].mxu1 %v7939_v43 }
 0x15a   : > { %1757 = vmatpush1.bf16.msra.mxu0 %v7030_v27  ;;  %4560 = vmatpush1.bf16.msra.mxu1 %v7030_v27  ;;  %v7050_v27 = vld [vmem:[%s7622_s26 + $0x464] ss:$8 sps:$4 sm:$0xff]  }
 0x15b   : > { %1758 = vmatprep.subr.bf16.mxu0 %v7035_v48  ;;  %4561 = vmatprep.subr.bf16.mxu1 %v7035_v48  ;;  %v7048_v48 = vld [vmem:[%s7622_s26 + $0x460] ss:$8 sps:$4 sm:$0xff]  }
 0x15c   : > { %1320 = vmatprep.mubr.bf16.mxu0 %v7840_v60  ;;  %4124 = vmatprep.mubr.bf16.mxu1 %v7844_v1 }
 0x15e   : > { %1759 = vmatpush1.bf16.msra.mxu0 %v7033_v19  ;;  %4562 = vmatpush1.bf16.msra.mxu1 %v7033_v19  ;;  %v7053_v19 = vld [vmem:[%s7622_s26 + $0x474] ss:$8 sps:$4 sm:$0xff]  }
 0x15f   : > { %1760 = vmatprep.subr.bf16.mxu0 %v7038_v51  ;;  %4563 = vmatprep.subr.bf16.mxu1 %v7038_v51  ;;  %v7051_v51 = vld [vmem:[%s7622_s26 + $0x470] ss:$8 sps:$4 sm:$0xff]  }
 0x161   : > { %1321 = vmatmul.mubr.bf16.gmra.mrb[4].mxu0 %v7942_v47  ;;  %4125 = vmatmul.mubr.bf16.gmra.mrb[4].mxu1 %v7946_v53 }
 0x162   : > { %1761 = vmatpush1.bf16.msra.mxu0 %v7036_v56  ;;  %4564 = vmatpush1.bf16.msra.mxu1 %v7036_v56  ;;  %v7059_v56 = vld [vmem:[%s7622_s26 + $0x494] ss:$8 sps:$4 sm:$0xff]  }
 0x163   : > { %1762 = vmatprep.subr.bf16.mxu0 %v7041_v58  ;;  %4565 = vmatprep.subr.bf16.mxu1 %v7041_v58  ;;  %v7057_v58 = vld [vmem:[%s7622_s26 + $0x490] ss:$8 sps:$4 sm:$0xff]  }
 0x164   : > { %1788 = vmatprep.mubr.bf16.mxu0 %v1413_v3  ;;  %4591 = vmatprep.mubr.bf16.mxu1 %v4216_v30  ;;  %v7062_v3 = vld [vmem:[%s7622_s26 + $0x4a4] ss:$8 sps:$4 sm:$0xff]   ;;  %v7060_v30 = vld [vmem:[%s7622_s26 + $0x4a0] ss:$8 sps:$4 sm:$0xff]  }
 0x166   : > { %1763 = vmatpush1.bf16.msra.mxu0 %v7039_v33  ;;  %4566 = vmatpush1.bf16.msra.mxu1 %v7039_v33  ;;  %v7065_v33 = vld [vmem:[%s7622_s26 + $0x4b4] ss:$8 sps:$4 sm:$0xff]  }
 0x167   : > { %1764 = vmatprep.subr.bf16.mxu0 %v7044_v24  ;;  %4567 = vmatprep.subr.bf16.mxu1 %v7044_v24  ;;  %v7063_v24 = vld [vmem:[%s7622_s26 + $0x4b0] ss:$8 sps:$4 sm:$0xff]  }
 0x16a   : > { %1765 = vmatpush1.bf16.msra.mxu0 %v7042_v54  ;;  %4568 = vmatpush1.bf16.msra.mxu1 %v7042_v54  ;;  %v7068_v54 = vld [vmem:[%s7622_s26 + $0x4c4] ss:$8 sps:$4 sm:$0xff]  }
 0x16b   : > { %1766 = vmatprep.subr.bf16.mxu0 %v7047_v52  ;;  %4569 = vmatprep.subr.bf16.mxu1 %v7047_v52  ;;  %v7066_v52 = vld [vmem:[%s7622_s26 + $0x4c0] ss:$8 sps:$4 sm:$0xff]  }
 0x16e   : > { %1767 = vmatpush1.bf16.msra.mxu0 %v7045_v13  ;;  %4570 = vmatpush1.bf16.msra.mxu1 %v7045_v13  ;;  %v7071_v13 = vld [vmem:[%s7622_s26 + $0x4d4] ss:$8 sps:$4 sm:$0xff]  }
 0x16f   : > { %1768 = vmatprep.subr.bf16.mxu0 %v7050_v27  ;;  %4571 = vmatprep.subr.bf16.mxu1 %v7050_v27  ;;  %v7069_v27 = vld [vmem:[%s7622_s26 + $0x4d0] ss:$8 sps:$4 sm:$0xff]  }
 0x172   : > { %1769 = vmatpush1.bf16.msra.mxu0 %v7048_v48  ;;  %4572 = vmatpush1.bf16.msra.mxu1 %v7048_v48  ;;  %v7074_v48 = vld [vmem:[%s7622_s26 + $0x4e4] ss:$8 sps:$4 sm:$0xff]  }
 0x173   : > { %1770 = vmatprep.subr.bf16.mxu0 %v7053_v19  ;;  %4573 = vmatprep.subr.bf16.mxu1 %v7053_v19  ;;  %v7072_v19 = vld [vmem:[%s7622_s26 + $0x4e0] ss:$8 sps:$4 sm:$0xff]  }
 0x176   : > { %1771 = vmatpush1.bf16.msra.mxu0 %v7051_v51  ;;  %4574 = vmatpush1.bf16.msra.mxu1 %v7051_v51  ;;  %v7077_v51 = vld [vmem:[%s7622_s26 + $0x4f4] ss:$8 sps:$4 sm:$0xff]  }
 0x177   : > { %1772 = vmatprep.subr.bf16.mxu0 %v7056_v0  ;;  %4575 = vmatprep.subr.bf16.mxu1 %v7056_v0  ;;  %v7075_v0 = vld [vmem:[%s7622_s26 + $0x4f0] ss:$8 sps:$4 sm:$0xff]  }
 0x17a   : > { %1773 = vmatpush1.bf16.msra.mxu0 %v7054_v2  ;;  %4576 = vmatpush1.bf16.msra.mxu1 %v7054_v2  ;;  %v1408_v2 = vrot.slane %v7731_v55, 1 }
 0x17b   : > { %1774 = vmatprep.subr.bf16.mxu0 %v7059_v56  ;;  %4577 = vmatprep.subr.bf16.mxu1 %v7059_v56  ;;  %v1409_v56 = vrot.slane %v7743_v61, 1 }
 0x17e   : > { %1775 = vmatpush1.bf16.msra.mxu0 %v7057_v58  ;;  %4578 = vmatpush1.bf16.msra.mxu1 %v7057_v58  ;;  %v4211_v58 = vrot.slane %v7740_v59, 1 }
 0x17f   : > { %1776 = vmatprep.subr.bf16.mxu0 %v7062_v3  ;;  %4579 = vmatprep.subr.bf16.mxu1 %v7062_v3  ;;  %v4212_v3 = vrot.slane %v7760_v5, 1 }
 0x182   : > { %1777 = vmatpush1.bf16.msra.mxu0 %v7060_v30  ;;  %4580 = vmatpush1.bf16.msra.mxu1 %v7060_v30  ;;  %v1939_v30 = vrot.slane %v399_v9, 2  ;;  %v4225_v9 = vrot.slane %v7769_v11, 1 }
 0x183   : > { %1778 = vmatprep.subr.bf16.mxu0 %v7065_v33  ;;  %4581 = vmatprep.subr.bf16.mxu1 %v7065_v33  ;;  %v1938_v33 = vrot.slane %v439_v63, 1  ;;  %v4737_v63 = vrot.slane %v3196_v15, 1  ;;  %v4738_v15 = vrot.slane %v3198_v6, 2  ;;  %v4223_v6 = vrot.slane %v7823_v50, 1 }
 0x186   : > { %1779 = vmatpush1.bf16.msra.mxu0 %v7063_v24  ;;  %4582 = vmatpush1.bf16.msra.mxu1 %v7063_v24  ;;  %v7080_v24 = vld [vmem:[%s7622_s26 + $0x504] ss:$8 sps:$4 sm:$0xff]  }
 0x187   : > { %1780 = vmatprep.subr.bf16.mxu0 %v7068_v54  ;;  %4583 = vmatprep.subr.bf16.mxu1 %v7068_v54  ;;  %v4741_v54 = vrot.slane %v3203_v18, 2  ;;  %v4213_v18 = vsel %vm1407_vm1, %v4211_v58, %v4212_v3  ;;  %v4226_v58 = vsel %vm1407_vm1, %v4215_v12, %v4225_v9  ;;  %v4221_v9 = vrot.slane %v7844_v1, 1 }
 0x18a   : > { %1781 = vmatpush1.bf16.msra.mxu0 %v7066_v52  ;;  %4584 = vmatpush1.bf16.msra.mxu1 %v7066_v52  ;;  %v4740_v52 = vrot.slane %v3243_v4, 1  ;;  %v7083_v4 = vld [vmem:[%s7622_s26 + $0x514] ss:$8 sps:$4 sm:$0xff]  }
 0x18b   : > { %1782 = vmatprep.subr.bf16.mxu0 %v7071_v13  ;;  %4585 = vmatprep.subr.bf16.mxu1 %v7071_v13  ;;  %v1935_v13 = vrot.slane %v392_v7, 1  ;;  %v1936_v7 = vrot.slane %v394_v62, 2 }
 0x18d   : > { %v1937_v62 = vor.u32 %v1936_v7, %v1935_v13  ;;  %v1418_v13 = vrot.slane %v7840_v60, 1 }
 0x18e   : > { %1783 = vmatpush1.bf16.msra.mxu0 %v7069_v27  ;;  %4586 = vmatpush1.bf16.msra.mxu1 %v7069_v27  ;;  %v1422_v27 = vrot.slane %v7767_v10, 1 }
 0x18f   : > { %1784 = vmatprep.subr.bf16.mxu0 %v7074_v48  ;;  %4587 = vmatprep.subr.bf16.mxu1 %v7074_v48  ;;  %v7078_v48 = vld [vmem:[%s7622_s26 + $0x500] ss:$8 sps:$4 sm:$0xff]  }
 0x192   : > { %1785 = vmatpush1.bf16.msra.mxu0 %v7072_v19  ;;  %4588 = vmatpush1.bf16.msra.mxu1 %v7072_v19  ;;  %v1410_v19 = vsel %vm1407_vm1, %v1408_v2, %v1409_v56  ;;  %v1423_v2 = vsel %vm1407_vm1, %v1412_v25, %v1422_v27  ;;  %v4220_v27 = vrot.slane %v7815_v46, 1 }
 0x193   : > { %1786 = vmatprep.subr.bf16.mxu0 %v7077_v51  ;;  %4589 = vmatprep.subr.bf16.mxu1 %v7077_v51  ;;  %v8167_v51 = vor.u32 %v1939_v30, %v1938_v33  ;;  %v7081_v30 = vld [vmem:[%s7622_s26 + $0x510] ss:$8 sps:$4 sm:$0xff]   ;;  %v1420_v33 = vrot.slane %v7821_v49, 1 }
 0x194   : > { %v4222_v7 = vsel %vm1407_vm1, %v4220_v27, %v4221_v9  ;;  %v7105_v27 = vld [vmem:[%s7622_s26 + $0x590] ss:$8 sps:$4 sm:$0xff]  }
 0x195   : > { %v8185_v25 = vsel %vm1934_vm2, %v1937_v62, %v8167_v51  ;;  %v7098_v62 = vld [vmem:[%s7622_s26 + $0x564] ss:$8 sps:$4 sm:$0xff]  }
 0x196   : > { %1787 = vmatpush1.bf16.msra.mxu0 %v7075_v0  ;;  %4590 = vmatpush1.bf16.msra.mxu1 %v7075_v0  ;;  %v8171_v0 = vor.u32 %v4741_v54, %v4740_v52  ;;  %v7086_v54 = vld [vmem:[%s7622_s26 + $0x524] ss:$8 sps:$4 sm:$0xff]   ;;  %v1417_v52 = vrot.slane %v7810_v44, 1 }
 0x197   : > { %1809 = vmatprep.subr.bf16.mxu0 %v7080_v24  ;;  %4612 = vmatprep.subr.bf16.mxu1 %v7080_v24  ;;  %v4739_v24 = vor.u32 %v4738_v15, %v4737_v63  ;;  %v7084_v63 = vld [vmem:[%s7622_s26 + $0x520] ss:$8 sps:$4 sm:$0xff]  }
 0x198   : > { %v7090_v15 = vld [vmem:[%s7622_s26 + $0x540] ss:$8 sps:$4 sm:$0xff]  }
 0x199   : > { %1789 = vmatmul.mubr.bf16.vlgmr.msra.gmra.mrb[0].mxu0 %v1410_v19  ;;  %4592 = vmatmul.mubr.bf16.vlgmr.msra.gmra.mrb[0].mxu1 %v4213_v18  ;;  %v8189_v12 = vsel %vm1934_vm2, %v4739_v24, %v8171_v0  ;;  %v4224_v19 = vsel %vm1407_vm1, %v4212_v3, %v4223_v6  ;;  %v7089_v18 = vld [vmem:[%s7622_s26 + $0x534] ss:$8 sps:$4 sm:$0xff]   ;;  %v7092_v3 = vld [vmem:[%s7622_s26 + $0x544] ss:$8 sps:$4 sm:$0xff]   ;;  %v7099_v6 = vld [vmem:[%s7622_s26 + $0x570] ss:$8 sps:$4 sm:$0xff]  }
 0x19a   : > { %1810 = vmatpush1.bf16.msra.mxu0 %v7078_v48  ;;  %4613 = vmatpush1.bf16.msra.mxu1 %v7078_v48  ;;  %v1421_v48 = vsel %vm1407_vm1, %v1409_v56, %v1420_v33  ;;  %v7087_v56 = vld [vmem:[%s7622_s26 + $0x530] ss:$8 sps:$4 sm:$0xff]   ;;  %v7101_v33 = vld [vmem:[%s7622_s26 + $0x574] ss:$8 sps:$4 sm:$0xff]   ;;  %v7104_v24 = vld [vmem:[%s7622_s26 + $0x584] ss:$8 sps:$4 sm:$0xff]  }
 0x19b   : > { %1811 = vmatprep.subr.bf16.mxu0 %v7083_v4  ;;  %4614 = vmatprep.subr.bf16.mxu1 %v7083_v4  ;;  %v1419_v4 = vsel %vm1407_vm1, %v1417_v52, %v1418_v13  ;;  %v7107_v52 = vld [vmem:[%s7622_s26 + $0x594] ss:$8 sps:$4 sm:$0xff]  }
 0x19c   : > { %1798 = vmatprep.mubr.bf16.mxu0 %v1423_v2  ;;  %4601 = vmatprep.mubr.bf16.mxu1 %v4226_v58  ;;  %v7095_v2 = vld [vmem:[%s7622_s26 + $0x554] ss:$8 sps:$4 sm:$0xff]   ;;  %v7093_v58 = vld [vmem:[%s7622_s26 + $0x550] ss:$8 sps:$4 sm:$0xff]  }
 0x19e   : > { %1812 = vmatpush1.bf16.msra.mxu0 %v7081_v30  ;;  %4615 = vmatpush1.bf16.msra.mxu1 %v7081_v30  ;;  %v7096_v30 = vld [vmem:[%s7622_s26 + $0x560] ss:$8 sps:$4 sm:$0xff]  }
 0x19f   : > { %1813 = vmatprep.subr.bf16.mxu0 %v7086_v54  ;;  %4616 = vmatprep.subr.bf16.mxu1 %v7086_v54  ;;  %v7102_v54 = vld [vmem:[%s7622_s26 + $0x580] ss:$8 sps:$4 sm:$0xff]  }
 0x1a1   : > { %1799 = vmatmul.mubr.bf16.gmra.mrb[4].mxu0 %v1421_v48  ;;  %4602 = vmatmul.mubr.bf16.gmra.mrb[4].mxu1 %v4224_v19  ;;  %v7108_v48 = vld [vmem:[%s7622_s26 + $0x5a0] ss:$8 sps:$4 sm:$0xff]   ;;  %v7113_v19 = vld [vmem:[%s7622_s26 + $0x5b4] ss:$8 sps:$4 sm:$0xff]  }
 0x1a2   : > { %1814 = vmatpush1.bf16.msra.mxu0 %v7084_v63  ;;  %4617 = vmatpush1.bf16.msra.mxu1 %v7084_v63  ;;  %v7110_v63 = vld [vmem:[%s7622_s26 + $0x5a4] ss:$8 sps:$4 sm:$0xff]  }
 0x1a3   : > { %1815 = vmatprep.subr.bf16.mxu0 %v7089_v18  ;;  %4618 = vmatprep.subr.bf16.mxu1 %v7089_v18  ;;  %v7111_v18 = vld [vmem:[%s7622_s26 + $0x5b0] ss:$8 sps:$4 sm:$0xff]  }
 0x1a4   : > { %1841 = vmatprep.mubr.bf16.mxu0 %v1419_v4  ;;  %4644 = vmatprep.mubr.bf16.mxu1 %v4222_v7  ;;  %v7116_v4 = vld [vmem:[%s7622_s26 + $0x5c4] ss:$8 sps:$4 sm:$0xff]   ;;  %v7114_v7 = vld [vmem:[%s7622_s26 + $0x5c0] ss:$8 sps:$4 sm:$0xff]  }
 0x1a6   : > { %1816 = vmatpush1.bf16.msra.mxu0 %v7087_v56  ;;  %4619 = vmatpush1.bf16.msra.mxu1 %v7087_v56  ;;  %v7119_v56 = vld [vmem:[%s7622_s26 + $0x5d4] ss:$8 sps:$4 sm:$0xff]  }
 0x1a7   : > { %1817 = vmatprep.subr.bf16.mxu0 %v7092_v3  ;;  %4620 = vmatprep.subr.bf16.mxu1 %v7092_v3  ;;  %v7117_v3 = vld [vmem:[%s7622_s26 + $0x5d0] ss:$8 sps:$4 sm:$0xff]  }
 0x1aa   : > { %1818 = vmatpush1.bf16.msra.mxu0 %v7090_v15  ;;  %4621 = vmatpush1.bf16.msra.mxu1 %v7090_v15  ;;  %v7122_v15 = vld [vmem:[%s7622_s26 + $0x5e4] ss:$8 sps:$4 sm:$0xff]  }
 0x1ab   : > { %1819 = vmatprep.subr.bf16.mxu0 %v7095_v2  ;;  %4622 = vmatprep.subr.bf16.mxu1 %v7095_v2  ;;  %v7120_v2 = vld [vmem:[%s7622_s26 + $0x5e0] ss:$8 sps:$4 sm:$0xff]  }
 0x1ae   : > { %1820 = vmatpush1.bf16.msra.mxu0 %v7093_v58  ;;  %4623 = vmatpush1.bf16.msra.mxu1 %v7093_v58  ;;  %v7125_v58 = vld [vmem:[%s7622_s26 + $0x5f4] ss:$8 sps:$4 sm:$0xff]  }
 0x1af   : > { %1821 = vmatprep.subr.bf16.mxu0 %v7098_v62  ;;  %4624 = vmatprep.subr.bf16.mxu1 %v7098_v62  ;;  %v7123_v62 = vld [vmem:[%s7622_s26 + $0x5f0] ss:$8 sps:$4 sm:$0xff]  }
 0x1b2   : > { %1822 = vmatpush1.bf16.msra.mxu0 %v7096_v30  ;;  %4625 = vmatpush1.bf16.msra.mxu1 %v7096_v30  ;;  %v1414_v30 = vrot.slane %v7931_v32, 1 }
 0x1b3   : > { %1823 = vmatprep.subr.bf16.mxu0 %v7101_v33  ;;  %4626 = vmatprep.subr.bf16.mxu1 %v7101_v33  ;;  %v1415_v33 = vrot.slane %v7942_v47, 1 }
 0x1b6   : > { %1824 = vmatpush1.bf16.msra.mxu0 %v7099_v6  ;;  %4627 = vmatpush1.bf16.msra.mxu1 %v7099_v6  ;;  %v4217_v6 = vrot.slane %v7939_v43, 1 }
 0x1b7   : > { %1825 = vmatprep.subr.bf16.mxu0 %v7104_v24  ;;  %4628 = vmatprep.subr.bf16.mxu1 %v7104_v24  ;;  %v4218_v24 = vrot.slane %v7946_v53, 1 }
 0x1ba   : > { %1826 = vmatpush1.bf16.msra.mxu0 %v7102_v54  ;;  %4629 = vmatpush1.bf16.msra.mxu1 %v7102_v54  ;;  %v7128_v54 = vld [vmem:[%s7622_s26 + $0x604] ss:$8 sps:$4 sm:$0xff]  }
 0x1bb   : > { %1827 = vmatprep.subr.bf16.mxu0 %v7107_v52  ;;  %4630 = vmatprep.subr.bf16.mxu1 %v7107_v52  ;;  %v1426_v52 = vrot.slane %v7963_v36, 1 }
 0x1be   : > { %1828 = vmatpush1.bf16.msra.mxu0 %v7105_v27  ;;  %4631 = vmatpush1.bf16.msra.mxu1 %v7105_v27  ;;  %v4229_v27 = vrot.slane %v7965_v42, 1 }
 0x1bf   : > { %1829 = vmatprep.subr.bf16.mxu0 %v7110_v63  ;;  %4632 = vmatprep.subr.bf16.mxu1 %v7110_v63  ;;  %v7126_v63 = vld [vmem:[%s7622_s26 + $0x600] ss:$8 sps:$4 sm:$0xff]  }
 0x1c2   : > { %1830 = vmatpush1.bf16.msra.mxu0 %v7108_v48  ;;  %4633 = vmatpush1.bf16.msra.mxu1 %v7108_v48  ;;  %v1416_v48 = vsel %vm1407_vm1, %v1414_v30, %v1415_v33  ;;  %v7132_v30 = vld [vmem:[%s7622_s26 + $0x620] ss:$8 sps:$4 sm:$0xff]  }
 0x1c3   : > { %1831 = vmatprep.subr.bf16.mxu0 %v7113_v19  ;;  %4634 = vmatprep.subr.bf16.mxu1 %v7113_v19  ;;  %v4219_v19 = vsel %vm1407_vm1, %v4217_v6, %v4218_v24 }
 0x1c6   : > { %1832 = vmatpush1.bf16.msra.mxu0 %v7111_v18  ;;  %4635 = vmatpush1.bf16.msra.mxu1 %v7111_v18  ;;  %v7131_v18 = vld [vmem:[%s7622_s26 + $0x614] ss:$8 sps:$4 sm:$0xff]  }
 0x1c7   : > { %1833 = vmatprep.subr.bf16.mxu0 %v7116_v4  ;;  %4636 = vmatprep.subr.bf16.mxu1 %v7116_v4  ;;  %v1427_v4 = vsel %vm1407_vm1, %v1418_v13, %v1426_v52  ;;  %v4744_v13 = vrot.slane %v3208_v34, 1  ;;  %v7134_v34 = vld [vmem:[%s7622_s26 + $0x624] ss:$8 sps:$4 sm:$0xff]   ;;  %v7137_v52 = vld [vmem:[%s7622_s26 + $0x634] ss:$8 sps:$4 sm:$0xff]  }
 0x1ca   : > { %1834 = vmatpush1.bf16.msra.mxu0 %v7114_v7  ;;  %4637 = vmatpush1.bf16.msra.mxu1 %v7114_v7  ;;  %v4230_v7 = vsel %vm1407_vm1, %v4221_v9, %v4229_v27  ;;  %v4745_v9 = vrot.slane %v3210_v35, 2 }
 0x1cb   : > { %1835 = vmatprep.subr.bf16.mxu0 %v7119_v56  ;;  %4638 = vmatprep.subr.bf16.mxu1 %v7119_v56  ;;  %v1942_v56 = vrot.slane %v404_v21, 1  ;;  %v4747_v21 = vrot.slane %v3251_v39, 1 }
 0x1cc   : > { %v4746_v39 = vor.u32 %v4745_v9, %v4744_v13  ;;  %v7155_v13 = vld [vmem:[%s7622_s26 + $0x694] ss:$8 sps:$4 sm:$0xff]   ;;  %v7153_v9 = vld [vmem:[%s7622_s26 + $0x690] ss:$8 sps:$4 sm:$0xff]  }
 0x1ce   : > { %1836 = vmatpush1.bf16.msra.mxu0 %v7117_v3  ;;  %4639 = vmatpush1.bf16.msra.mxu1 %v7117_v3  ;;  %v1943_v3 = vrot.slane %v406_v22, 2  ;;  %v4748_v22 = vrot.slane %v3215_v37, 2 }
 0x1cf   : > { %1837 = vmatprep.subr.bf16.mxu0 %v7122_v15  ;;  %4640 = vmatprep.subr.bf16.mxu1 %v7122_v15  ;;  %v1945_v15 = vrot.slane %v447_v29, 1  ;;  %v7129_v29 = vld [vmem:[%s7622_s26 + $0x610] ss:$8 sps:$4 sm:$0xff]  }
 0x1d0   : > { %v1944_v35 = vor.u32 %v1943_v3, %v1942_v56  ;;  %v8269_v37 = vor.u32 %v4748_v22, %v4747_v21  ;;  %v7149_v56 = vld [vmem:[%s7622_s26 + $0x674] ss:$8 sps:$4 sm:$0xff]   ;;  %v7147_v3 = vld [vmem:[%s7622_s26 + $0x670] ss:$8 sps:$4 sm:$0xff]   ;;  %v7158_v21 = vld [vmem:[%s7622_s26 + $0x6a4] ss:$8 sps:$4 sm:$0xff]  }
 0x1d1   : > { %v7156_v22 = vld [vmem:[%s7622_s26 + $0x6a0] ss:$8 sps:$4 sm:$0xff]  }
 0x1d2   : > { %1838 = vmatpush1.bf16.msra.mxu0 %v7120_v2  ;;  %4641 = vmatpush1.bf16.msra.mxu1 %v7120_v2  ;;  %v1946_v2 = vrot.slane %v411_v26, 2  ;;  %v1424_v26 = vrot.slane %v7989_v16, 1 }
 0x1d3   : > { %1839 = vmatprep.subr.bf16.mxu0 %v7125_v58  ;;  %4642 = vmatprep.subr.bf16.mxu1 %v7125_v58  ;;  %v4227_v58 = vrot.slane %v7991_v14, 1 }
 0x1d4   : > { %v1425_v6 = vsel %vm1407_vm1, %v1415_v33, %v1424_v26  ;;  %v7140_v33 = vld [vmem:[%s7622_s26 + $0x644] ss:$8 sps:$4 sm:$0xff]   ;;  %v7159_v26 = vld [vmem:[%s7622_s26 + $0x6b0] ss:$8 sps:$4 sm:$0xff]  }
 0x1d6   : > { %1840 = vmatpush1.bf16.msra.mxu0 %v7123_v62  ;;  %4643 = vmatpush1.bf16.msra.mxu1 %v7123_v62  ;;  %v8267_v62 = vor.u32 %v1946_v2, %v1945_v15  ;;  %v7152_v15 = vld [vmem:[%s7622_s26 + $0x684] ss:$8 sps:$4 sm:$0xff]   ;;  %v7150_v2 = vld [vmem:[%s7622_s26 + $0x680] ss:$8 sps:$4 sm:$0xff]  }
 0x1d7   : > { %2315 = vmatprep.subr.bf16.mxu0 %v7128_v54  ;;  %5117 = vmatprep.subr.bf16.mxu1 %v7128_v54  ;;  %v4228_v54 = vsel %vm1407_vm1, %v4218_v24, %v4227_v58  ;;  %v7138_v24 = vld [vmem:[%s7622_s26 + $0x640] ss:$8 sps:$4 sm:$0xff]   ;;  %v7164_v58 = vld [vmem:[%s7622_s26 + $0x6c4] ss:$8 sps:$4 sm:$0xff]  }
 0x1d8   : > { %v1948_v27 = vsel %vm1934_vm2, %v1944_v35, %v8267_v62  ;;  %v7167_v35 = vld [vmem:[%s7622_s26 + $0x6d4] ss:$8 sps:$4 sm:$0xff]  }
 0x1d9   : > { %1842 = vmatmul.mubr.bf16.vlgmr.msra.gmra.mrb[0].mxu0 %v1416_v48  ;;  %4645 = vmatmul.mubr.bf16.vlgmr.msra.gmra.mrb[0].mxu1 %v4219_v19  ;;  %v7135_v48 = vld [vmem:[%s7622_s26 + $0x630] ss:$8 sps:$4 sm:$0xff]   ;;  %v7143_v19 = vld [vmem:[%s7622_s26 + $0x654] ss:$8 sps:$4 sm:$0xff]  }
 0x1da   : > { %2316 = vmatpush1.bf16.msra.mxu0 %v7126_v63  ;;  %5118 = vmatpush1.bf16.msra.mxu1 %v7126_v63  ;;  %v4750_v63 = vsel %vm1934_vm2, %v4746_v39, %v8269_v37  ;;  %v7165_v39 = vld [vmem:[%s7622_s26 + $0x6d0] ss:$8 sps:$4 sm:$0xff]  }
 0x1db   : > { %2317 = vmatprep.subr.bf16.mxu0 %v7131_v18  ;;  %5119 = vmatprep.subr.bf16.mxu1 %v7131_v18  ;;  %v7141_v18 = vld [vmem:[%s7622_s26 + $0x650] ss:$8 sps:$4 sm:$0xff]  }
 0x1dc   : > { %1851 = vmatprep.mubr.bf16.mxu0 %v1427_v4  ;;  %4654 = vmatprep.mubr.bf16.mxu1 %v4230_v7  ;;  %v7146_v4 = vld [vmem:[%s7622_s26 + $0x664] ss:$8 sps:$4 sm:$0xff]   ;;  %v7144_v7 = vld [vmem:[%s7622_s26 + $0x660] ss:$8 sps:$4 sm:$0xff]  }
 0x1de   : > { %2318 = vmatpush1.bf16.msra.mxu0 %v7129_v29  ;;  %5120 = vmatpush1.bf16.msra.mxu1 %v7129_v29  ;;  %v7161_v29 = vld [vmem:[%s7622_s26 + $0x6b4] ss:$8 sps:$4 sm:$0xff]  }
 0x1df   : > { %2319 = vmatprep.subr.bf16.mxu0 %v7134_v34  ;;  %5121 = vmatprep.subr.bf16.mxu1 %v7134_v34  ;;  %v7162_v34 = vld [vmem:[%s7622_s26 + $0x6c0] ss:$8 sps:$4 sm:$0xff]  }
 0x1e1   : > { %1852 = vmatmul.mubr.bf16.gmra.mrb[4].mxu0 %v1425_v6  ;;  %4655 = vmatmul.mubr.bf16.gmra.mrb[4].mxu1 %v4228_v54  ;;  %v1969_v6 = vshrl.u32 %v7767_v10, 16  ;;  %v4771_v54 = vshrl.u32 %v7769_v11, 16 }
 0x1e2   : > { %2320 = vmatpush1.bf16.msra.mxu0 %v7132_v30  ;;  %5122 = vmatpush1.bf16.msra.mxu1 %v7132_v30  ;;  %v7170_v30 = vld [vmem:[%s7622_s26 + $0x6e4] ss:$8 sps:$4 sm:$0xff]  }
 0x1e3   : > { %2321 = vmatprep.subr.bf16.mxu0 %v7137_v52  ;;  %5123 = vmatprep.subr.bf16.mxu1 %v7137_v52  ;;  %v7168_v52 = vld [vmem:[%s7622_s26 + $0x6e0] ss:$8 sps:$4 sm:$0xff]  }
 0x1e4   : > { %2347 = vmatprep.mubr.bf16.mxu0 %v1948_v27  ;;  %5149 = vmatprep.mubr.bf16.mxu1 %v4750_v63  ;;  %v7173_v27 = vld [vmem:[%s7622_s26 + $0x6f4] ss:$8 sps:$4 sm:$0xff]   ;;  %v1971_v63 = vrot.slane %v1969_v6, 1 }
 0x1e6   : > { %2322 = vmatpush1.bf16.msra.mxu0 %v7135_v48  ;;  %5124 = vmatpush1.bf16.msra.mxu1 %v7135_v48  ;;  %v1972_v48 = vrot.slane %v451_v38, 2  ;;  %v7174_v38 = vld [vmem:[%s7622_s26 + $0x700] ss:$8 sps:$4 sm:$0xff]  }
 0x1e7   : > { %2323 = vmatprep.subr.bf16.mxu0 %v7140_v33  ;;  %5125 = vmatprep.subr.bf16.mxu1 %v7140_v33  ;;  %v4773_v33 = vrot.slane %v4771_v54, 1  ;;  %v8723_v54 = vshll.u32 %v7815_v46, 16 }
 0x1ea   : > { %2324 = vmatpush1.bf16.msra.mxu0 %v7138_v24  ;;  %5126 = vmatpush1.bf16.msra.mxu1 %v7138_v24  ;;  %v4774_v24 = vrot.slane %v3255_v41, 2  ;;  %v1966_v41 = vrot.slane %v443_v40, 2 }
 0x1eb   : > { %2325 = vmatprep.subr.bf16.mxu0 %v7143_v19  ;;  %5127 = vmatprep.subr.bf16.mxu1 %v7143_v19  ;;  %v7171_v19 = vld [vmem:[%s7622_s26 + $0x6f0] ss:$8 sps:$4 sm:$0xff]  }
 0x1ee   : > { %2326 = vmatpush1.bf16.msra.mxu0 %v7141_v18  ;;  %5128 = vmatpush1.bf16.msra.mxu1 %v7141_v18  ;;  %v1963_v18 = vshrl.u32 %v7821_v49, 16 }
 0x1ef   : > { %2327 = vmatprep.subr.bf16.mxu0 %v7146_v4  ;;  %5129 = vmatprep.subr.bf16.mxu1 %v7146_v4  ;;  %v4765_v4 = vshrl.u32 %v7823_v50, 16 }
 0x1f2   : > { %2328 = vmatpush1.bf16.msra.mxu0 %v7144_v7  ;;  %5130 = vmatpush1.bf16.msra.mxu1 %v7144_v7  ;;  %v7176_v7 = vld [vmem:[%s7622_s26 + $0x704] ss:$8 sps:$4 sm:$0xff]  }
 0x1f3   : > { %2329 = vmatprep.subr.bf16.mxu0 %v7149_v56  ;;  %5131 = vmatprep.subr.bf16.mxu1 %v7149_v56  ;;  %v1973_v56 = vor.u32 %v1972_v48, %v1971_v63  ;;  %v8725_v48 = vshll.u32 %v7844_v1, 16 }
 0x1f6   : > { %2330 = vmatpush1.bf16.msra.mxu0 %v7147_v3  ;;  %5132 = vmatpush1.bf16.msra.mxu1 %v7147_v3  ;;  %v4775_v3 = vor.u32 %v4774_v24, %v4773_v33  ;;  %v4762_v33 = vrot.slane %v8725_v48, 2  ;;  %v7177_v24 = vld [vmem:[%s7622_s26 + $0x710] ss:$8 sps:$4 sm:$0xff]  }
 0x1f7   : > { %2331 = vmatprep.subr.bf16.mxu0 %v7152_v15  ;;  %5133 = vmatprep.subr.bf16.mxu1 %v7152_v15  ;;  %v1965_v15 = vrot.slane %v1963_v18, 1  ;;  %v7213_v48 = vld [vmem:[%s7622_s26 + $0x7d0] ss:$8 sps:$4 sm:$0xff]  }
 0x1fa   : > { %2332 = vmatpush1.bf16.msra.mxu0 %v7150_v2  ;;  %5134 = vmatpush1.bf16.msra.mxu1 %v7150_v2  ;;  %v4767_v2 = vrot.slane %v4765_v4, 1 }
 0x1fb   : > { %2333 = vmatprep.subr.bf16.mxu0 %v7155_v13  ;;  %5135 = vmatprep.subr.bf16.mxu1 %v7155_v13  ;;  %v8717_v13 = vshll.u32 %v7823_v50, 16 }
 0x1fe   : > { %2334 = vmatpush1.bf16.msra.mxu0 %v7153_v9  ;;  %5136 = vmatpush1.bf16.msra.mxu1 %v7153_v9  ;;  %v4768_v9 = vrot.slane %v8717_v13, 2 }
 0x1ff   : > { %2335 = vmatprep.subr.bf16.mxu0 %v7158_v21  ;;  %5137 = vmatprep.subr.bf16.mxu1 %v7158_v21  ;;  %v7179_v21 = vld [vmem:[%s7622_s26 + $0x714] ss:$8 sps:$4 sm:$0xff]  }
 0x202   : > { %2336 = vmatpush1.bf16.msra.mxu0 %v7156_v22  ;;  %5138 = vmatpush1.bf16.msra.mxu1 %v7156_v22  ;;  %v1974_v22 = vsel %vm1934_vm2, %v8267_v62, %v1973_v56  ;;  %v8722_v62 = vshrl.u32 %v7815_v46, 16 }
 0x203   : > { %2337 = vmatprep.subr.bf16.mxu0 %v7161_v29  ;;  %5139 = vmatprep.subr.bf16.mxu1 %v7161_v29  ;;  %v4776_v29 = vsel %vm1934_vm2, %v8269_v37, %v4775_v3  ;;  %v7180_v3 = vld [vmem:[%s7622_s26 + $0x720] ss:$8 sps:$4 sm:$0xff]  }
 0x204   : > { %v4758_v37 = vrot.slane %v8722_v62, 1  ;;  %v7204_v62 = vld [vmem:[%s7622_s26 + $0x7a0] ss:$8 sps:$4 sm:$0xff]  }
 0x206   : > { %2338 = vmatpush1.bf16.msra.mxu0 %v7159_v26  ;;  %5140 = vmatpush1.bf16.msra.mxu1 %v7159_v26  ;;  %v8718_v26 = vshrl.u32 %v7810_v44, 16 }
 0x207   : > { %2339 = vmatprep.subr.bf16.mxu0 %v7164_v58  ;;  %5141 = vmatprep.subr.bf16.mxu1 %v7164_v58 }
 0x208   : > { %v1956_v58 = vrot.slane %v8718_v26, 1  ;;  %v7192_v26 = vld [vmem:[%s7622_s26 + $0x760] ss:$8 sps:$4 sm:$0xff]  }
 0x20a   : > { %2340 = vmatpush1.bf16.msra.mxu0 %v7162_v34  ;;  %5142 = vmatpush1.bf16.msra.mxu1 %v7162_v34  ;;  %v8719_v34 = vshll.u32 %v7810_v44, 16 }
 0x20b   : > { %2341 = vmatprep.subr.bf16.mxu0 %v7167_v35  ;;  %5143 = vmatprep.subr.bf16.mxu1 %v7167_v35  ;;  %v8720_v35 = vshrl.u32 %v7840_v60, 16 }
 0x20c   : > { %v1957_v40 = vrot.slane %v8719_v34, 2  ;;  %v7195_v34 = vld [vmem:[%s7622_s26 + $0x770] ss:$8 sps:$4 sm:$0xff]  }
 0x20e   : > { %2342 = vmatpush1.bf16.msra.mxu0 %v7165_v39  ;;  %5144 = vmatpush1.bf16.msra.mxu1 %v7165_v39  ;;  %v1959_v39 = vrot.slane %v8720_v35, 1  ;;  %v1958_v18 = vor.u32 %v1957_v40, %v1956_v58  ;;  %v7197_v58 = vld [vmem:[%s7622_s26 + $0x774] ss:$8 sps:$4 sm:$0xff]   ;;  %v7200_v40 = vld [vmem:[%s7622_s26 + $0x784] ss:$8 sps:$4 sm:$0xff]  }
 0x20f   : > { %2343 = vmatprep.subr.bf16.mxu0 %v7170_v30  ;;  %5145 = vmatprep.subr.bf16.mxu1 %v7170_v30  ;;  %v8721_v30 = vshll.u32 %v7840_v60, 16  ;;  %v7198_v35 = vld [vmem:[%s7622_s26 + $0x780] ss:$8 sps:$4 sm:$0xff]  }
 0x211   : > { %v1960_v6 = vrot.slane %v8721_v30, 2  ;;  %v7201_v30 = vld [vmem:[%s7622_s26 + $0x790] ss:$8 sps:$4 sm:$0xff]  }
 0x212   : > { %2344 = vmatpush1.bf16.msra.mxu0 %v7168_v52  ;;  %5146 = vmatpush1.bf16.msra.mxu1 %v7168_v52  ;;  %v4759_v52 = vrot.slane %v8723_v54, 2  ;;  %v7207_v54 = vld [vmem:[%s7622_s26 + $0x7b0] ss:$8 sps:$4 sm:$0xff]  }
 0x213   : > { %2345 = vmatprep.subr.bf16.mxu0 %v7173_v27  ;;  %5147 = vmatprep.subr.bf16.mxu1 %v7173_v27  ;;  %v8724_v27 = vshrl.u32 %v7844_v1, 16  ;;  %v8343_v4 = vor.u32 %v1960_v6, %v1959_v39  ;;  %v7203_v39 = vld [vmem:[%s7622_s26 + $0x794] ss:$8 sps:$4 sm:$0xff]   ;;  %v7206_v6 = vld [vmem:[%s7622_s26 + $0x7a4] ss:$8 sps:$4 sm:$0xff]  }
 0x215   : > { %v4761_v63 = vrot.slane %v8724_v27, 1  ;;  %v7210_v27 = vld [vmem:[%s7622_s26 + $0x7c0] ss:$8 sps:$4 sm:$0xff]  }
 0x216   : > { %2346 = vmatpush1.bf16.msra.mxu0 %v7171_v19  ;;  %5148 = vmatpush1.bf16.msra.mxu1 %v7171_v19  ;;  %v1967_v19 = vor.u32 %v1966_v41, %v1965_v15  ;;  %v7185_v41 = vld [vmem:[%s7622_s26 + $0x734] ss:$8 sps:$4 sm:$0xff]  }
 0x217   : > { %2368 = vmatprep.subr.bf16.mxu0 %v7176_v7  ;;  %5170 = vmatprep.subr.bf16.mxu1 %v7176_v7  ;;  %v4760_v7 = vor.u32 %v4759_v52, %v4758_v37  ;;  %v8345_v56 = vor.u32 %v4762_v33, %v4761_v63  ;;  %v7209_v37 = vld [vmem:[%s7622_s26 + $0x7b4] ss:$8 sps:$4 sm:$0xff]   ;;  %v7212_v52 = vld [vmem:[%s7622_s26 + $0x7c4] ss:$8 sps:$4 sm:$0xff]   ;;  %v1952_v33 = vrot.slane %v455_v8, 1  ;;  %v8730_v8 = vshll.u32 %v7939_v43, 16 }
 0x218   : > { %v7215_v63 = vld [vmem:[%s7622_s26 + $0x7d4] ss:$8 sps:$4 sm:$0xff]  }
 0x219   : > { %2348 = vmatmul.mubr.bf16.vlgmr.msra.gmra.mrb[0].mxu0 %v8185_v25  ;;  %5150 = vmatmul.mubr.bf16.vlgmr.msra.gmra.mrb[0].mxu1 %v8189_v12  ;;  %v4769_v25 = vor.u32 %v4768_v9, %v4767_v2  ;;  %v7182_v12 = vld [vmem:[%s7622_s26 + $0x724] ss:$8 sps:$4 sm:$0xff]   ;;  %v1962_v2 = vsel %vm1934_vm2, %v1958_v18, %v8343_v4  ;;  %v4764_v13 = vsel %vm1934_vm2, %v4760_v7, %v8345_v56  ;;  %v7186_v9 = vld [vmem:[%s7622_s26 + $0x740] ss:$8 sps:$4 sm:$0xff]   ;;  %v8727_v18 = vshll.u32 %v7931_v32, 16 }
 0x21a   : > { %2369 = vmatpush1.bf16.msra.mxu0 %v7174_v38  ;;  %5171 = vmatpush1.bf16.msra.mxu1 %v7174_v38  ;;  %v1968_v38 = vsel %vm1934_vm2, %v8167_v51, %v1967_v19  ;;  %v7183_v51 = vld [vmem:[%s7622_s26 + $0x730] ss:$8 sps:$4 sm:$0xff]   ;;  %v7218_v19 = vld [vmem:[%s7622_s26 + $0x7e4] ss:$8 sps:$4 sm:$0xff]  }
 0x21b   : > { %2370 = vmatprep.subr.bf16.mxu0 %v7179_v21  ;;  %5172 = vmatprep.subr.bf16.mxu1 %v7179_v21  ;;  %v4770_v15 = vsel %vm1934_vm2, %v8171_v0, %v4769_v25  ;;  %v7188_v0 = vld [vmem:[%s7622_s26 + $0x744] ss:$8 sps:$4 sm:$0xff]   ;;  %v7191_v21 = vld [vmem:[%s7622_s26 + $0x754] ss:$8 sps:$4 sm:$0xff]   ;;  %v8726_v25 = vshrl.u32 %v7931_v32, 16  ;;  %v1950_v7 = vrot.slane %v8727_v18, 2 }
 0x21c   : > { %2357 = vmatprep.mubr.bf16.mxu0 %v1974_v22  ;;  %5159 = vmatprep.mubr.bf16.mxu1 %v4776_v29  ;;  %v7189_v22 = vld [vmem:[%s7622_s26 + $0x750] ss:$8 sps:$4 sm:$0xff]   ;;  %v7194_v29 = vld [vmem:[%s7622_s26 + $0x764] ss:$8 sps:$4 sm:$0xff]   ;;  %v4780_v18 = vrot.slane %v3263_v57, 2 }
 0x21d   : > { %v7230_v57 = vld [vmem:[%s7622_s26 + $0x824] ss:$8 sps:$4 sm:$0xff]  }
 0x21e   : > { %2371 = vmatpush1.bf16.msra.mxu0 %v7177_v24  ;;  %5173 = vmatpush1.bf16.msra.mxu1 %v7177_v24  ;;  %v4754_v24 = vrot.slane %v3259_v45, 1  ;;  %v8731_v45 = vshll.u32 %v7946_v53, 16 }
 0x21f   : > { %2372 = vmatprep.subr.bf16.mxu0 %v7182_v12  ;;  %5174 = vmatprep.subr.bf16.mxu1 %v7182_v12  ;;  %v1949_v12 = vrot.slane %v8726_v25, 1  ;;  %v1978_v25 = vrot.slane %v459_v23, 2  ;;  %v7225_v23 = vld [vmem:[%s7622_s26 + $0x810] ss:$8 sps:$4 sm:$0xff]  }
 0x221   : > { %2358 = vmatmul.mubr.bf16.gmra.mrb[4].mxu0 %v1968_v38  ;;  %5160 = vmatmul.mubr.bf16.gmra.mrb[4].mxu1 %v4770_v15  ;;  %v8729_v15 = vshrl.u32 %v7939_v43, 16 }
 0x222   : > { %2373 = vmatpush1.bf16.msra.mxu0 %v7180_v3  ;;  %5175 = vmatpush1.bf16.msra.mxu1 %v7180_v3  ;;  %v8728_v3 = vshll.u32 %v7942_v47, 16 }
 0x223   : > { %2374 = vmatprep.subr.bf16.mxu0 %v7185_v41  ;;  %5176 = vmatprep.subr.bf16.mxu1 %v7185_v41  ;;  %v4751_v41 = vrot.slane %v8729_v15, 1 }
 0x224   : > { %2400 = vmatprep.mubr.bf16.mxu0 %v1962_v2  ;;  %5202 = vmatprep.mubr.bf16.mxu1 %v4764_v13  ;;  %v1953_v38 = vrot.slane %v8728_v3, 2  ;;  %v4752_v2 = vrot.slane %v8730_v8, 2  ;;  %v4755_v13 = vrot.slane %v8731_v45, 2  ;;  %v2497_v8 = vrot.slane %v7661_v17, 2  ;;  %v7228_v45 = vld [vmem:[%s7622_s26 + $0x820] ss:$8 sps:$4 sm:$0xff]  }
 0x225   : > { %v7233_v17 = vld [vmem:[%s7622_s26 + $0x834] ss:$8 sps:$4 sm:$0xff]  }
 0x226   : > { %2375 = vmatpush1.bf16.msra.mxu0 %v7183_v51  ;;  %5177 = vmatpush1.bf16.msra.mxu1 %v7183_v51  ;;  %v1981_v51 = vshrl.u32 %v7963_v36, 16 }
 0x227   : > { %2376 = vmatprep.subr.bf16.mxu0 %v7188_v0  ;;  %5178 = vmatprep.subr.bf16.mxu1 %v7188_v0  ;;  %v4783_v0 = vshrl.u32 %v7965_v42, 16 }
 0x22a   : > { %2377 = vmatpush1.bf16.msra.mxu0 %v7186_v9  ;;  %5179 = vmatpush1.bf16.msra.mxu1 %v7186_v9  ;;  %v7216_v9 = vld [vmem:[%s7622_s26 + $0x7e0] ss:$8 sps:$4 sm:$0xff]  }
 0x22b   : > { %2378 = vmatprep.subr.bf16.mxu0 %v7191_v21  ;;  %5180 = vmatprep.subr.bf16.mxu1 %v7191_v21  ;;  %v7221_v21 = vld [vmem:[%s7622_s26 + $0x7f4] ss:$8 sps:$4 sm:$0xff]  }
 0x22e   : > { %2379 = vmatpush1.bf16.msra.mxu0 %v7189_v22  ;;  %5181 = vmatpush1.bf16.msra.mxu1 %v7189_v22  ;;  %v1951_v22 = vor.u32 %v1950_v7, %v1949_v12  ;;  %v7227_v7 = vld [vmem:[%s7622_s26 + $0x814] ss:$8 sps:$4 sm:$0xff]  }
 0x22f   : > { %2380 = vmatprep.subr.bf16.mxu0 %v7194_v29  ;;  %5182 = vmatprep.subr.bf16.mxu1 %v7194_v29  ;;  %v1954_v29 = vor.u32 %v1953_v38, %v1952_v33 }
 0x232   : > { %2381 = vmatpush1.bf16.msra.mxu0 %v7192_v26  ;;  %5183 = vmatpush1.bf16.msra.mxu1 %v7192_v26  ;;  %v4753_v26 = vor.u32 %v4752_v2, %v4751_v41  ;;  %v2498_v2 = vrot.slane %v7665_v20, 2  ;;  %v2503_v20 = vrot.slane %v7810_v44, 2 }
 0x233   : > { %2382 = vmatprep.subr.bf16.mxu0 %v7197_v58  ;;  %5184 = vmatprep.subr.bf16.mxu1 %v7197_v58  ;;  %v4756_v58 = vor.u32 %v4755_v13, %v4754_v24  ;;  %v7222_v24 = vld [vmem:[%s7622_s26 + $0x800] ss:$8 sps:$4 sm:$0xff]  }
 0x236   : > { %2383 = vmatpush1.bf16.msra.mxu0 %v7195_v34  ;;  %5185 = vmatpush1.bf16.msra.mxu1 %v7195_v34  ;;  %v1983_v34 = vrot.slane %v1981_v51, 1 }
 0x237   : > { %2384 = vmatprep.subr.bf16.mxu0 %v7200_v40  ;;  %5186 = vmatprep.subr.bf16.mxu1 %v7200_v40  ;;  %v8732_v40 = vshll.u32 %v7963_v36, 16 }
 0x23a   : > { %2385 = vmatpush1.bf16.msra.mxu0 %v7198_v35  ;;  %5187 = vmatpush1.bf16.msra.mxu1 %v7198_v35  ;;  %v1984_v35 = vrot.slane %v8732_v40, 2  ;;  %v7245_v40 = vld [vmem:[%s7622_s26 + $0x874] ss:$8 sps:$4 sm:$0xff]  }
 0x23b   : > { %2386 = vmatprep.subr.bf16.mxu0 %v7203_v39  ;;  %5188 = vmatprep.subr.bf16.mxu1 %v7203_v39  ;;  %v4785_v39 = vrot.slane %v4783_v0, 1 }
 0x23e   : > { %2387 = vmatpush1.bf16.msra.mxu0 %v7201_v30  ;;  %5189 = vmatpush1.bf16.msra.mxu1 %v7201_v30  ;;  %v8733_v30 = vshll.u32 %v7965_v42, 16 }
 0x23f   : > { %2388 = vmatprep.subr.bf16.mxu0 %v7206_v6  ;;  %5190 = vmatprep.subr.bf16.mxu1 %v7206_v6 }
 0x240   : > { %v4786_v6 = vrot.slane %v8733_v30, 2  ;;  %v7246_v30 = vld [vmem:[%s7622_s26 + $0x880] ss:$8 sps:$4 sm:$0xff]  }
 0x242   : > { %2389 = vmatpush1.bf16.msra.mxu0 %v7204_v62  ;;  %5191 = vmatpush1.bf16.msra.mxu1 %v7204_v62  ;;  %v7219_v62 = vld [vmem:[%s7622_s26 + $0x7f0] ss:$8 sps:$4 sm:$0xff]   ;;  %v4787_v33 = vor.u32 %v4786_v6, %v4785_v39  ;;  %v7248_v39 = vld [vmem:[%s7622_s26 + $0x884] ss:$8 sps:$4 sm:$0xff]   ;;  %v7251_v6 = vld [vmem:[%s7622_s26 + $0x894] ss:$8 sps:$4 sm:$0xff]  }
 0x243   : > { %2390 = vmatprep.subr.bf16.mxu0 %v7209_v37  ;;  %5192 = vmatprep.subr.bf16.mxu1 %v7209_v37  ;;  %v1975_v37 = vshrl.u32 %v7989_v16, 16 }
 0x244   : > { %v4788_v38 = vsel %vm1934_vm2, %v8345_v56, %v4787_v33  ;;  %v5299_v56 = vrot.slane %v7687_v31, 2  ;;  %v7263_v33 = vld [vmem:[%s7622_s26 + $0x8d4] ss:$8 sps:$4 sm:$0xff]   ;;  %v2504_v31 = vrot.slane %v7840_v60, 2 }
 0x246   : > { %2391 = vmatpush1.bf16.msra.mxu0 %v7207_v54  ;;  %5193 = vmatpush1.bf16.msra.mxu1 %v7207_v54  ;;  %v4777_v54 = vshrl.u32 %v7991_v14, 16  ;;  %v2505_v44 = vsel %vm2493_vm3, %v2503_v20, %v2504_v31 }
 0x247   : > { %2392 = vmatprep.subr.bf16.mxu0 %v7212_v52  ;;  %5194 = vmatprep.subr.bf16.mxu1 %v7212_v52  ;;  %v7224_v52 = vld [vmem:[%s7622_s26 + $0x804] ss:$8 sps:$4 sm:$0xff]  }
 0x248   : > { %v4779_v12 = vrot.slane %v4777_v54, 1  ;;  %v7252_v54 = vld [vmem:[%s7622_s26 + $0x8a0] ss:$8 sps:$4 sm:$0xff]  }
 0x24a   : > { %2393 = vmatpush1.bf16.msra.mxu0 %v7210_v27  ;;  %5195 = vmatpush1.bf16.msra.mxu1 %v7210_v27  ;;  %v1955_v27 = vsel %vm1934_vm2, %v1951_v22, %v1954_v29  ;;  %v4781_v41 = vor.u32 %v4780_v18, %v4779_v12  ;;  %v7234_v22 = vld [vmem:[%s7622_s26 + $0x840] ss:$8 sps:$4 sm:$0xff]   ;;  %v7269_v12 = vld [vmem:[%s7622_s26 + $0x8f4] ss:$8 sps:$4 sm:$0xff]   ;;  %v7267_v18 = vld [vmem:[%s7622_s26 + $0x8f0] ss:$8 sps:$4 sm:$0xff]  }
 0x24b   : > { %2394 = vmatprep.subr.bf16.mxu0 %v7215_v63  ;;  %5196 = vmatprep.subr.bf16.mxu1 %v7215_v63  ;;  %v4757_v63 = vsel %vm1934_vm2, %v4753_v26, %v4756_v58  ;;  %v7237_v26 = vld [vmem:[%s7622_s26 + $0x850] ss:$8 sps:$4 sm:$0xff]  }
 0x24c   : > { %v4782_v51 = vsel %vm1934_vm2, %v4756_v58, %v4781_v41  ;;  %v7242_v58 = vld [vmem:[%s7622_s26 + $0x864] ss:$8 sps:$4 sm:$0xff]   ;;  %v2508_v41 = vrot.slane %v7767_v10, 2 }
 0x24e   : > { %2395 = vmatpush1.bf16.msra.mxu0 %v7213_v48  ;;  %5197 = vmatpush1.bf16.msra.mxu1 %v7213_v48  ;;  %v1985_v48 = vor.u32 %v1984_v35, %v1983_v34  ;;  %v7240_v34 = vld [vmem:[%s7622_s26 + $0x860] ss:$8 sps:$4 sm:$0xff]   ;;  %v7243_v35 = vld [vmem:[%s7622_s26 + $0x870] ss:$8 sps:$4 sm:$0xff]  }
 0x24f   : > { %2396 = vmatprep.subr.bf16.mxu0 %v7218_v19  ;;  %5198 = vmatprep.subr.bf16.mxu1 %v7218_v19  ;;  %v1977_v19 = vrot.slane %v1975_v37, 1  ;;  %v7254_v37 = vld [vmem:[%s7622_s26 + $0x8a4] ss:$8 sps:$4 sm:$0xff]  }
 0x250   : > { %v1986_v3 = vsel %vm1934_vm2, %v8343_v4, %v1985_v48  ;;  %v5298_v4 = vrot.slane %v7682_v28, 2  ;;  %v2499_v28 = vsel %vm2493_vm3, %v2497_v8, %v2498_v2  ;;  %v7258_v48 = vld [vmem:[%s7622_s26 + $0x8c0] ss:$8 sps:$4 sm:$0xff]  }
 0x251   : > { %v1979_v15 = vor.u32 %v1978_v25, %v1977_v19  ;;  %v7266_v19 = vld [vmem:[%s7622_s26 + $0x8e4] ss:$8 sps:$4 sm:$0xff]   ;;  %v7264_v25 = vld [vmem:[%s7622_s26 + $0x8e0] ss:$8 sps:$4 sm:$0xff]  }
 0x252   : > { %2397 = vmatpush1.bf16.msra.mxu0 %v7216_v9  ;;  %5199 = vmatpush1.bf16.msra.mxu1 %v7216_v9  ;;  %v5300_v0 = vsel %vm2493_vm3, %v5298_v4, %v5299_v56  ;;  %v7231_v9 = vld [vmem:[%s7622_s26 + $0x830] ss:$8 sps:$4 sm:$0xff]   ;;  %v7270_v8 = vld [vmem:[%s7622_s26 + $0x900] ss:$8 sps:$4 sm:$0xff]   ;;  %v2506_v4 = vrot.slane %v7821_v49, 2 }
 0x253   : > { %2398 = vmatprep.subr.bf16.mxu0 %v7221_v21  ;;  %5200 = vmatprep.subr.bf16.mxu1 %v7221_v21  ;;  %v1980_v13 = vsel %vm1934_vm2, %v1954_v29, %v1979_v15  ;;  %v7236_v21 = vld [vmem:[%s7622_s26 + $0x844] ss:$8 sps:$4 sm:$0xff]   ;;  %v7239_v29 = vld [vmem:[%s7622_s26 + $0x854] ss:$8 sps:$4 sm:$0xff]   ;;  %v7276_v49 = vld [vmem:[%s7622_s26 + $0x920] ss:$8 sps:$4 sm:$0xff]  }
 0x254   : > { %v7272_v15 = vld [vmem:[%s7622_s26 + $0x904] ss:$8 sps:$4 sm:$0xff]  }
 0x256   : > { %2399 = vmatpush1.bf16.msra.mxu0 %v7219_v62  ;;  %5201 = vmatpush1.bf16.msra.mxu1 %v7219_v62  ;;  %v7249_v62 = vld [vmem:[%s7622_s26 + $0x890] ss:$8 sps:$4 sm:$0xff]  }
 0x257   : > { %2842 = vmatprep.subr.bf16.mxu0 %v7224_v52  ;;  %5643 = vmatprep.subr.bf16.mxu1 %v7224_v52  ;;  %v7257_v52 = vld [vmem:[%s7622_s26 + $0x8b4] ss:$8 sps:$4 sm:$0xff]  }
 0x259   : > { %2401 = vmatmul.mubr.bf16.vlgmr.msra.gmra.mrb[0].mxu0 %v1955_v27  ;;  %5203 = vmatmul.mubr.bf16.vlgmr.msra.gmra.mrb[0].mxu1 %v4757_v63  ;;  %v7255_v27 = vld [vmem:[%s7622_s26 + $0x8b0] ss:$8 sps:$4 sm:$0xff]   ;;  %v7260_v63 = vld [vmem:[%s7622_s26 + $0x8c4] ss:$8 sps:$4 sm:$0xff]  }
 0x25a   : > { %2843 = vmatpush1.bf16.msra.mxu0 %v7222_v24  ;;  %5644 = vmatpush1.bf16.msra.mxu1 %v7222_v24  ;;  %v7261_v24 = vld [vmem:[%s7622_s26 + $0x8d0] ss:$8 sps:$4 sm:$0xff]  }
 0x25b   : > { %2844 = vmatprep.subr.bf16.mxu0 %v7227_v7  ;;  %5645 = vmatprep.subr.bf16.mxu1 %v7227_v7  ;;  %v2494_v7 = vrot.slane %v7731_v55, 2 }
 0x25c   : > { %2410 = vmatprep.mubr.bf16.mxu0 %v1986_v3  ;;  %5212 = vmatprep.mubr.bf16.mxu1 %v4788_v38  ;;  %v2495_v3 = vrot.slane %v7743_v61, 2  ;;  %v5295_v38 = vrot.slane %v7740_v59, 2  ;;  %v7275_v59 = vld [vmem:[%s7622_s26 + $0x914] ss:$8 sps:$4 sm:$0xff]  }
 0x25e   : > { %2845 = vmatpush1.bf16.msra.mxu0 %v7225_v23  ;;  %5646 = vmatpush1.bf16.msra.mxu1 %v7225_v23  ;;  %v5296_v23 = vrot.slane %v7760_v5, 2  ;;  %v2496_v55 = vsel %vm2493_vm3, %v2494_v7, %v2495_v3  ;;  %v2509_v5 = vsel %vm2493_vm3, %v2498_v2, %v2508_v41  ;;  %v5304_v2 = vrot.slane %v7815_v46, 2 }
 0x25f   : > { %2846 = vmatprep.subr.bf16.mxu0 %v7230_v57  ;;  %5647 = vmatprep.subr.bf16.mxu1 %v7230_v57  ;;  %v5309_v57 = vrot.slane %v7769_v11, 2  ;;  %v7273_v11 = vld [vmem:[%s7622_s26 + $0x910] ss:$8 sps:$4 sm:$0xff]   ;;  %v5301_v7 = vrot.slane %v7939_v43, 2 }
 0x260   : > { %v5297_v61 = vsel %vm2493_vm3, %v5295_v38, %v5296_v23  ;;  %v2512_v38 = vrot.slane %v7963_v36, 2 }
 0x261   : > { %2411 = vmatmul.mubr.bf16.gmra.mrb[4].mxu0 %v1980_v13  ;;  %5213 = vmatmul.mubr.bf16.gmra.mrb[4].mxu1 %v4782_v51  ;;  %v5310_v10 = vsel %vm2493_vm3, %v5299_v56, %v5309_v57  ;;  %v7278_v13 = vld [vmem:[%s7622_s26 + $0x924] ss:$8 sps:$4 sm:$0xff]   ;;  %v5305_v56 = vrot.slane %v7844_v1, 2  ;;  %v2958_v1 = vlaneseq }
 0x262   : > { %2847 = vmatpush1.bf16.msra.mxu0 %v7228_v45  ;;  %5648 = vmatpush1.bf16.msra.mxu1 %v7228_v45  ;;  %v5307_v45 = vrot.slane %v7823_v50, 2  ;;  %v2507_v50 = vsel %vm2493_vm3, %v2495_v3, %v2506_v4  ;;  %v5302_v3 = vrot.slane %v7946_v53, 2  ;;  %v5311_v53 = vrot.slane %v7991_v14, 2  ;;  %v2956_v57 = vld [vmem:[%s7630_s20] ss:$4 sm:$0x3] }
 0x263   : > { %2848 = vmatprep.subr.bf16.mxu0 %v7233_v17  ;;  %5649 = vmatprep.subr.bf16.mxu1 %v7233_v17  ;;  %v7281_v17 = vld [vmem:[%s7622_s26 + $0x934] ss:$8 sps:$4 sm:$0xff]   ;;  %v5306_v46 = vsel %vm2493_vm3, %v5304_v2, %v5305_v56  ;;  %v6276_v14 = vld [vmem:[%s7630_s20 + $0x2] ss:$4 sm:$0x3] }
 0x264   : > { %2874 = vmatprep.mubr.bf16.mxu0 %v2499_v28  ;;  %5675 = vmatprep.mubr.bf16.mxu1 %v5300_v0  ;;  %v5308_v51 = vsel %vm2493_vm3, %v5296_v23, %v5307_v45  ;;  %v7279_v28 = vld [vmem:[%s7622_s26 + $0x930] ss:$8 sps:$4 sm:$0xff]   ;;  %v7284_v0 = vld [vmem:[%s7622_s26 + $0x944] ss:$8 sps:$4 sm:$0xff]   ;;  %v5313_v23 = vrot.slane %v7965_v42, 2  ;;  %v5303_v41 = vsel %vm2493_vm3, %v5301_v7, %v5302_v3  ;;  %v5312_v36 = vsel %vm2493_vm3, %v5302_v3, %v5311_v53 }
 0x265   : > { %v2959_v42 = vshrl.u32 %v2958_v1, 7 }
 0x266   : > { %2849 = vmatpush1.bf16.msra.mxu0 %v7231_v9  ;;  %5650 = vmatpush1.bf16.msra.mxu1 %v7231_v9  ;;  %v7282_v9 = vld [vmem:[%s7622_s26 + $0x940] ss:$8 sps:$4 sm:$0xff]   ;;  %v5314_v43 = vsel %vm2493_vm3, %v5305_v56, %v5313_v23 }
 0x267   : > { %2850 = vmatprep.subr.bf16.mxu0 %v7236_v21  ;;  %5651 = vmatprep.subr.bf16.mxu1 %v7236_v21  ;;  %v7287_v21 = vld [vmem:[%s7622_s26 + $0x954] ss:$8 sps:$4 sm:$0xff]  }
 0x26a   : > { %2851 = vmatpush1.bf16.msra.mxu0 %v7234_v22  ;;  %5652 = vmatpush1.bf16.msra.mxu1 %v7234_v22  ;;  %v7285_v22 = vld [vmem:[%s7622_s26 + $0x950] ss:$8 sps:$4 sm:$0xff]  }
 0x26b   : > { %2852 = vmatprep.subr.bf16.mxu0 %v7239_v29  ;;  %5653 = vmatprep.subr.bf16.mxu1 %v7239_v29  ;;  %v7290_v29 = vld [vmem:[%s7622_s26 + $0x964] ss:$8 sps:$4 sm:$0xff]  }
 0x26e   : > { %2853 = vmatpush1.bf16.msra.mxu0 %v7237_v26  ;;  %5654 = vmatpush1.bf16.msra.mxu1 %v7237_v26  ;;  %v7288_v26 = vld [vmem:[%s7622_s26 + $0x960] ss:$8 sps:$4 sm:$0xff]  }
 0x26f   : > { %2854 = vmatprep.subr.bf16.mxu0 %v7242_v58  ;;  %5655 = vmatprep.subr.bf16.mxu1 %v7242_v58  ;;  %v7293_v58 = vld [vmem:[%s7622_s26 + $0x974] ss:$8 sps:$4 sm:$0xff]  }
 0x272   : > { %2855 = vmatpush1.bf16.msra.mxu0 %v7240_v34  ;;  %5656 = vmatpush1.bf16.msra.mxu1 %v7240_v34  ;;  %v7291_v34 = vld [vmem:[%s7622_s26 + $0x970] ss:$8 sps:$4 sm:$0xff]  }
 0x273   : > { %2856 = vmatprep.subr.bf16.mxu0 %v7245_v40  ;;  %5657 = vmatprep.subr.bf16.mxu1 %v7245_v40  ;;  %v7296_v40 = vld [vmem:[%s7622_s26 + $0x984] ss:$8 sps:$4 sm:$0xff]  }
 0x276   : > { %2857 = vmatpush1.bf16.msra.mxu0 %v7243_v35  ;;  %5658 = vmatpush1.bf16.msra.mxu1 %v7243_v35  ;;  %v7294_v35 = vld [vmem:[%s7622_s26 + $0x980] ss:$8 sps:$4 sm:$0xff]  }
 0x277   : > { %2858 = vmatprep.subr.bf16.mxu0 %v7248_v39  ;;  %5659 = vmatprep.subr.bf16.mxu1 %v7248_v39  ;;  %v7299_v39 = vld [vmem:[%s7622_s26 + $0x994] ss:$8 sps:$4 sm:$0xff]  }
 0x27a   : > { %2859 = vmatpush1.bf16.msra.mxu0 %v7246_v30  ;;  %5660 = vmatpush1.bf16.msra.mxu1 %v7246_v30  ;;  %v7297_v30 = vld [vmem:[%s7622_s26 + $0x990] ss:$8 sps:$4 sm:$0xff]  }
 0x27b   : > { %2860 = vmatprep.subr.bf16.mxu0 %v7251_v6  ;;  %5661 = vmatprep.subr.bf16.mxu1 %v7251_v6  ;;  %v7302_v6 = vld [vmem:[%s7622_s26 + $0x9a4] ss:$8 sps:$4 sm:$0xff]  }
 0x27e   : > { %2861 = vmatpush1.bf16.msra.mxu0 %v7249_v62  ;;  %5662 = vmatpush1.bf16.msra.mxu1 %v7249_v62  ;;  %v7300_v62 = vld [vmem:[%s7622_s26 + $0x9a0] ss:$8 sps:$4 sm:$0xff]  }
 0x27f   : > { %2862 = vmatprep.subr.bf16.mxu0 %v7254_v37  ;;  %5663 = vmatprep.subr.bf16.mxu1 %v7254_v37  ;;  %v7305_v37 = vld [vmem:[%s7622_s26 + $0x9b4] ss:$8 sps:$4 sm:$0xff]  }
 0x282   : > { %2863 = vmatpush1.bf16.msra.mxu0 %v7252_v54  ;;  %5664 = vmatpush1.bf16.msra.mxu1 %v7252_v54  ;;  %v7303_v54 = vld [vmem:[%s7622_s26 + $0x9b0] ss:$8 sps:$4 sm:$0xff]  }
 0x283   : > { %2864 = vmatprep.subr.bf16.mxu0 %v7257_v52  ;;  %5665 = vmatprep.subr.bf16.mxu1 %v7257_v52  ;;  %v7308_v52 = vld [vmem:[%s7622_s26 + $0x9c4] ss:$8 sps:$4 sm:$0xff]  }
 0x286   : > { %2865 = vmatpush1.bf16.msra.mxu0 %v7255_v27  ;;  %5666 = vmatpush1.bf16.msra.mxu1 %v7255_v27  ;;  %v7306_v27 = vld [vmem:[%s7622_s26 + $0x9c0] ss:$8 sps:$4 sm:$0xff]  }
 0x287   : > { %2866 = vmatprep.subr.bf16.mxu0 %v7260_v63  ;;  %5667 = vmatprep.subr.bf16.mxu1 %v7260_v63  ;;  %v7311_v63 = vld [vmem:[%s7622_s26 + $0x9d4] ss:$8 sps:$4 sm:$0xff]  }
 0x28a   : > { %2867 = vmatpush1.bf16.msra.mxu0 %v7258_v48  ;;  %5668 = vmatpush1.bf16.msra.mxu1 %v7258_v48  ;;  %v7309_v48 = vld [vmem:[%s7622_s26 + $0x9d0] ss:$8 sps:$4 sm:$0xff]  }
 0x28b   : > { %2868 = vmatprep.subr.bf16.mxu0 %v7263_v33  ;;  %5669 = vmatprep.subr.bf16.mxu1 %v7263_v33  ;;  %v7314_v33 = vld [vmem:[%s7622_s26 + $0x9e4] ss:$8 sps:$4 sm:$0xff]  }
 0x28e   : > { %2869 = vmatpush1.bf16.msra.mxu0 %v7261_v24  ;;  %5670 = vmatpush1.bf16.msra.mxu1 %v7261_v24  ;;  %v7312_v24 = vld [vmem:[%s7622_s26 + $0x9e0] ss:$8 sps:$4 sm:$0xff]  }
 0x28f   : > { %2870 = vmatprep.subr.bf16.mxu0 %v7266_v19  ;;  %5671 = vmatprep.subr.bf16.mxu1 %v7266_v19  ;;  %v7317_v19 = vld [vmem:[%s7622_s26 + $0x9f4] ss:$8 sps:$4 sm:$0xff]  }
 0x292   : > { %2871 = vmatpush1.bf16.msra.mxu0 %v7264_v25  ;;  %5672 = vmatpush1.bf16.msra.mxu1 %v7264_v25  ;;  %v7315_v25 = vld [vmem:[%s7622_s26 + $0x9f0] ss:$8 sps:$4 sm:$0xff]   ;;  %s5954_s26 = sshll.u32 %s7618_s17, 7 }
 0x293   : > { %2872 = vmatprep.subr.bf16.mxu0 %v7269_v12  ;;  %5673 = vmatprep.subr.bf16.mxu1 %v7269_v12  ;;  %v2500_v12 = vrot.slane %v7931_v32, 2  ;;  %v2513_v32 = vsel %vm2493_vm3, %v2504_v31, %v2512_v38 }
 0x296   : > { %2873 = vmatpush1.bf16.msra.mxu0 %v7267_v18  ;;  %5674 = vmatpush1.bf16.msra.mxu1 %v7267_v18  ;;  %v2501_v18 = vrot.slane %v7942_v47, 2  ;;  %v2510_v47 = vrot.slane %v7989_v16, 2 }
 0x297   : > { %2895 = vmatprep.subr.bf16.mxu0 %v7272_v15  ;;  %5696 = vmatprep.subr.bf16.mxu1 %v7272_v15 }
 0x298   : > { %v2502_v15 = vsel %vm2493_vm3, %v2500_v12, %v2501_v18  ;;  %v2511_v60 = vsel %vm2493_vm3, %v2501_v18, %v2510_v47 }
 0x299   : > { %2875 = vmatmul.mubr.bf16.vlgmr.msra.gmra.mrb[0].mxu0 %v2496_v55  ;;  %5676 = vmatmul.mubr.bf16.vlgmr.msra.gmra.mrb[0].mxu1 %v5297_v61  ;;  %v5757_v55 = vld [vmem:[%s7630_s20] ss:$4 sm:$0x3]  ;;  %v2964_v61 = vsub.s32 1, %v2959_v42 }
 0x29a   : > { %2896 = vmatpush1.bf16.msra.mxu0 %v7270_v8  ;;  %5697 = vmatpush1.bf16.msra.mxu1 %v7270_v8  ;;  %v2960_v8 = vsub.s32 0, %v2959_v42 }
 0x29b   : > { %2897 = vmatprep.subr.bf16.mxu0 %v7275_v59  ;;  %5698 = vmatprep.subr.bf16.mxu1 %v7275_v59  ;;  %v8548_v4 = vrot.slane %v2956_v57, %v2964_v61  ;;  %v8550_v45 = vrot.slane %v5757_v55, %v2964_v61 }
 0x29c   : > { %2884 = vmatprep.mubr.bf16.mxu0 %v2509_v5  ;;  %5685 = vmatprep.mubr.bf16.mxu1 %v5310_v10  ;;  %v8540_v59 = vrot.slane %v2956_v57, %v2960_v8  ;;  %v6275_v5 = vld [vmem:[%s7630_s20 + $0x1] ss:$4 sm:$0x3]  ;;  %v8543_v16 = vrot.slane %v5757_v55, %v2960_v8 }
 0x29d   : > { %v6617_v10 = vld [vmem:[%s7630_s20 + $0x1] ss:$4 sm:$0x3]  ;;  %v8552_v20 = vrot.slane %v6275_v5, %v2960_v8  ;;  %v8556_v56 = vrot.slane %v6275_v5, %v2964_v61 }
 0x29e   : > { %2898 = vmatpush1.bf16.msra.mxu0 %v7273_v11  ;;  %5699 = vmatpush1.bf16.msra.mxu1 %v7273_v11  ;;  %v6618_v11 = vld [vmem:[%s7630_s20 + $0x2] ss:$4 sm:$0x3]  ;;  %v8554_v2 = vrot.slane %v6617_v10, %v2960_v8  ;;  %s8589_s20 = scalar_lea.vmem [#allocation7], %s5954_s26 }
 0x29f   : > { %2899 = vmatprep.subr.bf16.mxu0 %v7278_v13  ;;  %5700 = vmatprep.subr.bf16.mxu1 %v7278_v13  ;;  %s5848_s8 = sshll.u32 %s8589_s20, 4  ;;  %s8634_s8 = int_to_ptr.vmem [resolvable:$true] %s5848_s8 }
 0x2a0   : > { %s7378_s11 = scalar_lea.vmem %s8634_s8, 2048  ;;  %p7385_p7 = scmp.lt.s32.totalorder %s8634_s8, %s7383_s6 }
 0x2a1   : > { %2885 = vmatmul.mubr.bf16.gmra.mrb[4].mxu0 %v2507_v50  ;;  %5686 = vmatmul.mubr.bf16.gmra.mrb[4].mxu1 %v5308_v51  ;;  %v8561_v51 = vrot.slane %v6276_v14, %v2960_v8  ;;  %p7379_p13 = scmp.ne.s32.totalorder %s8634_s8, %s7378_s11  ;;  %p7386_p8 = scmp.lt.s32.totalorder %s7384_s4, %s7378_s11 }
 0x2a2   : > { %2900 = vmatpush1.bf16.msra.mxu0 %v7276_v49  ;;  %5701 = vmatpush1.bf16.msra.mxu1 %v7276_v49  ;;  %v8558_v49 = vrot.slane %v6617_v10, %v2964_v61 }
 0x2a3   : > { %2901 = vmatprep.subr.bf16.mxu0 %v7281_v17  ;;  %5702 = vmatprep.subr.bf16.mxu1 %v7281_v17  ;;  %p7380_p12 = pnand %p7379_p13, %p8734_p2  ;;  %p7387_p9 = por %p7386_p8, %p7385_p7 }
 0x2a4   : > { %2927 = vmatprep.mubr.bf16.mxu0 %v2505_v44  ;;  %5728 = vmatprep.mubr.bf16.mxu1 %v5306_v46  ;;  %v8564_v44 = vrot.slane %v6618_v11, %v2960_v8 }
 0x2a5   : > { %p7381_p5 = pneg %p7380_p12 }
 0x2a6   : > { %2902 = vmatpush1.bf16.msra.mxu0 %v7279_v28  ;;  %5703 = vmatpush1.bf16.msra.mxu1 %v7279_v28 }
 0x2a7   : > { %2903 = vmatprep.subr.bf16.mxu0 %v7284_v0  ;;  %5704 = vmatprep.subr.bf16.mxu1 %v7284_v0  ;;  %p7388_p11 = pnand %p7387_p9, %p7381_p5 }
 0x2aa   : > { %2904 = vmatpush1.bf16.msra.mxu0 %v7282_v9  ;;  %5705 = vmatpush1.bf16.msra.mxu1 %v7282_v9  ;;  %v8567_v9 = vrot.slane %v6276_v14, %v2964_v61 }
 0x2ab   : > { %2905 = vmatprep.subr.bf16.mxu0 %v7287_v21  ;;  %5706 = vmatprep.subr.bf16.mxu1 %v7287_v21 }
 0x2ae   : > { %2906 = vmatpush1.bf16.msra.mxu0 %v7285_v22  ;;  %5707 = vmatpush1.bf16.msra.mxu1 %v7285_v22  ;;  %v8570_v22 = vrot.slane %v6618_v11, %v2964_v61 }
 0x2af   : > { %2907 = vmatprep.subr.bf16.mxu0 %v7290_v29  ;;  %5708 = vmatprep.subr.bf16.mxu1 %v7290_v29 }
 0x2b2   : > { %2908 = vmatpush1.bf16.msra.mxu0 %v7288_v26  ;;  %5709 = vmatpush1.bf16.msra.mxu1 %v7288_v26 }
 0x2b3   : > { %2909 = vmatprep.subr.bf16.mxu0 %v7293_v58  ;;  %5710 = vmatprep.subr.bf16.mxu1 %v7293_v58 }
 0x2b6   : > { %2910 = vmatpush1.bf16.msra.mxu0 %v7291_v34  ;;  %5711 = vmatpush1.bf16.msra.mxu1 %v7291_v34 }
 0x2b7   : > { %2911 = vmatprep.subr.bf16.mxu0 %v7296_v40  ;;  %5712 = vmatprep.subr.bf16.mxu1 %v7296_v40 }
 0x2ba   : > { %2912 = vmatpush1.bf16.msra.mxu0 %v7294_v35  ;;  %5713 = vmatpush1.bf16.msra.mxu1 %v7294_v35 }
 0x2bb   : > { %2913 = vmatprep.subr.bf16.mxu0 %v7299_v39  ;;  %5714 = vmatprep.subr.bf16.mxu1 %v7299_v39 }
 0x2be   : > { %2914 = vmatpush1.bf16.msra.mxu0 %v7297_v30  ;;  %5715 = vmatpush1.bf16.msra.mxu1 %v7297_v30 }
 0x2bf   : > { %2915 = vmatprep.subr.bf16.mxu0 %v7302_v6  ;;  %5716 = vmatprep.subr.bf16.mxu1 %v7302_v6 }
 0x2c2   : > { %2916 = vmatpush1.bf16.msra.mxu0 %v7300_v62  ;;  %5717 = vmatpush1.bf16.msra.mxu1 %v7300_v62 }
 0x2c3   : > { %2917 = vmatprep.subr.bf16.mxu0 %v7305_v37  ;;  %5718 = vmatprep.subr.bf16.mxu1 %v7305_v37 }
 0x2c6   : > { %2918 = vmatpush1.bf16.msra.mxu0 %v7303_v54  ;;  %5719 = vmatpush1.bf16.msra.mxu1 %v7303_v54 }
 0x2c7   : > { %2919 = vmatprep.subr.bf16.mxu0 %v7308_v52  ;;  %5720 = vmatprep.subr.bf16.mxu1 %v7308_v52 }
 0x2ca   : > { %2920 = vmatpush1.bf16.msra.mxu0 %v7306_v27  ;;  %5721 = vmatpush1.bf16.msra.mxu1 %v7306_v27 }
 0x2cb   : > { %2921 = vmatprep.subr.bf16.mxu0 %v7311_v63  ;;  %5722 = vmatprep.subr.bf16.mxu1 %v7311_v63 }
 0x2ce   : > { %2922 = vmatpush1.bf16.msra.mxu0 %v7309_v48  ;;  %5723 = vmatpush1.bf16.msra.mxu1 %v7309_v48 }
 0x2cf   : > { %2923 = vmatprep.subr.bf16.mxu0 %v7314_v33  ;;  %5724 = vmatprep.subr.bf16.mxu1 %v7314_v33 }
 0x2d2   : > { %2924 = vmatpush1.bf16.msra.mxu0 %v7312_v24  ;;  %5725 = vmatpush1.bf16.msra.mxu1 %v7312_v24 }
 0x2d3   : > { %2925 = vmatprep.subr.bf16.mxu0 %v7317_v19  ;;  %5726 = vmatprep.subr.bf16.mxu1 %v7317_v19 }
 0x2d6   : > { %2926 = vmatpush1.bf16.msra.mxu0 %v7315_v25  ;;  %5727 = vmatpush1.bf16.msra.mxu1 %v7315_v25 }
 0x2d9   : > { %2928 = vmatmul.mubr.bf16.vlgmr.msra.gmra.mrb[0].mxu0 %v2502_v15  ;;  %5729 = vmatmul.mubr.bf16.vlgmr.msra.gmra.mrb[0].mxu1 %v5303_v41 }
 0x2da   : > { %2937 = vmatprep.mubr.bf16.mxu0 %v2513_v32  ;;  %5738 = vmatprep.mubr.bf16.mxu1 %v5314_v43 }
 0x2e1   : > { %2938 = vmatmul.mubr.bf16.gmra.mrb[4].mxu0 %v2511_v60  ;;  %5739 = vmatmul.mubr.bf16.gmra.mrb[4].mxu1 %v5312_v36 }
 0x3ac   : > { %v2929_v13 = vpop.f32.mrb[0].mxu0  ;;  %v5730_v31 = vpop.f32.mrb[0].mxu1 }
 0x3ad   : > { %v2968_v50 = vadd.f32 %v8540_v59, %v2929_v13  ;;  %v5769_v17 = vadd.f32 %v8543_v16, %v5730_v31  ;;  %v2931_v46 = vpop.f32.mrb[1].mxu0  ;;  %v5732_v28 = vpop.f32.mrb[1].mxu1 }
 0x3ae   : > { %v2969_v0 = vadd.f32 %v8548_v4, %v2931_v46  ;;  %v5770_v21 = vadd.f32 %v8550_v45, %v5732_v28  ;;  %v2933_v29 = vpop.f32.mrb[2].mxu0  ;;  %v5734_v26 = vpop.f32.mrb[2].mxu1 }
 0x3af   : > { %v2976_v58 = vmax.f32 %v2968_v50, 0.0  ;;  %v5777_v34 = vmax.f32 %v5769_v17, 0.0  ;;  %v2970_v40 = vadd.f32 %v8540_v59, %v2933_v29  ;;  %v5771_v35 = vadd.f32 %v8543_v16, %v5734_v26  ;;  %v2935_v39 = vpop.f32.mrb[3].mxu0  ;;  %v5736_v30 = vpop.f32.mrb[3].mxu1 }
 0x3b0   : > { %v2977_v6 = vmax.f32 %v2969_v0, 0.0  ;;  %v5778_v62 = vmax.f32 %v5770_v21, 0.0  ;;  %v2971_v37 = vadd.f32 %v8548_v4, %v2935_v39  ;;  %v5772_v54 = vadd.f32 %v8550_v45, %v5736_v30 }
 0x3b1   : > { %v2997_v52 = vmul.f32 %v8552_v20, %v2976_v58  ;;  %v5797_v27 = vmul.f32 %v8554_v2, %v5777_v34  ;;  %v2978_v63 = vmax.f32 %v2970_v40, 0.0  ;;  %v5779_v48 = vmax.f32 %v5771_v35, 0.0 }
 0x3b2   : > { %v2998_v33 = vmul.f32 %v8556_v56, %v2977_v6  ;;  %v5798_v24 = vmul.f32 %v8558_v49, %v5778_v62  ;;  %v2979_v19 = vmax.f32 %v2971_v37, 0.0  ;;  %v5780_v25 = vmax.f32 %v5772_v54, 0.0 }
 0x3b3   : > { %v3018_v12 = vadd.f32 %v8561_v51, %v2997_v52  ;;  %v5817_v18 = vadd.f32 %v8564_v44, %v5797_v27  ;;  %v2999_v7 = vmul.f32 %v8552_v20, %v2978_v63  ;;  %v5799_v3 = vmul.f32 %v8554_v2, %v5779_v48 }
 0x3b4   : > { %v3019_v38 = vadd.f32 %v8567_v9, %v2998_v33  ;;  %v5818_v23 = vadd.f32 %v8570_v22, %v5798_v24  ;;  %v3000_v15 = vmul.f32 %v8556_v56, %v2979_v19  ;;  %v5800_v41 = vmul.f32 %v8558_v49, %v5780_v25  ;;  %v2939_v32 = vpop.f32.mrb[4].mxu0  ;;  %v5740_v43 = vpop.f32.mrb[4].mxu1 }
 0x3b5   : > { %3026 = vst [vmem:[%s8589_s20] sm:$0xff] %v3018_v12  ;;  %6619 = vst [vmem:[%s8589_s20 + $0x40] sm:$0xff] %v5817_v18  ;;  %v3020_v47 = vadd.f32 %v8561_v51, %v2999_v7  ;;  %v5819_v53 = vadd.f32 %v8564_v44, %v5799_v3  ;;  %v2972_v60 = vadd.f32 %v8540_v59, %v2939_v32  ;;  %v2941_v1 = vpop.f32.mrb[5].mxu0  ;;  %v5742_v42 = vpop.f32.mrb[5].mxu1 }
 0x3b6   : > { %v5773_v36 = vadd.f32 %v8543_v16, %v5740_v43  ;;  %3027 = vst [vmem:[%s8589_s20 + $0x8] sm:$0xff] %v3019_v38  ;;  %6620 = vst [vmem:[%s8589_s20 + $0x48] sm:$0xff] %v5818_v23  ;;  %v3021_v57 = vadd.f32 %v8567_v9, %v3000_v15  ;;  %v5820_v8 = vadd.f32 %v8570_v22, %v5800_v41  ;;  %v2943_v5 = vpop.f32.mrb[6].mxu0  ;;  %v5744_v10 = vpop.f32.mrb[6].mxu1 }
 0x3b7   : > { %v2973_v55 = vadd.f32 %v8548_v4, %v2941_v1  ;;  %v5774_v61 = vadd.f32 %v8550_v45, %v5742_v42  ;;  %3028 = vst [vmem:[%s8589_s20 + $0x10] sm:$0xff] %v3020_v47  ;;  %6621 = vst [vmem:[%s8589_s20 + $0x50] sm:$0xff] %v5819_v53  ;;  %v2980_v14 = vmax.f32 %v2972_v60, 0.0  ;;  %v2974_v13 = vadd.f32 %v8540_v59, %v2943_v5  ;;  %v2945_v50 = vpop.f32.mrb[7].mxu0  ;;  %v5746_v17 = vpop.f32.mrb[7].mxu1 }
 0x3b8   : > { %v5781_v11 = vmax.f32 %v5773_v36, 0.0  ;;  %v5775_v31 = vadd.f32 %v8543_v16, %v5744_v10  ;;  %3029 = vst [vmem:[%s8589_s20 + $0x18] sm:$0xff] %v3021_v57  ;;  %6622 = vst [vmem:[%s8589_s20 + $0x58] sm:$0xff] %v5820_v8  ;;  %v2975_v0 = vadd.f32 %v8548_v4, %v2945_v50  ;;  %v5776_v21 = vadd.f32 %v8550_v45, %v5746_v17 }
 0x3b9   : > { %v2981_v46 = vmax.f32 %v2973_v55, 0.0  ;;  %v5782_v28 = vmax.f32 %v5774_v61, 0.0  ;;  %v3001_v29 = vmul.f32 %v8552_v20, %v2980_v14  ;;  %v2982_v58 = vmax.f32 %v2974_v13, 0.0 }
 0x3ba   : > { %v5801_v26 = vmul.f32 %v8554_v2, %v5781_v11  ;;  %v5783_v34 = vmax.f32 %v5775_v31, 0.0  ;;  %v2983_v40 = vmax.f32 %v2975_v0, 0.0  ;;  %v5784_v35 = vmax.f32 %v5776_v21, 0.0 }
 0x3bb   : > { %v3002_v59 = vmul.f32 %v8556_v56, %v2981_v46  ;;  %v5802_v16 = vmul.f32 %v8558_v49, %v5782_v28  ;;  %v3022_v4 = vadd.f32 %v8561_v51, %v3001_v29  ;;  %v3003_v39 = vmul.f32 %v8552_v20, %v2982_v58 }
 0x3bc   : > { %v5821_v45 = vadd.f32 %v8564_v44, %v5801_v26  ;;  %v5803_v30 = vmul.f32 %v8554_v2, %v5783_v34  ;;  %v3004_v37 = vmul.f32 %v8556_v56, %v2983_v40  ;;  %v5804_v54 = vmul.f32 %v8558_v49, %v5784_v35 }
 0x3bd   : > { %v3023_v6 = vadd.f32 %v8567_v9, %v3002_v59  ;;  %v5822_v62 = vadd.f32 %v8570_v22, %v5802_v16  ;;  %3030 = vst [vmem:[%s8589_s20 + $0x20] sm:$0xff] %v3022_v4  ;;  %v3024_v20 = vadd.f32 %v8561_v51, %v3003_v39 }
 0x3be   : > { %6623 = vst [vmem:[%s8589_s20 + $0x60] sm:$0xff] %v5821_v45  ;;  %v5823_v2 = vadd.f32 %v8564_v44, %v5803_v30  ;;  %v3025_v56 = vadd.f32 %v8567_v9, %v3004_v37  ;;  %v5824_v49 = vadd.f32 %v8570_v22, %v5804_v54 }
 0x3bf   : > { %3031 = vst [vmem:[%s8589_s20 + $0x28] sm:$0xff] %v3023_v6  ;;  %6624 = vst [vmem:[%s8589_s20 + $0x68] sm:$0xff] %v5822_v62 }
 0x3c0   : > { %3032 = vst [vmem:[%s8589_s20 + $0x30] sm:$0xff] %v3024_v20  ;;  %6625 = vst [vmem:[%s8589_s20 + $0x70] sm:$0xff] %v5823_v2 }
 0x3c1   : > { %3033 = vst [vmem:[%s8589_s20 + $0x38] sm:$0xff] %v3025_v56  ;;  %6626 = vst [vmem:[%s8589_s20 + $0x78] sm:$0xff] %v5824_v49 }
 0x3c2   : > { %7391 = shalt.err (!%p7388_p11)
}
 0x3c3   : > { %s7392_s19 = scalar_lea.hbm %s8628_s9, 2048  ;;  %s7396_s30 = scalar_lea.hbm %s8689_s3, 4096 }
 0x3c4   : > { %p7393_p0 = scmp.ne.s32.totalorder %s8628_s9, %s7392_s19  ;;  %p7397_p3 = scmp.lt.u32.totalorder %s8628_s9, %s8689_s3 }
 0x3c5   : > { %p7398_p10 = scmp.lt.u32.totalorder %s7396_s30, %s7392_s19  ;;  %p7400_p13 = scmp.lt.u32.totalorder %s7392_s19, %s8628_s9 }
 0x3c6   : > { %p7394_p4 = pnand %p7393_p0, %p8734_p2 }
 0x3c7   : > { %p7399_p6 = por %p7398_p10, %p7397_p3 }
 0x3c8   : > { %p7395_p1 = pneg %p7394_p4 }
 0x3c9   : > { %p7401_p12 = por %p7400_p13, %p7399_p6 }
 0x3cb   : > { %p7402_p5 = pnand %p7401_p12, %p7395_p1 }
 0x3cd   : > { %7405 = shalt.err (!%p7402_p5)
}
 0x3ce   : > { %s7456_s26 = smov 256   ;;  %s7457_s20 = smov 512  }
 0x3cf   : > { %s7458_s5 = smov 16  }
 0x3d0   : > { %6785 = dma.vmem_to_hbm [thread:$0]  (%p8734_p2), %s8634_s8, 2048, %s8628_s9, %s5835_s10, %s7456_s26, %s7457_s20, %s7458_s5  }
 0x3d1 PF: > { %s5863_s16 = sand.u32 1, %s7436_s12   ;;  %p8735_p7 = scmp.ne.s32.totalorder %s8711_s24, 0 }
 0x3d2   : > { %p8736_p8 = scmp.ge.s32.totalorder %s7448_s15, 2  ;;  %s5864_s25 = scalar_lea.sflag [#allocation4], %s5863_s16 }
 0x3d4   : > { %p6795_p9 = pnand %p8736_p8, %p8735_p7 }
 0x3d6   : > { %7431 = dma.done.wait (!%p6795_p9), %s5864_s25, 2048  }
 0x3d7   : > { %7433 = vsyncadd (!%p6795_p9), %s5864_s25, 4294965248  ;;  %p19_p11 = scmp.ge.s32.totalorder %s7504_s18, 4   ;;  %s8737_s12 = smov %s7440_s13 }
 0x3d8   : > { %s8738_s13 = smov %s7444_s14  ;;  %s8739_s14 = smov %s7516_s21 }
 0x3d9   : > { %s8740_s15 = smov %s7504_s18  ;;  %21 = sbr.rel (!%p19_p11) target bundleno = 7 (0x7), region = 94 }
 0x3e0   :  { %5869 = vsyncpa [#allocation3], 1 }
 0x3e1   :  { %5871 = vsyncpa [#allocation3 + $0x1], 1 }
 0x3e2   :  { %5872 = vsyncpa [#allocation6], 1 }
 0x3e3   :  { %5874 = vsyncpa [#allocation6 + $0x1], 1 }
 0x3e4   :  { %5875 = vsyncpa [#allocation4], 1 }
 0x3e5   :  { %5877 = vsyncpa [#allocation4 + $0x1], 1 }

</bundles_post_ra>
